<compile_context>
chip_gen: v7x
topology: tpu7x:2x2x1
jax: 0.10.0
libtpu: 0.0.40
codegen_flags: <defaults>
</compile_context>

<pallas_src>
import jax
import jax.numpy as jnp
from jax.experimental import pallas as pl
from jax.experimental.pallas import tpu as pltpu

# ----- model dimensions (small, lane-friendly stand-ins for the module) -----
H_BERT = 128      # stand-in for bert.config.hidden_size (768 in the module)
H_LSTM = 128      # stand-in for LSTM hidden_size (256 in the module)
NUM_LABELS = 11   # matches len(class_weights)
VOCAB = 32

CLASS_WEIGHTS = jnp.array(
    [1.0, 4.0, 4.0, 4.0, 4.0, 8.0, 8.0, 4.0, 4.0, 6.0, 6.0], dtype=jnp.float32)


# ============== fused bidirectional LSTM layer: ONE invocation ===============

def _bilstm_layer_kernel(xf_ref, wih_ref, whh_f_ref, whh_b_ref, b_ref,
                         out_ref, gxf_ref, gxb_ref, hf_sc, hb_sc):
    T, B, H4 = gxf_ref.shape
    H = H4 // 4

    # Phase 1: input projection for both directions, all timesteps, one GEMM.
    gx = jnp.dot(xf_ref[...], wih_ref[...],
                 preferred_element_type=jnp.float32) + b_ref[...]   # (T*B, 8H)
    gxf_ref[...] = gx[:, 0:4 * H].reshape(T, B, 4 * H)
    gxb_ref[...] = gx[:, 4 * H:8 * H].reshape(T, B, 4 * H)

    def cell(gates, c):                      # PyTorch gate order: i, f, g, o
        i_g = jax.nn.sigmoid(gates[:, 0:H])
        f_g = jax.nn.sigmoid(gates[:, H:2 * H])
        g_g = jnp.tanh(gates[:, 2 * H:3 * H])
        o_g = jax.nn.sigmoid(gates[:, 3 * H:4 * H])
        c_new = f_g * c + i_g * g_g
        return o_g * jnp.tanh(c_new), c_new

    # Phase 2: fwd + bwd recurrences in a single loop (only h @ W_hh per step).
    def body(t, carry):
        h_f, c_f, h_b, c_b = carry
        tb = T - 1 - t
        g_f = gxf_ref[t] + jnp.dot(h_f, whh_f_ref[...],
                                   preferred_element_type=jnp.float32)
        g_b = gxb_ref[tb] + jnp.dot(h_b, whh_b_ref[...],
                                    preferred_element_type=jnp.float32)
        h_f, c_f = cell(g_f, c_f)
        h_b, c_b = cell(g_b, c_b)
        hf_sc[t] = h_f
        hb_sc[tb] = h_b
        return (h_f, c_f, h_b, c_b)

    z = jnp.zeros((B, H), jnp.float32)
    jax.lax.fori_loop(0, T, body, (z, z, z, z))

    # Write the concatenated (T, B, 2H) output directly from this kernel.
    out_ref[...] = jnp.concatenate([hf_sc[...], hb_sc[...]], axis=-1)


def bilstm_layer(x_flat, T, B, wih_cat, whh_f, whh_b, b_cat):
    """x_flat: (T*B, Hin) time-major-flattened input.  Returns (T, B, 2H)."""
    Hin = x_flat.shape[1]
    H = whh_f.shape[0]
    return pl.pallas_call(
        _bilstm_layer_kernel,
        out_shape=jax.ShapeDtypeStruct((T, B, 2 * H), jnp.float32),
        grid_spec=pltpu.PrefetchScalarGridSpec(
            num_scalar_prefetch=0,
            grid=(1,),
            in_specs=[
                pl.BlockSpec((T * B, Hin), lambda i: (0, 0)),
                pl.BlockSpec((Hin, 8 * H), lambda i: (0, 0)),
                pl.BlockSpec((H, 4 * H), lambda i: (0, 0)),
                pl.BlockSpec((H, 4 * H), lambda i: (0, 0)),
                pl.BlockSpec((1, 8 * H), lambda i: (0, 0)),
            ],
            out_specs=pl.BlockSpec((T, B, 2 * H), lambda i: (0, 0, 0)),
            scratch_shapes=[pltpu.VMEM((T, B, 4 * H), jnp.float32),
                            pltpu.VMEM((T, B, 4 * H), jnp.float32),
                            pltpu.VMEM((T, B, H), jnp.float32),
                            pltpu.VMEM((T, B, H), jnp.float32)],
        ),
        compiler_params=pltpu.CompilerParams(
            dimension_semantics=("arbitrary",)),
    )(x_flat, wih_cat, whh_f, whh_b, b_cat)


# ============ fused FC (+ class weights) + CRF negative log-likelihood ======
# torchcrf semantics with reduction='sum':  loss = -sum_b (num_b - denom_b)

def _fc_crf_kernel(xtm_ref, xflat_ref, wfc_ref, bfc_ref, cw_ref,
                   ohflat_ref, ohprev_ref, ohnext_ref, ohlast_ref,
                   maskL_ref, start_ref, end_ref, trans_ref, loss_ref):
    T, B, _ = xtm_ref.shape
    trans = trans_ref[...]                 # (L, L)
    start = start_ref[...]                 # (1, L)
    end = end_ref[...]                     # (1, L)

    # --- emissions for ALL timesteps as one GEMM (used by the numerator) ---
    em_flat = (jnp.dot(xflat_ref[...], wfc_ref[...],
                       preferred_element_type=jnp.float32)
               + bfc_ref[...]) * cw_ref[...]                       # (T*B, L)

    # --- numerator (gold path score): fully vectorized, outside the loop ---
    # One-hot rows are all-zero where label == -100, so the mask weighting of
    # the emission / transition terms is implicit in the one-hots.
    emit_num = jnp.sum(em_flat * ohflat_ref[...], axis=(0, 1), keepdims=True)
    tsc = jnp.dot(ohprev_ref[...], trans,
                  preferred_element_type=jnp.float32)              # ((T-1)*B, L)
    trans_num = jnp.sum(tsc * ohnext_ref[...], axis=(0, 1), keepdims=True)
    oh0 = ohflat_ref[0:B, :]                                       # tags at t=0
    start_num = jnp.sum(start * oh0, axis=(0, 1), keepdims=True)
    end_num = jnp.sum(end * ohlast_ref[...], axis=(0, 1), keepdims=True)
    num = emit_num + trans_num + start_num + end_num               # (1, 1)

    # --- denominator: sequential log-space forward algorithm ---
    def emissions_at(x_bd):                                        # (B,D)->(B,L)
        return (jnp.dot(x_bd, wfc_ref[...],
                        preferred_element_type=jnp.float32)
                + bfc_ref[...]) * cw_ref[...]

    alpha0 = start + emissions_at(xtm_ref[0])                      # (B, L)

    def body(t, alpha):
        em_t = emissions_at(xtm_ref[t])                            # (B, L)
        m_t = maskL_ref[t]                                         # (B, L)
        bcast = alpha[:, :, None] + trans[None, :, :] + em_t[:, None, :]
        mmax = jnp.max(bcast, axis=1, keepdims=True)
        nxt = jnp.log(jnp.sum(jnp.exp(bcast - mmax), axis=1,
                              keepdims=True)) + mmax
        return jnp.where(m_t > 0.0, nxt[:, 0, :], alpha)

    alpha = jax.lax.fori_loop(1, T, body, alpha0)
    alpha = alpha + end
    amax = jnp.max(alpha, axis=1, keepdims=True)
    denom = jnp.log(jnp.sum(jnp.exp(alpha - amax), axis=1,
                            keepdims=True)) + amax                  # (B, 1)
    denom_tot = jnp.sum(denom, axis=(0, 1), keepdims=True)          # (1, 1)

    loss_ref[...] = denom_tot - num       # = -(num - denom), reduction='sum'


def fc_crf_nll(lstm_out_tm, lstm_out_flat, fc_w, fc_b, cw,
               oh_flat, oh_prev, oh_next, oh_last, maskL, start, end, trans):
    T, B, D = lstm_out_tm.shape
    L = fc_w.shape[1]
    return pl.pallas_call(
        _fc_crf_kernel,
        out_shape=jax.ShapeDtypeStruct((1, 1), jnp.float32),
        grid_spec=pltpu.PrefetchScalarGridSpec(
            num_scalar_prefetch=0,
            grid=(1,),
            in_specs=[
                pl.BlockSpec((T, B, D), lambda i: (0, 0, 0)),
                pl.BlockSpec((T * B, D), lambda i: (0, 0)),
                pl.BlockSpec((D, L), lambda i: (0, 0)),
                pl.BlockSpec((1, L), lambda i: (0, 0)),
                pl.BlockSpec((1, L), lambda i: (0, 0)),
                pl.BlockSpec((T * B, L), lambda i: (0, 0)),
                pl.BlockSpec(((T - 1) * B, L), lambda i: (0, 0)),
                pl.BlockSpec(((T - 1) * B, L), lambda i: (0, 0)),
                pl.BlockSpec((B, L), lambda i: (0, 0)),
                pl.BlockSpec((T, B, L), lambda i: (0, 0, 0)),
                pl.BlockSpec((1, L), lambda i: (0, 0)),
                pl.BlockSpec((1, L), lambda i: (0, 0)),
                pl.BlockSpec((L, L), lambda i: (0, 0)),
            ],
            out_specs=pl.BlockSpec((1, 1), lambda i: (0, 0)),
        ),
        compiler_params=pltpu.CompilerParams(
            dimension_semantics=("arbitrary",)),
    )(lstm_out_tm, lstm_out_flat, fc_w, fc_b.reshape(1, L), cw.reshape(1, L),
      oh_flat, oh_prev, oh_next, oh_last, maskL,
      start.reshape(1, L), end.reshape(1, L), trans)


# ============================ parameters & forward ==========================

def init_params(key):
    ks = iter(jax.random.split(key, 32))

    def rnd(shape, scale=0.1):
        return jax.random.normal(next(ks), shape, jnp.float32) * scale

    params = {
        # TODO(synk): full BERT encoder (multi-head attention + FFN stack) has
        # no clean single-kernel equivalent here; replaced with a deterministic
        # embedding table producing last_hidden_state.
        "emb": rnd((VOCAB, H_BERT), 0.5),
        "lstm": [],
        "fc_w": rnd((2 * H_LSTM, NUM_LABELS)),   # nn.Linear weight, pre-transposed
        "fc_b": rnd((NUM_LABELS,)),
        "crf_start": rnd((NUM_LABELS,)),
        "crf_end": rnd((NUM_LABELS,)),
        "crf_trans": rnd((NUM_LABELS, NUM_LABELS)),
    }
    in_sizes = [H_BERT, 2 * H_LSTM]
    for layer in range(2):
        wih_f = rnd((in_sizes[layer], 4 * H_LSTM))   # W_ih fwd (pre-transposed)
        wih_b = rnd((in_sizes[layer], 4 * H_LSTM))   # W_ih bwd (pre-transposed)
        b_f = rnd((4 * H_LSTM,))                     # b_ih + b_hh (fwd)
        b_b = rnd((4 * H_LSTM,))                     # b_ih + b_hh (bwd)
        params["lstm"].append({
            "wih_cat": jnp.concatenate([wih_f, wih_b], axis=1),      # (Hin, 8H)
            "whh_f": rnd((H_LSTM, 4 * H_LSTM)),
            "whh_b": rnd((H_LSTM, 4 * H_LSTM)),
            "b_cat": jnp.concatenate([b_f, b_b]).reshape(1, 8 * H_LSTM),
        })
    return params


def bilstm_crf_forward(params, input_ids, attention_mask, labels):
    B, T = input_ids.shape
    # BERT stand-in (glue).  In the loss path attention_mask only feeds BERT,
    # so it is unused past this point.
    seq = params["emb"][input_ids]                      # (B, T, H_BERT)
    x_tm = jnp.transpose(seq, (1, 0, 2))                # time-major (T, B, H)

    # 2-layer bidirectional LSTM; each layer is ONE fused pallas_call.
    layer_in = x_tm
    for layer in range(2):
        p = params["lstm"][layer]
        Hin = layer_in.shape[-1]
        layer_in = bilstm_layer(layer_in.reshape(T * B, Hin), T, B,
                                p["wih_cat"], p["whh_f"], p["whh_b"], p["b_cat"])
    lstm_out = layer_in                                 # (T, B, 2*H_LSTM)
    D = lstm_out.shape[-1]

    # ---- label / mask preprocessing (layout plumbing, done in the wrapper) ----
    labels_tm = labels.T                                # (T, B)
    mask_tm = labels_tm != -100
    maskf = mask_tm.astype(jnp.float32)
    oh = jax.nn.one_hot(labels_tm, NUM_LABELS, dtype=jnp.float32)   # -100 -> 0s
    oh_flat = oh.reshape(T * B, NUM_LABELS)
    oh_prev = oh[:-1].reshape((T - 1) * B, NUM_LABELS)
    oh_next = oh[1:].reshape((T - 1) * B, NUM_LABELS)
    maskL = jnp.broadcast_to(maskf[:, :, None], (T, B, NUM_LABELS))
    # last valid tag per sequence (torchcrf: seq_ends = mask.sum(0) - 1)
    seq_ends = jnp.maximum(jnp.sum(mask_tm.astype(jnp.int32), axis=0) - 1, 0)
    last_tags = jnp.take_along_axis(labels_tm, seq_ends[None, :], axis=0)[0]
    oh_last = jax.nn.one_hot(last_tags, NUM_LABELS, dtype=jnp.float32)

    # TODO(synk): the labels=None branch (crf.decode Viterbi) is not
    # implemented; we reproduce the training/loss path (reduction='sum').
    loss = fc_crf_nll(lstm_out, lstm_out.reshape(T * B, D),
                      params["fc_w"], params["fc_b"], CLASS_WEIGHTS,
                      oh_flat, oh_prev, oh_next, oh_last, maskL,
                      params["crf_start"], params["crf_end"],
                      params["crf_trans"])
    return loss[0, 0]


if __name__ == "__main__":
    B, T = 2, 8
    key = jax.random.PRNGKey(0)
    k_params, k_ids, k_lab = jax.random.split(key, 3)
    params = init_params(k_params)

    input_ids = jax.random.randint(k_ids, (B, T), 0, VOCAB, dtype=jnp.int32)
    attention_mask = jnp.ones((B, T), dtype=jnp.int32)
    labels = jax.random.randint(k_lab, (B, T), 0, NUM_LABELS, dtype=jnp.int32)
    labels = labels.at[0, T - 1].set(-100)   # one padded tail position

    loss = jax.jit(bilstm_crf_forward)(params, input_ids, attention_mask, labels)
    jax.block_until_ready(loss)
    assert bool(jnp.isfinite(loss)), loss
    print("KERNEL_OK")
</pallas_src>

<mosaic_0001>
module attributes {stable_mosaic.version = 11 : i64} {
  func.func @_bilstm_layer_kernel(%arg0: i32, %arg1: memref<16x128xf32, #tpu.memory_space<vmem>>, %arg2: memref<128x1024xf32, #tpu.memory_space<vmem>>, %arg3: memref<128x512xf32, #tpu.memory_space<vmem>>, %arg4: memref<128x512xf32, #tpu.memory_space<vmem>>, %arg5: memref<1x1024xf32, #tpu.memory_space<vmem>>, %arg6: memref<8x2x256xf32, #tpu.memory_space<vmem>>, %arg7: memref<8x2x512xf32, #tpu.memory_space<vmem>>, %arg8: memref<8x2x512xf32, #tpu.memory_space<vmem>>, %arg9: memref<8x2x128xf32, #tpu.memory_space<vmem>>, %arg10: memref<8x2x128xf32, #tpu.memory_space<vmem>>) attributes {dimension_semantics = [#tpu.dimension_semantics<arbitrary>], iteration_bounds = array<i64: 1>, scalar_prefetch = 0 : i64, scratch_operands = 4 : i64, tpu.core_type = #tpu.core_type<tc>, window_params = [{pipeline_mode = #tpu.pipeline_mode<synchronous>, transform_indices = @transform_0, window_bounds = array<i64: 16, 128>}, {pipeline_mode = #tpu.pipeline_mode<synchronous>, transform_indices = @transform_1, window_bounds = array<i64: 128, 1024>}, {pipeline_mode = #tpu.pipeline_mode<synchronous>, transform_indices = @transform_2, window_bounds = array<i64: 128, 512>}, {pipeline_mode = #tpu.pipeline_mode<synchronous>, transform_indices = @transform_3, window_bounds = array<i64: 128, 512>}, {pipeline_mode = #tpu.pipeline_mode<synchronous>, transform_indices = @transform_4, window_bounds = array<i64: 1, 1024>}, {pipeline_mode = #tpu.pipeline_mode<synchronous>, transform_indices = @transform_5, window_bounds = array<i64: 8, 2, 256>}]} {
    %c0 = arith.constant 0 : index
    %c0_0 = arith.constant 0 : index
    %0 = vector.load %arg1[%c0, %c0_0] : memref<16x128xf32, #tpu.memory_space<vmem>>, vector<16x128xf32>
    %c0_1 = arith.constant 0 : index
    %c0_2 = arith.constant 0 : index
    %1 = vector.load %arg2[%c0_1, %c0_2] : memref<128x1024xf32, #tpu.memory_space<vmem>>, vector<128x1024xf32>
    %cst = arith.constant dense<0.000000e+00> : vector<16x1024xf32>
    %2 = tpu.matmul %0, %1, %cst {dimension_numbers = #tpu.dot_dimension_numbers<[1], [0], [0], [1], [0, 0, 1, 1], [], []>} : vector<16x128xf32>, vector<128x1024xf32>, vector<16x1024xf32> -> vector<16x1024xf32>
    %c0_3 = arith.constant 0 : index
    %c0_4 = arith.constant 0 : index
    %3 = vector.load %arg5[%c0_3, %c0_4] : memref<1x1024xf32, #tpu.memory_space<vmem>>, vector<1x1024xf32>
    %4 = vector.broadcast %3 : vector<1x1024xf32> to vector<16x1024xf32>
    %5 = arith.addf %2, %4 : vector<16x1024xf32>
    %6 = vector.extract_strided_slice %5 {offsets = [0, 0], sizes = [16, 512], strides = [1, 1]} : vector<16x1024xf32> to vector<16x512xf32>
    %7 = vector.shape_cast %6 : vector<16x512xf32> to vector<8x2x512xf32>
    %c0_5 = arith.constant 0 : index
    %c0_6 = arith.constant 0 : index
    %c0_7 = arith.constant 0 : index
    %8 = vector.load %arg7[%c0_5, %c0_6, %c0_7] : memref<8x2x512xf32, #tpu.memory_space<vmem>>, vector<8x2x512xf32>
    tpu.vector_store %arg7[%c0_5, %c0_6, %c0_7], %7 {strides = array<i32>} : memref<8x2x512xf32, #tpu.memory_space<vmem>>, vector<8x2x512xf32>,
    %9 = vector.extract_strided_slice %5 {offsets = [0, 512], sizes = [16, 512], strides = [1, 1]} : vector<16x1024xf32> to vector<16x512xf32>
    %10 = vector.shape_cast %9 : vector<16x512xf32> to vector<8x2x512xf32>
    %c0_8 = arith.constant 0 : index
    %c0_9 = arith.constant 0 : index
    %c0_10 = arith.constant 0 : index
    %11 = vector.load %arg8[%c0_8, %c0_9, %c0_10] : memref<8x2x512xf32, #tpu.memory_space<vmem>>, vector<8x2x512xf32>
    tpu.vector_store %arg8[%c0_8, %c0_9, %c0_10], %10 {strides = array<i32>} : memref<8x2x512xf32, #tpu.memory_space<vmem>>, vector<8x2x512xf32>,
    %cst_11 = arith.constant 0.000000e+00 : f32
    %12 = vector.broadcast %cst_11 : f32 to vector<2x128xf32>
    %c0_i32 = arith.constant 0 : i32
    %c8_i32 = arith.constant 8 : i32
    %13 = arith.addi %c0_i32, %c8_i32 : i32
    %c1_i32 = arith.constant 1 : i32
    %14:4 = scf.for %arg11 = %c0_i32 to %13 step %c1_i32 iter_args(%arg12 = %12, %arg13 = %12, %arg14 = %12, %arg15 = %12) -> (vector<2x128xf32>, vector<2x128xf32>, vector<2x128xf32>, vector<2x128xf32>)  : i32 {
      %c7_i32 = arith.constant 7 : i32
      %19 = arith.subi %c7_i32, %arg11 : i32
      %20 = arith.index_cast %arg11 : i32 to index
      %c0_22 = arith.constant 0 : index
      %c0_23 = arith.constant 0 : index
      %21 = vector.load %arg7[%20, %c0_22, %c0_23] : memref<8x2x512xf32, #tpu.memory_space<vmem>>, vector<1x2x512xf32>
      %22 = vector.shape_cast %21 : vector<1x2x512xf32> to vector<2x512xf32>
      %c0_24 = arith.constant 0 : index
      %c0_25 = arith.constant 0 : index
      %23 = vector.load %arg3[%c0_24, %c0_25] : memref<128x512xf32, #tpu.memory_space<vmem>>, vector<128x512xf32>
      %cst_26 = arith.constant dense<0.000000e+00> : vector<2x512xf32>
      %24 = tpu.matmul %arg12, %23, %cst_26 {dimension_numbers = #tpu.dot_dimension_numbers<[1], [0], [0], [1], [0, 0, 1, 1], [], []>} : vector<2x128xf32>, vector<128x512xf32>, vector<2x512xf32> -> vector<2x512xf32>
      %25 = arith.addf %22, %24 : vector<2x512xf32>
      %26 = arith.index_cast %19 : i32 to index
      %c0_27 = arith.constant 0 : index
      %c0_28 = arith.constant 0 : index
      %27 = vector.load %arg8[%26, %c0_27, %c0_28] : memref<8x2x512xf32, #tpu.memory_space<vmem>>, vector<1x2x512xf32>
      %28 = vector.shape_cast %27 : vector<1x2x512xf32> to vector<2x512xf32>
      %c0_29 = arith.constant 0 : index
      %c0_30 = arith.constant 0 : index
      %29 = vector.load %arg4[%c0_29, %c0_30] : memref<128x512xf32, #tpu.memory_space<vmem>>, vector<128x512xf32>
      %cst_31 = arith.constant dense<0.000000e+00> : vector<2x512xf32>
      %30 = tpu.matmul %arg14, %29, %cst_31 {dimension_numbers = #tpu.dot_dimension_numbers<[1], [0], [0], [1], [0, 0, 1, 1], [], []>} : vector<2x128xf32>, vector<128x512xf32>, vector<2x512xf32> -> vector<2x512xf32>
      %31 = arith.addf %28, %30 : vector<2x512xf32>
      %32 = vector.extract_strided_slice %25 {offsets = [0, 0], sizes = [2, 128], strides = [1, 1]} : vector<2x512xf32> to vector<2x128xf32>
      %33 = arith.negf %32 : vector<2x128xf32>
      %34 = math.exp %33 : vector<2x128xf32>
      %cst_32 = arith.constant 1.000000e+00 : f32
      %35 = vector.broadcast %cst_32 : f32 to vector<2x128xf32>
      %36 = arith.addf %35, %34 : vector<2x128xf32>
      %37 = arith.divf %35, %36 : vector<2x128xf32>
      %38 = vector.extract_strided_slice %25 {offsets = [0, 128], sizes = [2, 128], strides = [1, 1]} : vector<2x512xf32> to vector<2x128xf32>
      %39 = arith.negf %38 : vector<2x128xf32>
      %40 = math.exp %39 : vector<2x128xf32>
      %cst_33 = arith.constant 1.000000e+00 : f32
      %41 = vector.broadcast %cst_33 : f32 to vector<2x128xf32>
      %42 = arith.addf %41, %40 : vector<2x128xf32>
      %43 = arith.divf %41, %42 : vector<2x128xf32>
      %44 = vector.extract_strided_slice %25 {offsets = [0, 256], sizes = [2, 128], strides = [1, 1]} : vector<2x512xf32> to vector<2x128xf32>
      %45 = math.tanh %44 : vector<2x128xf32>
      %46 = vector.extract_strided_slice %25 {offsets = [0, 384], sizes = [2, 128], strides = [1, 1]} : vector<2x512xf32> to vector<2x128xf32>
      %47 = arith.negf %46 : vector<2x128xf32>
      %48 = math.exp %47 : vector<2x128xf32>
      %cst_34 = arith.constant 1.000000e+00 : f32
      %49 = vector.broadcast %cst_34 : f32 to vector<2x128xf32>
      %50 = arith.addf %49, %48 : vector<2x128xf32>
      %51 = arith.divf %49, %50 : vector<2x128xf32>
      %52 = arith.mulf %43, %arg13 : vector<2x128xf32>
      %53 = arith.mulf %37, %45 : vector<2x128xf32>
      %54 = arith.addf %52, %53 : vector<2x128xf32>
      %55 = math.tanh %54 : vector<2x128xf32>
      %56 = arith.mulf %51, %55 : vector<2x128xf32>
      %57 = vector.extract_strided_slice %31 {offsets = [0, 0], sizes = [2, 128], strides = [1, 1]} : vector<2x512xf32> to vector<2x128xf32>
      %58 = arith.negf %57 : vector<2x128xf32>
      %59 = math.exp %58 : vector<2x128xf32>
      %cst_35 = arith.constant 1.000000e+00 : f32
      %60 = vector.broadcast %cst_35 : f32 to vector<2x128xf32>
      %61 = arith.addf %60, %59 : vector<2x128xf32>
      %62 = arith.divf %60, %61 : vector<2x128xf32>
      %63 = vector.extract_strided_slice %31 {offsets = [0, 128], sizes = [2, 128], strides = [1, 1]} : vector<2x512xf32> to vector<2x128xf32>
      %64 = arith.negf %63 : vector<2x128xf32>
      %65 = math.exp %64 : vector<2x128xf32>
      %cst_36 = arith.constant 1.000000e+00 : f32
      %66 = vector.broadcast %cst_36 : f32 to vector<2x128xf32>
      %67 = arith.addf %66, %65 : vector<2x128xf32>
      %68 = arith.divf %66, %67 : vector<2x128xf32>
      %69 = vector.extract_strided_slice %31 {offsets = [0, 256], sizes = [2, 128], strides = [1, 1]} : vector<2x512xf32> to vector<2x128xf32>
      %70 = math.tanh %69 : vector<2x128xf32>
      %71 = vector.extract_strided_slice %31 {offsets = [0, 384], sizes = [2, 128], strides = [1, 1]} : vector<2x512xf32> to vector<2x128xf32>
      %72 = arith.negf %71 : vector<2x128xf32>
      %73 = math.exp %72 : vector<2x128xf32>
      %cst_37 = arith.constant 1.000000e+00 : f32
      %74 = vector.broadcast %cst_37 : f32 to vector<2x128xf32>
      %75 = arith.addf %74, %73 : vector<2x128xf32>
      %76 = arith.divf %74, %75 : vector<2x128xf32>
      %77 = arith.mulf %68, %arg15 : vector<2x128xf32>
      %78 = arith.mulf %62, %70 : vector<2x128xf32>
      %79 = arith.addf %77, %78 : vector<2x128xf32>
      %80 = math.tanh %79 : vector<2x128xf32>
      %81 = arith.mulf %76, %80 : vector<2x128xf32>
      %82 = arith.index_cast %arg11 : i32 to index
      %c0_38 = arith.constant 0 : index
      %c0_39 = arith.constant 0 : index
      %83 = vector.load %arg9[%82, %c0_38, %c0_39] : memref<8x2x128xf32, #tpu.memory_space<vmem>>, vector<1x2x128xf32>
      %84 = vector.shape_cast %83 : vector<1x2x128xf32> to vector<2x128xf32>
      %85 = vector.shape_cast %56 : vector<2x128xf32> to vector<1x2x128xf32>
      tpu.vector_store %arg9[%82, %c0_38, %c0_39], %85 {strides = array<i32>} : memref<8x2x128xf32, #tpu.memory_space<vmem>>, vector<1x2x128xf32>,
      %86 = arith.index_cast %19 : i32 to index
      %c0_40 = arith.constant 0 : index
      %c0_41 = arith.constant 0 : index
      %87 = vector.load %arg10[%86, %c0_40, %c0_41] : memref<8x2x128xf32, #tpu.memory_space<vmem>>, vector<1x2x128xf32>
      %88 = vector.shape_cast %87 : vector<1x2x128xf32> to vector<2x128xf32>
      %89 = vector.shape_cast %81 : vector<2x128xf32> to vector<1x2x128xf32>
      tpu.vector_store %arg10[%86, %c0_40, %c0_41], %89 {strides = array<i32>} : memref<8x2x128xf32, #tpu.memory_space<vmem>>, vector<1x2x128xf32>,
      scf.yield %56, %54, %81, %79 : vector<2x128xf32>, vector<2x128xf32>, vector<2x128xf32>, vector<2x128xf32>
    }
    %c8_i32_12 = arith.constant 8 : i32
    %c0_13 = arith.constant 0 : index
    %c0_14 = arith.constant 0 : index
    %c0_15 = arith.constant 0 : index
    %15 = vector.load %arg9[%c0_13, %c0_14, %c0_15] : memref<8x2x128xf32, #tpu.memory_space<vmem>>, vector<8x2x128xf32>
    %c0_16 = arith.constant 0 : index
    %c0_17 = arith.constant 0 : index
    %c0_18 = arith.constant 0 : index
    %16 = vector.load %arg10[%c0_16, %c0_17, %c0_18] : memref<8x2x128xf32, #tpu.memory_space<vmem>>, vector<8x2x128xf32>
    %17 = tpu.concatenate %15, %16 in 2 : vector<8x2x128xf32>, vector<8x2x128xf32> -> vector<8x2x256xf32>
    %c0_19 = arith.constant 0 : index
    %c0_20 = arith.constant 0 : index
    %c0_21 = arith.constant 0 : index
    %18 = vector.load %arg6[%c0_19, %c0_20, %c0_21] : memref<8x2x256xf32, #tpu.memory_space<vmem>>, vector<8x2x256xf32>
    tpu.vector_store %arg6[%c0_19, %c0_20, %c0_21], %17 {strides = array<i32>} : memref<8x2x256xf32, #tpu.memory_space<vmem>>, vector<8x2x256xf32>,
    return
  }
  func.func @transform_0(%arg0: i32) -> (i32, i32) {
    %c0_i32 = arith.constant 0 : i32
    %c0_i32_0 = arith.constant 0 : i32
    %c0_i32_1 = arith.constant 0 : i32
    return %c0_i32, %c0_i32_0 : i32, i32
  }
  func.func @transform_1(%arg0: i32) -> (i32, i32) {
    %c0_i32 = arith.constant 0 : i32
    %c0_i32_0 = arith.constant 0 : i32
    %c0_i32_1 = arith.constant 0 : i32
    return %c0_i32, %c0_i32_0 : i32, i32
  }
  func.func @transform_2(%arg0: i32) -> (i32, i32) {
    %c0_i32 = arith.constant 0 : i32
    %c0_i32_0 = arith.constant 0 : i32
    %c0_i32_1 = arith.constant 0 : i32
    return %c0_i32, %c0_i32_0 : i32, i32
  }
  func.func @transform_3(%arg0: i32) -> (i32, i32) {
    %c0_i32 = arith.constant 0 : i32
    %c0_i32_0 = arith.constant 0 : i32
    %c0_i32_1 = arith.constant 0 : i32
    return %c0_i32, %c0_i32_0 : i32, i32
  }
  func.func @transform_4(%arg0: i32) -> (i32, i32) {
    %c0_i32 = arith.constant 0 : i32
    %c0_i32_0 = arith.constant 0 : i32
    %c0_i32_1 = arith.constant 0 : i32
    return %c0_i32, %c0_i32_0 : i32, i32
  }
  func.func @transform_5(%arg0: i32) -> (i32, i32, i32) {
    %c0_i32 = arith.constant 0 : i32
    %c0_i32_0 = arith.constant 0 : i32
    %c0_i32_1 = arith.constant 0 : i32
    %c0_i32_2 = arith.constant 0 : i32
    return %c0_i32, %c0_i32_0, %c0_i32_1 : i32, i32, i32
  }
}

module attributes {stable_mosaic.version = 11 : i64} {
  func.func @_bilstm_layer_kernel(%arg0: i32, %arg1: memref<16x256xf32, #tpu.memory_space<vmem>>, %arg2: memref<256x1024xf32, #tpu.memory_space<vmem>>, %arg3: memref<128x512xf32, #tpu.memory_space<vmem>>, %arg4: memref<128x512xf32, #tpu.memory_space<vmem>>, %arg5: memref<1x1024xf32, #tpu.memory_space<vmem>>, %arg6: memref<8x2x256xf32, #tpu.memory_space<vmem>>, %arg7: memref<8x2x512xf32, #tpu.memory_space<vmem>>, %arg8: memref<8x2x512xf32, #tpu.memory_space<vmem>>, %arg9: memref<8x2x128xf32, #tpu.memory_space<vmem>>, %arg10: memref<8x2x128xf32, #tpu.memory_space<vmem>>) attributes {dimension_semantics = [#tpu.dimension_semantics<arbitrary>], iteration_bounds = array<i64: 1>, scalar_prefetch = 0 : i64, scratch_operands = 4 : i64, tpu.core_type = #tpu.core_type<tc>, window_params = [{pipeline_mode = #tpu.pipeline_mode<synchronous>, transform_indices = @transform_0, window_bounds = array<i64: 16, 256>}, {pipeline_mode = #tpu.pipeline_mode<synchronous>, transform_indices = @transform_1, window_bounds = array<i64: 256, 1024>}, {pipeline_mode = #tpu.pipeline_mode<synchronous>, transform_indices = @transform_2, window_bounds = array<i64: 128, 512>}, {pipeline_mode = #tpu.pipeline_mode<synchronous>, transform_indices = @transform_3, window_bounds = array<i64: 128, 512>}, {pipeline_mode = #tpu.pipeline_mode<synchronous>, transform_indices = @transform_4, window_bounds = array<i64: 1, 1024>}, {pipeline_mode = #tpu.pipeline_mode<synchronous>, transform_indices = @transform_5, window_bounds = array<i64: 8, 2, 256>}]} {
    %c0 = arith.constant 0 : index
    %c0_0 = arith.constant 0 : index
    %0 = vector.load %arg1[%c0, %c0_0] : memref<16x256xf32, #tpu.memory_space<vmem>>, vector<16x256xf32>
    %c0_1 = arith.constant 0 : index
    %c0_2 = arith.constant 0 : index
    %1 = vector.load %arg2[%c0_1, %c0_2] : memref<256x1024xf32, #tpu.memory_space<vmem>>, vector<256x1024xf32>
    %cst = arith.constant dense<0.000000e+00> : vector<16x1024xf32>
    %2 = tpu.matmul %0, %1, %cst {dimension_numbers = #tpu.dot_dimension_numbers<[1], [0], [0], [1], [0, 0, 1, 1], [], []>} : vector<16x256xf32>, vector<256x1024xf32>, vector<16x1024xf32> -> vector<16x1024xf32>
    %c0_3 = arith.constant 0 : index
    %c0_4 = arith.constant 0 : index
    %3 = vector.load %arg5[%c0_3, %c0_4] : memref<1x1024xf32, #tpu.memory_space<vmem>>, vector<1x1024xf32>
    %4 = vector.broadcast %3 : vector<1x1024xf32> to vector<16x1024xf32>
    %5 = arith.addf %2, %4 : vector<16x1024xf32>
    %6 = vector.extract_strided_slice %5 {offsets = [0, 0], sizes = [16, 512], strides = [1, 1]} : vector<16x1024xf32> to vector<16x512xf32>
    %7 = vector.shape_cast %6 : vector<16x512xf32> to vector<8x2x512xf32>
    %c0_5 = arith.constant 0 : index
    %c0_6 = arith.constant 0 : index
    %c0_7 = arith.constant 0 : index
    %8 = vector.load %arg7[%c0_5, %c0_6, %c0_7] : memref<8x2x512xf32, #tpu.memory_space<vmem>>, vector<8x2x512xf32>
    tpu.vector_store %arg7[%c0_5, %c0_6, %c0_7], %7 {strides = array<i32>} : memref<8x2x512xf32, #tpu.memory_space<vmem>>, vector<8x2x512xf32>,
    %9 = vector.extract_strided_slice %5 {offsets = [0, 512], sizes = [16, 512], strides = [1, 1]} : vector<16x1024xf32> to vector<16x512xf32>
    %10 = vector.shape_cast %9 : vector<16x512xf32> to vector<8x2x512xf32>
    %c0_8 = arith.constant 0 : index
    %c0_9 = arith.constant 0 : index
    %c0_10 = arith.constant 0 : index
    %11 = vector.load %arg8[%c0_8, %c0_9, %c0_10] : memref<8x2x512xf32, #tpu.memory_space<vmem>>, vector<8x2x512xf32>
    tpu.vector_store %arg8[%c0_8, %c0_9, %c0_10], %10 {strides = array<i32>} : memref<8x2x512xf32, #tpu.memory_space<vmem>>, vector<8x2x512xf32>,
    %cst_11 = arith.constant 0.000000e+00 : f32
    %12 = vector.broadcast %cst_11 : f32 to vector<2x128xf32>
    %c0_i32 = arith.constant 0 : i32
    %c8_i32 = arith.constant 8 : i32
    %13 = arith.addi %c0_i32, %c8_i32 : i32
    %c1_i32 = arith.constant 1 : i32
    %14:4 = scf.for %arg11 = %c0_i32 to %13 step %c1_i32 iter_args(%arg12 = %12, %arg13 = %12, %arg14 = %12, %arg15 = %12) -> (vector<2x128xf32>, vector<2x128xf32>, vector<2x128xf32>, vector<2x128xf32>)  : i32 {
      %c7_i32 = arith.constant 7 : i32
      %19 = arith.subi %c7_i32, %arg11 : i32
      %20 = arith.index_cast %arg11 : i32 to index
      %c0_22 = arith.constant 0 : index
      %c0_23 = arith.constant 0 : index
      %21 = vector.load %arg7[%20, %c0_22, %c0_23] : memref<8x2x512xf32, #tpu.memory_space<vmem>>, vector<1x2x512xf32>
      %22 = vector.shape_cast %21 : vector<1x2x512xf32> to vector<2x512xf32>
      %c0_24 = arith.constant 0 : index
      %c0_25 = arith.constant 0 : index
      %23 = vector.load %arg3[%c0_24, %c0_25] : memref<128x512xf32, #tpu.memory_space<vmem>>, vector<128x512xf32>
      %cst_26 = arith.constant dense<0.000000e+00> : vector<2x512xf32>
      %24 = tpu.matmul %arg12, %23, %cst_26 {dimension_numbers = #tpu.dot_dimension_numbers<[1], [0], [0], [1], [0, 0, 1, 1], [], []>} : vector<2x128xf32>, vector<128x512xf32>, vector<2x512xf32> -> vector<2x512xf32>
      %25 = arith.addf %22, %24 : vector<2x512xf32>
      %26 = arith.index_cast %19 : i32 to index
      %c0_27 = arith.constant 0 : index
      %c0_28 = arith.constant 0 : index
      %27 = vector.load %arg8[%26, %c0_27, %c0_28] : memref<8x2x512xf32, #tpu.memory_space<vmem>>, vector<1x2x512xf32>
      %28 = vector.shape_cast %27 : vector<1x2x512xf32> to vector<2x512xf32>
      %c0_29 = arith.constant 0 : index
      %c0_30 = arith.constant 0 : index
      %29 = vector.load %arg4[%c0_29, %c0_30] : memref<128x512xf32, #tpu.memory_space<vmem>>, vector<128x512xf32>
      %cst_31 = arith.constant dense<0.000000e+00> : vector<2x512xf32>
      %30 = tpu.matmul %arg14, %29, %cst_31 {dimension_numbers = #tpu.dot_dimension_numbers<[1], [0], [0], [1], [0, 0, 1, 1], [], []>} : vector<2x128xf32>, vector<128x512xf32>, vector<2x512xf32> -> vector<2x512xf32>
      %31 = arith.addf %28, %30 : vector<2x512xf32>
      %32 = vector.extract_strided_slice %25 {offsets = [0, 0], sizes = [2, 128], strides = [1, 1]} : vector<2x512xf32> to vector<2x128xf32>
      %33 = arith.negf %32 : vector<2x128xf32>
      %34 = math.exp %33 : vector<2x128xf32>
      %cst_32 = arith.constant 1.000000e+00 : f32
      %35 = vector.broadcast %cst_32 : f32 to vector<2x128xf32>
      %36 = arith.addf %35, %34 : vector<2x128xf32>
      %37 = arith.divf %35, %36 : vector<2x128xf32>
      %38 = vector.extract_strided_slice %25 {offsets = [0, 128], sizes = [2, 128], strides = [1, 1]} : vector<2x512xf32> to vector<2x128xf32>
      %39 = arith.negf %38 : vector<2x128xf32>
      %40 = math.exp %39 : vector<2x128xf32>
      %cst_33 = arith.constant 1.000000e+00 : f32
      %41 = vector.broadcast %cst_33 : f32 to vector<2x128xf32>
      %42 = arith.addf %41, %40 : vector<2x128xf32>
      %43 = arith.divf %41, %42 : vector<2x128xf32>
      %44 = vector.extract_strided_slice %25 {offsets = [0, 256], sizes = [2, 128], strides = [1, 1]} : vector<2x512xf32> to vector<2x128xf32>
      %45 = math.tanh %44 : vector<2x128xf32>
      %46 = vector.extract_strided_slice %25 {offsets = [0, 384], sizes = [2, 128], strides = [1, 1]} : vector<2x512xf32> to vector<2x128xf32>
      %47 = arith.negf %46 : vector<2x128xf32>
      %48 = math.exp %47 : vector<2x128xf32>
      %cst_34 = arith.constant 1.000000e+00 : f32
      %49 = vector.broadcast %cst_34 : f32 to vector<2x128xf32>
      %50 = arith.addf %49, %48 : vector<2x128xf32>
      %51 = arith.divf %49, %50 : vector<2x128xf32>
      %52 = arith.mulf %43, %arg13 : vector<2x128xf32>
      %53 = arith.mulf %37, %45 : vector<2x128xf32>
      %54 = arith.addf %52, %53 : vector<2x128xf32>
      %55 = math.tanh %54 : vector<2x128xf32>
      %56 = arith.mulf %51, %55 : vector<2x128xf32>
      %57 = vector.extract_strided_slice %31 {offsets = [0, 0], sizes = [2, 128], strides = [1, 1]} : vector<2x512xf32> to vector<2x128xf32>
      %58 = arith.negf %57 : vector<2x128xf32>
      %59 = math.exp %58 : vector<2x128xf32>
      %cst_35 = arith.constant 1.000000e+00 : f32
      %60 = vector.broadcast %cst_35 : f32 to vector<2x128xf32>
      %61 = arith.addf %60, %59 : vector<2x128xf32>
      %62 = arith.divf %60, %61 : vector<2x128xf32>
      %63 = vector.extract_strided_slice %31 {offsets = [0, 128], sizes = [2, 128], strides = [1, 1]} : vector<2x512xf32> to vector<2x128xf32>
      %64 = arith.negf %63 : vector<2x128xf32>
      %65 = math.exp %64 : vector<2x128xf32>
      %cst_36 = arith.constant 1.000000e+00 : f32
      %66 = vector.broadcast %cst_36 : f32 to vector<2x128xf32>
      %67 = arith.addf %66, %65 : vector<2x128xf32>
      %68 = arith.divf %66, %67 : vector<2x128xf32>
      %69 = vector.extract_strided_slice %31 {offsets = [0, 256], sizes = [2, 128], strides = [1, 1]} : vector<2x512xf32> to vector<2x128xf32>
      %70 = math.tanh %69 : vector<2x128xf32>
      %71 = vector.extract_strided_slice %31 {offsets = [0, 384], sizes = [2, 128], strides = [1, 1]} : vector<2x512xf32> to vector<2x128xf32>
      %72 = arith.negf %71 : vector<2x128xf32>
      %73 = math.exp %72 : vector<2x128xf32>
      %cst_37 = arith.constant 1.000000e+00 : f32
      %74 = vector.broadcast %cst_37 : f32 to vector<2x128xf32>
      %75 = arith.addf %74, %73 : vector<2x128xf32>
      %76 = arith.divf %74, %75 : vector<2x128xf32>
      %77 = arith.mulf %68, %arg15 : vector<2x128xf32>
      %78 = arith.mulf %62, %70 : vector<2x128xf32>
      %79 = arith.addf %77, %78 : vector<2x128xf32>
      %80 = math.tanh %79 : vector<2x128xf32>
      %81 = arith.mulf %76, %80 : vector<2x128xf32>
      %82 = arith.index_cast %arg11 : i32 to index
      %c0_38 = arith.constant 0 : index
      %c0_39 = arith.constant 0 : index
      %83 = vector.load %arg9[%82, %c0_38, %c0_39] : memref<8x2x128xf32, #tpu.memory_space<vmem>>, vector<1x2x128xf32>
      %84 = vector.shape_cast %83 : vector<1x2x128xf32> to vector<2x128xf32>
      %85 = vector.shape_cast %56 : vector<2x128xf32> to vector<1x2x128xf32>
      tpu.vector_store %arg9[%82, %c0_38, %c0_39], %85 {strides = array<i32>} : memref<8x2x128xf32, #tpu.memory_space<vmem>>, vector<1x2x128xf32>,
      %86 = arith.index_cast %19 : i32 to index
      %c0_40 = arith.constant 0 : index
      %c0_41 = arith.constant 0 : index
      %87 = vector.load %arg10[%86, %c0_40, %c0_41] : memref<8x2x128xf32, #tpu.memory_space<vmem>>, vector<1x2x128xf32>
      %88 = vector.shape_cast %87 : vector<1x2x128xf32> to vector<2x128xf32>
      %89 = vector.shape_cast %81 : vector<2x128xf32> to vector<1x2x128xf32>
      tpu.vector_store %arg10[%86, %c0_40, %c0_41], %89 {strides = array<i32>} : memref<8x2x128xf32, #tpu.memory_space<vmem>>, vector<1x2x128xf32>,
      scf.yield %56, %54, %81, %79 : vector<2x128xf32>, vector<2x128xf32>, vector<2x128xf32>, vector<2x128xf32>
    }
    %c8_i32_12 = arith.constant 8 : i32
    %c0_13 = arith.constant 0 : index
    %c0_14 = arith.constant 0 : index
    %c0_15 = arith.constant 0 : index
    %15 = vector.load %arg9[%c0_13, %c0_14, %c0_15] : memref<8x2x128xf32, #tpu.memory_space<vmem>>, vector<8x2x128xf32>
    %c0_16 = arith.constant 0 : index
    %c0_17 = arith.constant 0 : index
    %c0_18 = arith.constant 0 : index
    %16 = vector.load %arg10[%c0_16, %c0_17, %c0_18] : memref<8x2x128xf32, #tpu.memory_space<vmem>>, vector<8x2x128xf32>
    %17 = tpu.concatenate %15, %16 in 2 : vector<8x2x128xf32>, vector<8x2x128xf32> -> vector<8x2x256xf32>
    %c0_19 = arith.constant 0 : index
    %c0_20 = arith.constant 0 : index
    %c0_21 = arith.constant 0 : index
    %18 = vector.load %arg6[%c0_19, %c0_20, %c0_21] : memref<8x2x256xf32, #tpu.memory_space<vmem>>, vector<8x2x256xf32>
    tpu.vector_store %arg6[%c0_19, %c0_20, %c0_21], %17 {strides = array<i32>} : memref<8x2x256xf32, #tpu.memory_space<vmem>>, vector<8x2x256xf32>,
    return
  }
  func.func @transform_0(%arg0: i32) -> (i32, i32) {
    %c0_i32 = arith.constant 0 : i32
    %c0_i32_0 = arith.constant 0 : i32
    %c0_i32_1 = arith.constant 0 : i32
    return %c0_i32, %c0_i32_0 : i32, i32
  }
  func.func @transform_1(%arg0: i32) -> (i32, i32) {
    %c0_i32 = arith.constant 0 : i32
    %c0_i32_0 = arith.constant 0 : i32
    %c0_i32_1 = arith.constant 0 : i32
    return %c0_i32, %c0_i32_0 : i32, i32
  }
  func.func @transform_2(%arg0: i32) -> (i32, i32) {
    %c0_i32 = arith.constant 0 : i32
    %c0_i32_0 = arith.constant 0 : i32
    %c0_i32_1 = arith.constant 0 : i32
    return %c0_i32, %c0_i32_0 : i32, i32
  }
  func.func @transform_3(%arg0: i32) -> (i32, i32) {
    %c0_i32 = arith.constant 0 : i32
    %c0_i32_0 = arith.constant 0 : i32
    %c0_i32_1 = arith.constant 0 : i32
    return %c0_i32, %c0_i32_0 : i32, i32
  }
  func.func @transform_4(%arg0: i32) -> (i32, i32) {
    %c0_i32 = arith.constant 0 : i32
    %c0_i32_0 = arith.constant 0 : i32
    %c0_i32_1 = arith.constant 0 : i32
    return %c0_i32, %c0_i32_0 : i32, i32
  }
  func.func @transform_5(%arg0: i32) -> (i32, i32, i32) {
    %c0_i32 = arith.constant 0 : i32
    %c0_i32_0 = arith.constant 0 : i32
    %c0_i32_1 = arith.constant 0 : i32
    %c0_i32_2 = arith.constant 0 : i32
    return %c0_i32, %c0_i32_0, %c0_i32_1 : i32, i32, i32
  }
}

module attributes {stable_mosaic.version = 11 : i64} {
  func.func @_fc_crf_kernel(%arg0: i32, %arg1: memref<8x2x256xf32, #tpu.memory_space<vmem>>, %arg2: memref<16x256xf32, #tpu.memory_space<vmem>>, %arg3: memref<256x11xf32, #tpu.memory_space<vmem>>, %arg4: memref<1x11xf32, #tpu.memory_space<vmem>>, %arg5: memref<1x11xf32, #tpu.memory_space<vmem>>, %arg6: memref<16x11xf32, #tpu.memory_space<vmem>>, %arg7: memref<14x11xf32, #tpu.memory_space<vmem>>, %arg8: memref<14x11xf32, #tpu.memory_space<vmem>>, %arg9: memref<2x11xf32, #tpu.memory_space<vmem>>, %arg10: memref<8x2x11xf32, #tpu.memory_space<vmem>>, %arg11: memref<1x11xf32, #tpu.memory_space<vmem>>, %arg12: memref<1x11xf32, #tpu.memory_space<vmem>>, %arg13: memref<11x11xf32, #tpu.memory_space<vmem>>, %arg14: memref<1x1xf32, #tpu.memory_space<vmem>>) attributes {dimension_semantics = [#tpu.dimension_semantics<arbitrary>], iteration_bounds = array<i64: 1>, scalar_prefetch = 0 : i64, scratch_operands = 0 : i64, tpu.core_type = #tpu.core_type<tc>, window_params = [{pipeline_mode = #tpu.pipeline_mode<synchronous>, transform_indices = @transform_0, window_bounds = array<i64: 8, 2, 256>}, {pipeline_mode = #tpu.pipeline_mode<synchronous>, transform_indices = @transform_1, window_bounds = array<i64: 16, 256>}, {pipeline_mode = #tpu.pipeline_mode<synchronous>, transform_indices = @transform_2, window_bounds = array<i64: 256, 11>}, {pipeline_mode = #tpu.pipeline_mode<synchronous>, transform_indices = @transform_3, window_bounds = array<i64: 1, 11>}, {pipeline_mode = #tpu.pipeline_mode<synchronous>, transform_indices = @transform_4, window_bounds = array<i64: 1, 11>}, {pipeline_mode = #tpu.pipeline_mode<synchronous>, transform_indices = @transform_5, window_bounds = array<i64: 16, 11>}, {pipeline_mode = #tpu.pipeline_mode<synchronous>, transform_indices = @transform_6, window_bounds = array<i64: 14, 11>}, {pipeline_mode = #tpu.pipeline_mode<synchronous>, transform_indices = @transform_7, window_bounds = array<i64: 14, 11>}, {pipeline_mode = #tpu.pipeline_mode<synchronous>, transform_indices = @transform_8, window_bounds = array<i64: 2, 11>}, {pipeline_mode = #tpu.pipeline_mode<synchronous>, transform_indices = @transform_9, window_bounds = array<i64: 8, 2, 11>}, {pipeline_mode = #tpu.pipeline_mode<synchronous>, transform_indices = @transform_10, window_bounds = array<i64: 1, 11>}, {pipeline_mode = #tpu.pipeline_mode<synchronous>, transform_indices = @transform_11, window_bounds = array<i64: 1, 11>}, {pipeline_mode = #tpu.pipeline_mode<synchronous>, transform_indices = @transform_12, window_bounds = array<i64: 11, 11>}, {pipeline_mode = #tpu.pipeline_mode<synchronous>, transform_indices = @transform_13, window_bounds = array<i64: 1, 1>}]} {
    %c0 = arith.constant 0 : index
    %c0_0 = arith.constant 0 : index
    %0 = vector.load %arg13[%c0, %c0_0] : memref<11x11xf32, #tpu.memory_space<vmem>>, vector<11x11xf32>
    %c0_1 = arith.constant 0 : index
    %c0_2 = arith.constant 0 : index
    %1 = vector.load %arg11[%c0_1, %c0_2] : memref<1x11xf32, #tpu.memory_space<vmem>>, vector<1x11xf32>
    %c0_3 = arith.constant 0 : index
    %c0_4 = arith.constant 0 : index
    %2 = vector.load %arg12[%c0_3, %c0_4] : memref<1x11xf32, #tpu.memory_space<vmem>>, vector<1x11xf32>
    %c0_5 = arith.constant 0 : index
    %c0_6 = arith.constant 0 : index
    %3 = vector.load %arg2[%c0_5, %c0_6] : memref<16x256xf32, #tpu.memory_space<vmem>>, vector<16x256xf32>
    %c0_7 = arith.constant 0 : index
    %c0_8 = arith.constant 0 : index
    %4 = vector.load %arg3[%c0_7, %c0_8] : memref<256x11xf32, #tpu.memory_space<vmem>>, vector<256x11xf32>
    %cst = arith.constant dense<0.000000e+00> : vector<16x11xf32>
    %5 = tpu.matmul %3, %4, %cst {dimension_numbers = #tpu.dot_dimension_numbers<[1], [0], [0], [1], [0, 0, 1, 1], [], []>} : vector<16x256xf32>, vector<256x11xf32>, vector<16x11xf32> -> vector<16x11xf32>
    %c0_9 = arith.constant 0 : index
    %c0_10 = arith.constant 0 : index
    %6 = vector.load %arg4[%c0_9, %c0_10] : memref<1x11xf32, #tpu.memory_space<vmem>>, vector<1x11xf32>
    %7 = vector.broadcast %6 : vector<1x11xf32> to vector<16x11xf32>
    %8 = arith.addf %5, %7 : vector<16x11xf32>
    %c0_11 = arith.constant 0 : index
    %c0_12 = arith.constant 0 : index
    %9 = vector.load %arg5[%c0_11, %c0_12] : memref<1x11xf32, #tpu.memory_space<vmem>>, vector<1x11xf32>
    %10 = vector.broadcast %9 : vector<1x11xf32> to vector<16x11xf32>
    %11 = arith.mulf %8, %10 : vector<16x11xf32>
    %c0_13 = arith.constant 0 : index
    %c0_14 = arith.constant 0 : index
    %12 = vector.load %arg6[%c0_13, %c0_14] : memref<16x11xf32, #tpu.memory_space<vmem>>, vector<16x11xf32>
    %13 = arith.mulf %11, %12 : vector<16x11xf32>
    %14 = vector.shape_cast %13 : vector<16x11xf32> to vector<1x16x11xf32>
    %cst_15 = arith.constant dense<0.000000e+00> : vector<1xf32>
    %15 = vector.multi_reduction <add>, %14, %cst_15 [1, 2] : vector<1x16x11xf32> to vector<1xf32>
    %16 = vector.shape_cast %15 : vector<1xf32> to vector<1x1x1xf32>
    %17 = vector.extract %16[0, 0, 0] : f32 from vector<1x1x1xf32>
    %18 = vector.broadcast %17 : f32 to vector<1x1xf32>
    %c0_16 = arith.constant 0 : index
    %c0_17 = arith.constant 0 : index
    %19 = vector.load %arg7[%c0_16, %c0_17] : memref<14x11xf32, #tpu.memory_space<vmem>>, vector<14x11xf32>
    %cst_18 = arith.constant dense<0.000000e+00> : vector<14x11xf32>
    %20 = tpu.matmul %19, %0, %cst_18 {dimension_numbers = #tpu.dot_dimension_numbers<[1], [0], [0], [1], [0, 0, 1, 1], [], []>} : vector<14x11xf32>, vector<11x11xf32>, vector<14x11xf32> -> vector<14x11xf32>
    %c0_19 = arith.constant 0 : index
    %c0_20 = arith.constant 0 : index
    %21 = vector.load %arg8[%c0_19, %c0_20] : memref<14x11xf32, #tpu.memory_space<vmem>>, vector<14x11xf32>
    %22 = arith.mulf %20, %21 : vector<14x11xf32>
    %23 = vector.shape_cast %22 : vector<14x11xf32> to vector<1x14x11xf32>
    %cst_21 = arith.constant dense<0.000000e+00> : vector<1xf32>
    %24 = vector.multi_reduction <add>, %23, %cst_21 [1, 2] : vector<1x14x11xf32> to vector<1xf32>
    %25 = vector.shape_cast %24 : vector<1xf32> to vector<1x1x1xf32>
    %26 = vector.extract %25[0, 0, 0] : f32 from vector<1x1x1xf32>
    %27 = vector.broadcast %26 : f32 to vector<1x1xf32>
    %c0_22 = arith.constant 0 : index
    %c0_23 = arith.constant 0 : index
    %28 = vector.load %arg6[%c0_22, %c0_23] : memref<16x11xf32, #tpu.memory_space<vmem>>, vector<2x11xf32>
    %29 = vector.broadcast %1 : vector<1x11xf32> to vector<2x11xf32>
    %30 = arith.mulf %29, %28 : vector<2x11xf32>
    %31 = vector.shape_cast %30 : vector<2x11xf32> to vector<1x2x11xf32>
    %cst_24 = arith.constant dense<0.000000e+00> : vector<1xf32>
    %32 = vector.multi_reduction <add>, %31, %cst_24 [1, 2] : vector<1x2x11xf32> to vector<1xf32>
    %33 = vector.shape_cast %32 : vector<1xf32> to vector<1x1x1xf32>
    %34 = vector.extract %33[0, 0, 0] : f32 from vector<1x1x1xf32>
    %35 = vector.broadcast %34 : f32 to vector<1x1xf32>
    %c0_25 = arith.constant 0 : index
    %c0_26 = arith.constant 0 : index
    %36 = vector.load %arg9[%c0_25, %c0_26] : memref<2x11xf32, #tpu.memory_space<vmem>>, vector<2x11xf32>
    %37 = vector.broadcast %2 : vector<1x11xf32> to vector<2x11xf32>
    %38 = arith.mulf %37, %36 : vector<2x11xf32>
    %39 = vector.shape_cast %38 : vector<2x11xf32> to vector<1x2x11xf32>
    %cst_27 = arith.constant dense<0.000000e+00> : vector<1xf32>
    %40 = vector.multi_reduction <add>, %39, %cst_27 [1, 2] : vector<1x2x11xf32> to vector<1xf32>
    %41 = vector.shape_cast %40 : vector<1xf32> to vector<1x1x1xf32>
    %42 = vector.extract %41[0, 0, 0] : f32 from vector<1x1x1xf32>
    %43 = vector.broadcast %42 : f32 to vector<1x1xf32>
    %44 = arith.addf %18, %27 : vector<1x1xf32>
    %45 = arith.addf %44, %35 : vector<1x1xf32>
    %46 = arith.addf %45, %43 : vector<1x1xf32>
    %c0_28 = arith.constant 0 : index
    %c0_29 = arith.constant 0 : index
    %c0_30 = arith.constant 0 : index
    %47 = vector.load %arg1[%c0_28, %c0_29, %c0_30] : memref<8x2x256xf32, #tpu.memory_space<vmem>>, vector<1x2x256xf32>
    %48 = vector.shape_cast %47 : vector<1x2x256xf32> to vector<2x256xf32>
    %c0_31 = arith.constant 0 : index
    %c0_32 = arith.constant 0 : index
    %49 = vector.load %arg3[%c0_31, %c0_32] : memref<256x11xf32, #tpu.memory_space<vmem>>, vector<256x11xf32>
    %cst_33 = arith.constant dense<0.000000e+00> : vector<2x11xf32>
    %50 = tpu.matmul %48, %49, %cst_33 {dimension_numbers = #tpu.dot_dimension_numbers<[1], [0], [0], [1], [0, 0, 1, 1], [], []>} : vector<2x256xf32>, vector<256x11xf32>, vector<2x11xf32> -> vector<2x11xf32>
    %c0_34 = arith.constant 0 : index
    %c0_35 = arith.constant 0 : index
    %51 = vector.load %arg4[%c0_34, %c0_35] : memref<1x11xf32, #tpu.memory_space<vmem>>, vector<1x11xf32>
    %52 = vector.broadcast %51 : vector<1x11xf32> to vector<2x11xf32>
    %53 = arith.addf %50, %52 : vector<2x11xf32>
    %c0_36 = arith.constant 0 : index
    %c0_37 = arith.constant 0 : index
    %54 = vector.load %arg5[%c0_36, %c0_37] : memref<1x11xf32, #tpu.memory_space<vmem>>, vector<1x11xf32>
    %55 = vector.broadcast %54 : vector<1x11xf32> to vector<2x11xf32>
    %56 = arith.mulf %53, %55 : vector<2x11xf32>
    %57 = vector.broadcast %1 : vector<1x11xf32> to vector<2x11xf32>
    %58 = arith.addf %57, %56 : vector<2x11xf32>
    %c1_i32 = arith.constant 1 : i32
    %c7_i32 = arith.constant 7 : i32
    %59 = arith.addi %c1_i32, %c7_i32 : i32
    %c1_i32_38 = arith.constant 1 : i32
    %60 = scf.for %arg15 = %c1_i32 to %59 step %c1_i32_38 iter_args(%arg16 = %58) -> (vector<2x11xf32>)  : i32 {
      %79 = arith.index_cast %arg15 : i32 to index
      %c0_45 = arith.constant 0 : index
      %c0_46 = arith.constant 0 : index
      %80 = vector.load %arg1[%79, %c0_45, %c0_46] : memref<8x2x256xf32, #tpu.memory_space<vmem>>, vector<1x2x256xf32>
      %81 = vector.shape_cast %80 : vector<1x2x256xf32> to vector<2x256xf32>
      %c0_47 = arith.constant 0 : index
      %c0_48 = arith.constant 0 : index
      %82 = vector.load %arg3[%c0_47, %c0_48] : memref<256x11xf32, #tpu.memory_space<vmem>>, vector<256x11xf32>
      %cst_49 = arith.constant dense<0.000000e+00> : vector<2x11xf32>
      %83 = tpu.matmul %81, %82, %cst_49 {dimension_numbers = #tpu.dot_dimension_numbers<[1], [0], [0], [1], [0, 0, 1, 1], [], []>} : vector<2x256xf32>, vector<256x11xf32>, vector<2x11xf32> -> vector<2x11xf32>
      %c0_50 = arith.constant 0 : index
      %c0_51 = arith.constant 0 : index
      %84 = vector.load %arg4[%c0_50, %c0_51] : memref<1x11xf32, #tpu.memory_space<vmem>>, vector<1x11xf32>
      %85 = vector.broadcast %84 : vector<1x11xf32> to vector<2x11xf32>
      %86 = arith.addf %83, %85 : vector<2x11xf32>
      %c0_52 = arith.constant 0 : index
      %c0_53 = arith.constant 0 : index
      %87 = vector.load %arg5[%c0_52, %c0_53] : memref<1x11xf32, #tpu.memory_space<vmem>>, vector<1x11xf32>
      %88 = vector.broadcast %87 : vector<1x11xf32> to vector<2x11xf32>
      %89 = arith.mulf %86, %88 : vector<2x11xf32>
      %90 = arith.index_cast %arg15 : i32 to index
      %c0_54 = arith.constant 0 : index
      %c0_55 = arith.constant 0 : index
      %91 = vector.load %arg10[%90, %c0_54, %c0_55] : memref<8x2x11xf32, #tpu.memory_space<vmem>>, vector<1x2x11xf32>
      %92 = vector.shape_cast %91 : vector<1x2x11xf32> to vector<2x11xf32>
      %93 = vector.shape_cast %arg16 : vector<2x11xf32> to vector<2x11x1xf32>
      %94 = vector.shape_cast %0 : vector<11x11xf32> to vector<1x11x11xf32>
      %95 = vector.broadcast %93 : vector<2x11x1xf32> to vector<2x11x11xf32>
      %96 = vector.broadcast %94 : vector<1x11x11xf32> to vector<2x11x11xf32>
      %97 = arith.addf %95, %96 : vector<2x11x11xf32>
      %98 = vector.shape_cast %89 : vector<2x11xf32> to vector<2x1x11xf32>
      %99 = vector.broadcast %98 : vector<2x1x11xf32> to vector<2x11x11xf32>
      %100 = arith.addf %97, %99 : vector<2x11x11xf32>
      %cst_56 = arith.constant dense<0xFF800000> : vector<2x11xf32>
      %101 = vector.multi_reduction <maximumf>, %100, %cst_56 [1] : vector<2x11x11xf32> to vector<2x11xf32>
      %102 = vector.shape_cast %101 : vector<2x11xf32> to vector<2x1x11xf32>
      %103 = vector.broadcast %102 : vector<2x1x11xf32> to vector<2x11x11xf32>
      %104 = arith.subf %100, %103 : vector<2x11x11xf32>
      %105 = math.exp %104 : vector<2x11x11xf32>
      %cst_57 = arith.constant dense<0.000000e+00> : vector<2x11xf32>
      %106 = vector.multi_reduction <add>, %105, %cst_57 [1] : vector<2x11x11xf32> to vector<2x11xf32>
      %107 = vector.shape_cast %106 : vector<2x11xf32> to vector<2x1x11xf32>
      %108 = math.log %107 : vector<2x1x11xf32>
      %109 = arith.addf %108, %102 : vector<2x1x11xf32>
      %cst_58 = arith.constant 0.000000e+00 : f32
      %110 = vector.broadcast %cst_58 : f32 to vector<2x11xf32>
      %111 = arith.cmpf ogt, %92, %110 : vector<2x11xf32>
      %112 = vector.shape_cast %109 : vector<2x1x11xf32> to vector<2x11xf32>
      %113 = arith.select %111, %112, %arg16 : vector<2x11xi1>, vector<2x11xf32>
      scf.yield %113 : vector<2x11xf32>
    }
    %c7_i32_39 = arith.constant 7 : i32
    %61 = vector.broadcast %2 : vector<1x11xf32> to vector<2x11xf32>
    %62 = arith.addf %60, %61 : vector<2x11xf32>
    %cst_40 = arith.constant dense<0xFF800000> : vector<2xf32>
    %63 = vector.multi_reduction <maximumf>, %62, %cst_40 [1] : vector<2x11xf32> to vector<2xf32>
    %64 = vector.shape_cast %63 : vector<2xf32> to vector<2x1xf32>
    %65 = vector.broadcast %64 : vector<2x1xf32> to vector<2x11xf32>
    %66 = arith.subf %62, %65 : vector<2x11xf32>
    %67 = math.exp %66 : vector<2x11xf32>
    %cst_41 = arith.constant dense<0.000000e+00> : vector<2xf32>
    %68 = vector.multi_reduction <add>, %67, %cst_41 [1] : vector<2x11xf32> to vector<2xf32>
    %69 = vector.shape_cast %68 : vector<2xf32> to vector<2x1xf32>
    %70 = math.log %69 : vector<2x1xf32>
    %71 = arith.addf %70, %64 : vector<2x1xf32>
    %72 = vector.shape_cast %71 : vector<2x1xf32> to vector<1x2x1xf32>
    %cst_42 = arith.constant dense<0.000000e+00> : vector<1xf32>
    %73 = vector.multi_reduction <add>, %72, %cst_42 [1, 2] : vector<1x2x1xf32> to vector<1xf32>
    %74 = vector.shape_cast %73 : vector<1xf32> to vector<1x1x1xf32>
    %75 = vector.extract %74[0, 0, 0] : f32 from vector<1x1x1xf32>
    %76 = vector.broadcast %75 : f32 to vector<1x1xf32>
    %77 = arith.subf %76, %46 : vector<1x1xf32>
    %c0_43 = arith.constant 0 : index
    %c0_44 = arith.constant 0 : index
    %78 = vector.load %arg14[%c0_43, %c0_44] : memref<1x1xf32, #tpu.memory_space<vmem>>, vector<1x1xf32>
    tpu.vector_store %arg14[%c0_43, %c0_44], %77 {strides = array<i32>} : memref<1x1xf32, #tpu.memory_space<vmem>>, vector<1x1xf32>,
    return
  }
  func.func @transform_0(%arg0: i32) -> (i32, i32, i32) {
    %c0_i32 = arith.constant 0 : i32
    %c0_i32_0 = arith.constant 0 : i32
    %c0_i32_1 = arith.constant 0 : i32
    %c0_i32_2 = arith.constant 0 : i32
    return %c0_i32, %c0_i32_0, %c0_i32_1 : i32, i32, i32
  }
  func.func @transform_1(%arg0: i32) -> (i32, i32) {
    %c0_i32 = arith.constant 0 : i32
    %c0_i32_0 = arith.constant 0 : i32
    %c0_i32_1 = arith.constant 0 : i32
    return %c0_i32, %c0_i32_0 : i32, i32
  }
  func.func @transform_2(%arg0: i32) -> (i32, i32) {
    %c0_i32 = arith.constant 0 : i32
    %c0_i32_0 = arith.constant 0 : i32
    %c0_i32_1 = arith.constant 0 : i32
    return %c0_i32, %c0_i32_0 : i32, i32
  }
  func.func @transform_3(%arg0: i32) -> (i32, i32) {
    %c0_i32 = arith.constant 0 : i32
    %c0_i32_0 = arith.constant 0 : i32
    %c0_i32_1 = arith.constant 0 : i32
    return %c0_i32, %c0_i32_0 : i32, i32
  }
  func.func @transform_4(%arg0: i32) -> (i32, i32) {
    %c0_i32 = arith.constant 0 : i32
    %c0_i32_0 = arith.constant 0 : i32
    %c0_i32_1 = arith.constant 0 : i32
    return %c0_i32, %c0_i32_0 : i32, i32
  }
  func.func @transform_5(%arg0: i32) -> (i32, i32) {
    %c0_i32 = arith.constant 0 : i32
    %c0_i32_0 = arith.constant 0 : i32
    %c0_i32_1 = arith.constant 0 : i32
    return %c0_i32, %c0_i32_0 : i32, i32
  }
  func.func @transform_6(%arg0: i32) -> (i32, i32) {
    %c0_i32 = arith.constant 0 : i32
    %c0_i32_0 = arith.constant 0 : i32
    %c0_i32_1 = arith.constant 0 : i32
    return %c0_i32, %c0_i32_0 : i32, i32
  }
  func.func @transform_7(%arg0: i32) -> (i32, i32) {
    %c0_i32 = arith.constant 0 : i32
    %c0_i32_0 = arith.constant 0 : i32
    %c0_i32_1 = arith.constant 0 : i32
    return %c0_i32, %c0_i32_0 : i32, i32
  }
  func.func @transform_8(%arg0: i32) -> (i32, i32) {
    %c0_i32 = arith.constant 0 : i32
    %c0_i32_0 = arith.constant 0 : i32
    %c0_i32_1 = arith.constant 0 : i32
    return %c0_i32, %c0_i32_0 : i32, i32
  }
  func.func @transform_9(%arg0: i32) -> (i32, i32, i32) {
    %c0_i32 = arith.constant 0 : i32
    %c0_i32_0 = arith.constant 0 : i32
    %c0_i32_1 = arith.constant 0 : i32
    %c0_i32_2 = arith.constant 0 : i32
    return %c0_i32, %c0_i32_0, %c0_i32_1 : i32, i32, i32
  }
  func.func @transform_10(%arg0: i32) -> (i32, i32) {
    %c0_i32 = arith.constant 0 : i32
    %c0_i32_0 = arith.constant 0 : i32
    %c0_i32_1 = arith.constant 0 : i32
    return %c0_i32, %c0_i32_0 : i32, i32
  }
  func.func @transform_11(%arg0: i32) -> (i32, i32) {
    %c0_i32 = arith.constant 0 : i32
    %c0_i32_0 = arith.constant 0 : i32
    %c0_i32_1 = arith.constant 0 : i32
    return %c0_i32, %c0_i32_0 : i32, i32
  }
  func.func @transform_12(%arg0: i32) -> (i32, i32) {
    %c0_i32 = arith.constant 0 : i32
    %c0_i32_0 = arith.constant 0 : i32
    %c0_i32_1 = arith.constant 0 : i32
    return %c0_i32, %c0_i32_0 : i32, i32
  }
  func.func @transform_13(%arg0: i32) -> (i32, i32) {
    %c0_i32 = arith.constant 0 : i32
    %c0_i32_0 = arith.constant 0 : i32
    %c0_i32_1 = arith.constant 0 : i32
    return %c0_i32, %c0_i32_0 : i32, i32
  }
}

</mosaic_0001>

<bundles_post_ra>
// kernel: bilstm_crf_forward.5
= control target key start
LH: loop header
LB: loop body
LE: loop exit
PB: predicated region body
PF: predicated region fallthrough
CT: control target
= control target key end

     0   :  { %18 = vsyncpa [#allocation3], 0  ;;  %vm202_vm0 = vcmask 1042432   ;;  %vm180_vm1 = vcmask 89088   ;;  %vm1065_vm2 = vmmov 1   ;;  %vm307_vm4 = vcmask 82944   ;;  %s1475_s0 = inlined_call_operand.vmem [shape: f32[8,2,256], index: 0, kind: input, shape index: {}]   ;;  %s1476_s1 = inlined_call_operand.vmem [shape: f32[16,256], index: 1, kind: input, shape index: {}]   ;;  %s1477_s2 = inlined_call_operand.vmem [shape: f32[256,11], index: 2, kind: input, shape index: {}]   ;;  %s1478_s3 = inlined_call_operand.vmem [shape: f32[1,11], index: 3, kind: input, shape index: {}]   ;;  %s1479_s4 = inlined_call_operand.vmem [shape: f32[1,11], index: 4, kind: input, shape index: {}]   ;;  %s1480_s5 = inlined_call_operand.vmem [shape: f32[16,11], index: 5, kind: input, shape index: {}]   ;;  %s1481_s6 = inlined_call_operand.vmem [shape: f32[14,11], index: 6, kind: input, shape index: {}]   ;;  %s1482_s7 = inlined_call_operand.vmem [shape: f32[14,11], index: 7, kind: input, shape index: {}]   ;;  %s1483_s8 = inlined_call_operand.vmem [shape: f32[2,11], index: 8, kind: input, shape index: {}]   ;;  %s1484_s9 = inlined_call_operand.vmem [shape: f32[8,2,11], index: 9, kind: input, shape index: {}]   ;;  %s1485_s10 = inlined_call_operand.vmem [shape: f32[1,11], index: 10, kind: input, shape index: {}]   ;;  %s1486_s11 = inlined_call_operand.vmem [shape: f32[1,11], index: 11, kind: input, shape index: {}]   ;;  %s1487_s12 = inlined_call_operand.vmem [shape: f32[11,11], index: 12, kind: input, shape index: {}]   ;;  %s1488_s13 = inlined_call_operand.hbm [shape: f32[1,1], index: 13, kind: output, shape index: {}]  }
   0x1   :  { %v69_v0 = vld [vmem:[%s1477_s2 + $0x80] sm:$0xff]  ;;  %v70_v1 = vld [vmem:[%s1477_s2 + $0x88] sm:$0xff]  ;;  %v71_v5 = vld [vmem:[%s1477_s2 + $0x90] sm:$0xff]  ;;  %vm286_vm5 = vcmask 87040  }
   0x2   :  { %v878_v2 = vpack.c.bf16 %v70_v1, %v69_v0  ;;  %v53_v3 = vld [vmem:[%s1477_s2] sm:$0xff]  ;;  %v54_v4 = vld [vmem:[%s1477_s2 + $0x8] sm:$0xff]  ;;  %v72_v7 = vld [vmem:[%s1477_s2 + $0x98] sm:$0xff] }
   0x3   :  { %v880_v6 = vpack.c.bf16 %v54_v4, %v53_v3  ;;  %v55_v8 = vld [vmem:[%s1477_s2 + $0x10] sm:$0xff]  ;;  %v56_v9 = vld [vmem:[%s1477_s2 + $0x18] sm:$0xff]  ;;  %v882_v10 = vpack.c.bf16 %v72_v7, %v71_v5  ;;  %v73_v11 = vld [vmem:[%s1477_s2 + $0xa0] sm:$0xff] }
   0x4   :  { %879 = vmatprep.subr.bf16.mxu0 %v878_v2  ;;  %v74_v12 = vld [vmem:[%s1477_s2 + $0xa8] sm:$0xff]  ;;  %v884_v13 = vpack.c.bf16 %v56_v9, %v55_v8  ;;  %v57_v15 = vld [vmem:[%s1477_s2 + $0x20] sm:$0xff]  ;;  %v75_v17 = vld [vmem:[%s1477_s2 + $0xb0] sm:$0xff] }
   0x5   :  { %881 = vmatpush3.bf16.msra.mxu0 %v880_v6  ;;  %v886_v14 = vpack.c.bf16 %v74_v12, %v73_v11  ;;  %v58_v16 = vld [vmem:[%s1477_s2 + $0x28] sm:$0xff]  ;;  %v76_v18 = vld [vmem:[%s1477_s2 + $0xb8] sm:$0xff]  ;;  %v59_v21 = vld [vmem:[%s1477_s2 + $0x30] sm:$0xff] }
   0x6   :  { %883 = vmatprep.subr.bf16.mxu0 %v882_v10  ;;  %v888_v19 = vpack.c.bf16 %v58_v16, %v57_v15  ;;  %v890_v20 = vpack.c.bf16 %v76_v18, %v75_v17  ;;  %v60_v22 = vld [vmem:[%s1477_s2 + $0x38] sm:$0xff]  ;;  %v77_v23 = vld [vmem:[%s1477_s2 + $0xc0] sm:$0xff]  ;;  %v78_v24 = vld [vmem:[%s1477_s2 + $0xc8] sm:$0xff] }
   0x7   :  { %v50_v25 = vld [vmem:[%s1476_s1 + $0x8] sm:$0xff]  ;;  %v892_v26 = vpack.c.bf16 %v60_v22, %v59_v21  ;;  %v61_v27 = vld [vmem:[%s1477_s2 + $0x40] sm:$0xff]  ;;  %v894_v30 = vpack.c.bf16 %v78_v24, %v77_v23  ;;  %vm911_vm3 = vmpackc.low %vm202_vm0, %vm1065_vm2 }
   0x8   :  { %156 = vmatprep.mubr.f32.mxu0 %v50_v25  ;;  %v1201_v28 = vld [vmem:[%s1487_s12] sm:$0xff]  ;;  %v1206_v29 = vld [vmem:[%s1487_s12 + $0x8] sm:$0x7]  ;;  %v79_v34 = vld [vmem:[%s1477_s2 + $0xd0] sm:$0xff] }
   0x9   :  { %885 = vmatpush3.bf16.msra.mxu0 %v884_v13  ;;  %v62_v31 = vld [vmem:[%s1477_s2 + $0x48] sm:$0xff]  ;;  %v910_v32 = vpack.c.bf16 %v1206_v29, %v1201_v28  ;;  %v194_v33 = vld [vmem:[%s1481_s6] sm:$0xff]  ;;  %v80_v35 = vld [vmem:[%s1477_s2 + $0xd8] sm:$0xff] }
   0xa   :  { %887 = vmatprep.subr.bf16.mxu0 %v886_v14  ;;  %875 = vmatprep.mubr.msk.f32.mxu1 %vm180_vm1, %v194_v33  ;;  %v896_v36 = vpack.c.bf16 %v62_v31, %v61_v27  ;;  %v195_v37 = vld [vmem:[%s1481_s6 + $0x8] sm:$0x3f]  ;;  %v898_v38 = vpack.c.bf16 %v80_v35, %v79_v34  ;;  %v63_v39 = vld [vmem:[%s1477_s2 + $0x50] sm:$0xff]  ;;  %v64_v40 = vld [vmem:[%s1477_s2 + $0x58] sm:$0xff]  ;;  %s1311_s6 = smov 1  }
   0xb   :  { %912 = vmatprep.subr.msk.bf16.mxu1 %vm911_vm3, %v910_v32  ;;  %v81_v41 = vld [vmem:[%s1477_s2 + $0xe0] sm:$0xff]  ;;  %v82_v42 = vld [vmem:[%s1477_s2 + $0xe8] sm:$0xff]  ;;  %v900_v43 = vpack.c.bf16 %v64_v40, %v63_v39  ;;  %v83_v47 = vld [vmem:[%s1477_s2 + $0xf0] sm:$0xff] }
   0xc   :  { %915 = vmatpush3.bf16.msk.msra.mxu1 %vm911_vm3, %v910_v32  ;;  %v902_v44 = vpack.c.bf16 %v82_v42, %v81_v41  ;;  %v65_v45 = vld [vmem:[%s1477_s2 + $0x60] sm:$0xff]  ;;  %v66_v46 = vld [vmem:[%s1477_s2 + $0x68] sm:$0xff]  ;;  %v84_v48 = vld [vmem:[%s1477_s2 + $0xf8] sm:$0xff] }
   0xd   :  { %889 = vmatpush3.bf16.msra.mxu0 %v888_v19  ;;  %917 = vmatprep.subr.bf16.mxu1 %v878_v2  ;;  %v904_v49 = vpack.c.bf16 %v66_v46, %v65_v45  ;;  %v906_v50 = vpack.c.bf16 %v84_v48, %v83_v47  ;;  %v67_v51 = vld [vmem:[%s1477_s2 + $0x70] sm:$0xff]  ;;  %v68_v52 = vld [vmem:[%s1477_s2 + $0x78] sm:$0xff]  ;;  %v49_v54 = vld [vmem:[%s1476_s1] sm:$0xff] }
   0xe   :  { %891 = vmatprep.subr.bf16.mxu0 %v890_v20  ;;  %v908_v53 = vpack.c.bf16 %v68_v52, %v67_v51  ;;  %v52_v55 = vld [vmem:[%s1476_s1 + $0x18] sm:$0xff]  ;;  %v51_v56 = vld [vmem:[%s1476_s1 + $0x10] sm:$0xff]  ;;  %v752_v57 = vld.sshfl [vmem:[%s1475_s0] sm:$0x33 pattern:$0x76325410] }
   0xf   :  { %876 = vmatmul.mubr.msk.f32.vlgmr.msra.gmra.mrb[0].mxu1 %vm180_vm1, %v195_v37  ;;  %v350_v58 = vcombine.high %v752_v57, %v752_v57  ;;  %v750_v59 = vld [vmem:[%s1485_s10] ss:$0 sm:$0xff]  ;;  %v282_v3 = vld [vmem:[%s1482_s7 + $0x8] sm:$0x3f] }
  0x10   :  { %919 = vmatpush3.bf16.msra.mxu1 %v880_v6  ;;  %v299_v60 = vld [vmem:[%s1480_s5] sm:$0x3]  ;;  %v177_v24 = vld [vmem:[%s1480_s5 + $0x8] sm:$0xff] }
  0x11   :  { %893 = vmatpush3.bf16.msra.mxu0 %v892_v26  ;;  %921 = vmatprep.subr.bf16.mxu1 %v882_v10  ;;  %v306_v61 = vmul.f32 %v750_v59, %v299_v60  ;;  %v1279_v63 = vld [vmem:[%s1486_s11] ss:$0 sm:$0xff] }
  0x12   :  { %895 = vmatprep.subr.bf16.mxu0 %v894_v30  ;;  %417 = vmatprep.mubr.f32.mxu1 %v350_v58  ;;  %v319_v0 = vld [vmem:[%s1483_s8] sm:$0x3] }
  0x13   :  { %v308_v62 = vsel %vm307_vm4, %v306_v61, 0.0  ;;  %v326_v1 = vmul.f32 %v1279_v63, %v319_v0  ;;  %v281_v4 = vld [vmem:[%s1482_s7] sm:$0xff] }
  0x14   :  { %923 = vmatpush3.bf16.msra.mxu1 %v884_v13  ;;  %309 = vadd.xlane.f32.xlu1 %v308_v62  ;;  %v745_v13 = vld [vmem:[%s1478_s3] ss:$0 sm:$0xff] }
  0x15   :  { %897 = vmatpush3.bf16.msra.mxu0 %v896_v36  ;;  %925 = vmatprep.subr.bf16.mxu1 %v886_v14  ;;  %v327_v2 = vsel %vm307_vm4, %v326_v1, 0.0  ;;  %v746_v16 = vld [vmem:[%s1479_s4] ss:$0 sm:$0xff] }
  0x16   :  { %899 = vmatprep.subr.bf16.mxu0 %v898_v38  ;;  %v176_v22 = vld [vmem:[%s1480_s5] sm:$0xff] }
  0x18   :  { %927 = vmatpush3.bf16.msra.mxu1 %v888_v19  ;;  %328 = vadd.xlane.f32.xlu1 %v327_v2 }
  0x19   :  { %901 = vmatpush3.bf16.msra.mxu0 %v900_v43  ;;  %929 = vmatprep.subr.bf16.mxu1 %v890_v20 }
  0x1a   :  { %903 = vmatprep.subr.bf16.mxu0 %v902_v44 }
  0x1c   :  { %931 = vmatpush3.bf16.msra.mxu1 %v892_v26 }
  0x1d   :  { %905 = vmatpush3.bf16.msra.mxu0 %v904_v49  ;;  %933 = vmatprep.subr.bf16.mxu1 %v894_v30 }
  0x1e   :  { %907 = vmatprep.subr.bf16.mxu0 %v906_v50 }
  0x20   :  { %935 = vmatpush3.bf16.msra.mxu1 %v896_v36 }
  0x21   :  { %909 = vmatpush3.bf16.msra.mxu0 %v908_v53  ;;  %937 = vmatprep.subr.bf16.mxu1 %v898_v38 }
  0x24   :  { %157 = vmatmul.mubr.f32.vlgmr.msra.gmra.mrb[0].mxu0 %v49_v54  ;;  %939 = vmatpush3.bf16.msra.mxu1 %v900_v43 }
  0x25   :  { %161 = vmatprep.mubr.f32.mxu0 %v52_v55  ;;  %941 = vmatprep.subr.bf16.mxu1 %v902_v44 }
  0x28   :  { %162 = vmatmul.mubr.f32.gmra.mrb[2].mxu0 %v51_v56  ;;  %943 = vmatpush3.bf16.msra.mxu1 %v904_v49 }
  0x29   :  { %945 = vmatprep.subr.bf16.mxu1 %v906_v50 }
  0x2c   :  { %947 = vmatpush3.bf16.msra.mxu1 %v908_v53 }
  0x2f   :  { %418 = vmatmul.mubr.f32.vlgmr.msra.gmra.mrb[2].mxu1 %v752_v57 }
  0xa1   :  { %v310_v39 = vpop.xlane.xlu1 %309 }
  0xa2   :  { %v311_v41 = vrot.slane %v310_v39, 4 }
  0xa4   :  { %v312_v43 = vadd.f32 %v311_v41, %v310_v39 }
  0xa5   :  { %v329_v40 = vpop.xlane.xlu1 %328 }
  0xa6   :  { %v330_v42 = vrot.slane %v329_v40, 4  ;;  %v313_v48 = vrot.slane %v312_v43, 2 }
  0xa8   :  { %v331_v46 = vadd.f32 %v330_v42, %v329_v40  ;;  %v314_v55 = vadd.f32 %v313_v48, %v312_v43 }
  0xaa   :  { %v332_v51 = vrot.slane %v331_v46, 2  ;;  %v315_v61 = vrot.slane %v314_v55, 1 }
  0xac   :  { %v333_v56 = vadd.f32 %v332_v51, %v331_v46  ;;  %v316_v2 = vadd.f32 %v315_v61, %v314_v55 }
  0xae   :  { %v334_v0 = vrot.slane %v333_v56, 1 }
  0xe2   :  { %v877_v5 = vpop.f32.mrb[0].mxu1 }
  0xe3   :  { %v284_v6 = vmul.f32 %v877_v5, %v282_v3  ;;  %v272_v7 = vpop.f32.mrb[1].mxu1  ;;  %v335_v3 = vadd.f32 %v334_v0, %v333_v56 }
  0xe4   :  { %v283_v8 = vmul.f32 %v281_v4, %v272_v7 }
  0xe5   :  { %v287_v9 = vsel %vm286_vm5, %v284_v6, 0.0 }
  0xe6   :  { %v285_v10 = vsel %vm180_vm1, %v283_v8, 0.0 }
  0xe7   :  { %v288_v11 = vadd.f32 %v287_v9, %v285_v10 }
  0xf7   :  { %v791_v12 = vpop.f32.mrb[0].mxu0 }
  0xf8   :  { %v792_v14 = vpop.f32.mrb[1].mxu0 }
  0xf9   :  { %v793_v15 = vadd.f32 %v792_v14, %v791_v12 }
  0xfb   :  { %v159_v17 = vadd.f32 %v793_v15, %v745_v13  ;;  %v794_v18 = vpop.f32.mrb[2].mxu0 }
  0xfc   :  { %v795_v19 = vpop.f32.mrb[3].mxu0 }
  0xfd   :  { %v174_v20 = vmul.f32 %v746_v16, %v159_v17  ;;  %v796_v21 = vadd.f32 %v795_v19, %v794_v18 }
  0xff   :  { %v164_v23 = vadd.f32 %v796_v21, %v745_v13  ;;  %v178_v26 = vmul.f32 %v176_v22, %v174_v20 }
 0x101   :  { %v175_v25 = vmul.f32 %v746_v16, %v164_v23  ;;  %v181_v30 = vsel %vm180_vm1, %v178_v26, 0.0 }
 0x102   :  { %v833_v33 = vpop.f32.mrb[2].mxu1 }
 0x103   :  { %v179_v27 = vmul.f32 %v177_v24, %v175_v25  ;;  %v834_v34 = vpop.f32.mrb[3].mxu1 }
 0x104   :  { %v835_v35 = vadd.f32 %v834_v34, %v833_v33 }
 0x105   :  { %v182_v31 = vsel %vm180_vm1, %v179_v27, 0.0 }
 0x106   :  { %v183_v32 = vadd.f32 %v182_v31, %v181_v30  ;;  %v420_v36 = vadd.f32 %v835_v35, %v745_v13 }
 0x108   :  { %184 = vadd.xlane.f32.xlu0 %v183_v32  ;;  %v423_v37 = vmul.f32 %v746_v16, %v420_v36 }
 0x10a   :  { %v424_v38 = vadd.f32 %v750_v59, %v423_v37  }
 0x10c   :  { %289 = vadd.xlane.f32.xlu0 %v288_v11 }
 0x195   :  { %v185_v44 = vpop.xlane.xlu0 %184 }
 0x196   :  { %v186_v45 = vrot.slane %v185_v44, 4 }
 0x198   :  { %v187_v47 = vadd.f32 %v186_v45, %v185_v44 }
 0x199   :  { %v290_v49 = vpop.xlane.xlu0 %289 }
 0x19a   :  { %v188_v50 = vrot.slane %v187_v47, 2  ;;  %v291_v52 = vrot.slane %v290_v49, 4 }
 0x19c   :  { %v292_v53 = vadd.f32 %v291_v52, %v290_v49  ;;  %v189_v54 = vadd.f32 %v188_v50, %v187_v47 }
 0x19e   :  { %v293_v57 = vrot.slane %v292_v53, 2  ;;  %v190_v58 = vrot.slane %v189_v54, 1 }
 0x1a0   :  { %v294_v59 = vadd.f32 %v293_v57, %v292_v53  ;;  %v191_v60 = vadd.f32 %v190_v58, %v189_v54 }
 0x1a2   :  { %980 = vpush %v191_v60  ;;  %v295_v62 = vrot.slane %v294_v59, 1 }
 0x1a4   :  { %v296_v1 = vadd.f32 %v295_v62, %v294_v59 }
 0x1a6   :  { %982 = vpush %v296_v1 }
 0x1a7   :  { %984 = vpush %v316_v2 }
 0x1a8   :  { %986 = vpush %v335_v3 }
 0x1d3   :  { %s981_s5 = spop %980 }
 0x1d4   :  { %v193_v4 = vstv %s981_s5 }
 0x1d7   :  { %s983_s15 = spop %982 }
 0x1d8   :  { %v298_v5 = vstv %s983_s15  ;;  %s985_s16 = spop %984 }
 0x1d9   :  { %v338_v6 = vadd.f32 %v298_v5, %v193_v4  ;;  %s987_s17 = spop %986  ;;  %v318_v7 = vstv %s985_s16 }
 0x1da   :  { %v337_v9 = vstv %s987_s17 }
 0x1db   :  { %v339_v8 = vadd.f32 %v338_v6, %v318_v7 }
 0x1dd   :  { %v1307_v10 = vadd.f32 %v339_v8, %v337_v9 }
 0x1de LB: > { %v452_v11 = vld [vmem:[%s1477_s2 + $0x80] sm:$0xff]  ;;  %v453_v12 = vld [vmem:[%s1477_s2 + $0x88] sm:$0xff]  ;;  %v566_v14 = vlaneseq  ;;  %v454_v17 = vld [vmem:[%s1477_s2 + $0x90] sm:$0xff]  ;;  %s758_s5 = sshll.u32 %s1063_s6, 2  ;;  %v1066_v7 = vmov 1966171168   ;;  %s1063_s6 = sphi %s1311_s6, %s430_s6   ;;  %v1059_v38 = vphi %v424_v38, %v1489_v38  }
 0x1df   : > { %v436_v13 = vld [vmem:[%s1477_s2] sm:$0xff]  ;;  %v948_v15 = vpack.c.bf16 %v453_v12, %v452_v11  ;;  %v437_v16 = vld [vmem:[%s1477_s2 + $0x8] sm:$0xff]  ;;  %v455_v18 = vld [vmem:[%s1477_s2 + $0x98] sm:$0xff]  ;;  %s434_s12 = scalar_lea.vmem %s1475_s0, %s758_s5  ;;  %v594_v8 = vunpack.c.l.s4 %v1066_v7  ;;  %vm630_vm6 = vcmask 83968   ;;  %s753_s18 = sshll.u32 %s1063_s6, 1  ;;  %vm687_vm7 = vcmask 1041409  }
 0x1e0   : > { %v950_v19 = vpack.c.bf16 %v437_v16, %v436_v13  ;;  %v952_v20 = vpack.c.bf16 %v455_v18, %v454_v17  ;;  %v438_v21 = vld [vmem:[%s1477_s2 + $0x10] sm:$0xff]  ;;  %v439_v22 = vld [vmem:[%s1477_s2 + $0x18] sm:$0xff]  ;;  %v456_v23 = vld [vmem:[%s1477_s2 + $0xa0] sm:$0xff]  ;;  %v1346_v24 = vshrl.u32 %v566_v14, 7  ;;  %s564_s20 = scalar_lea.vmem %s1484_s9, %s753_s18  ;;  %s430_s6 = sadd.s32 1, %s1063_s6  }
 0x1e1   : > { %949 = vmatprep.subr.bf16.mxu0 %v948_v15  ;;  %v457_v25 = vld [vmem:[%s1477_s2 + $0xa8] sm:$0xff]  ;;  %v954_v26 = vpack.c.bf16 %v439_v22, %v438_v21  ;;  %v440_v32 = vld [vmem:[%s1477_s2 + $0x20] sm:$0xff]  ;;  %v458_v34 = vld [vmem:[%s1477_s2 + $0xb0] sm:$0xff]  ;;  %v595_v11 = vunpack.c.0.s8 %v594_v8  ;;  %p427_p0 = scmp.ge.s32.totalorder %s430_s6, 8  }
 0x1e2   : > { %951 = vmatpush3.bf16.msra.mxu0 %v950_v19  ;;  %v1353_v27 = vsub.s32 0, %v1346_v24  ;;  %v579_v30 = vsub.s32 1, %v1346_v24  ;;  %v956_v31 = vpack.c.bf16 %v457_v25, %v456_v23  ;;  %v441_v33 = vld [vmem:[%s1477_s2 + $0x28] sm:$0xff]  ;;  %v459_v35 = vld [vmem:[%s1477_s2 + $0xb8] sm:$0xff]  ;;  %v442_v41 = vld [vmem:[%s1477_s2 + $0x30] sm:$0xff]  ;;  %vm704_vm9 = vcmask (%p427_p0), 1024  }
 0x1e3   : > { %953 = vmatprep.subr.bf16.mxu0 %v952_v20  ;;  %v958_v39 = vpack.c.bf16 %v441_v33, %v440_v32  ;;  %v960_v40 = vpack.c.bf16 %v459_v35, %v458_v34  ;;  %v443_v42 = vld [vmem:[%s1477_s2 + $0x38] sm:$0xff]  ;;  %v460_v43 = vld [vmem:[%s1477_s2 + $0xc0] sm:$0xff]  ;;  %v461_v44 = vld [vmem:[%s1477_s2 + $0xc8] sm:$0xff]  ;;  %v598_v19 = vsub.s32 %v595_v11, %v1346_v24  ;;  %s1067_s0 = smov (%p427_p0), [#allocation2]   ;;  %vm717_vm10 = vcmask (%p427_p0), 0  }
 0x1e4   : > { %v569_v36 = vrot.slane %v1059_v38, %v1353_v27  ;;  %v580_v37 = vrot.slane %v1059_v38, %v579_v30  ;;  %v756_v45 = vld.sshfl [vmem:[%s434_s12] sm:$0x33 pattern:$0x76325410]  ;;  %v962_v47 = vpack.c.bf16 %v443_v42, %v442_v41  ;;  %v964_v48 = vpack.c.bf16 %v461_v44, %v460_v43  ;;  %v445_v50 = vld [vmem:[%s1477_s2 + $0x48] sm:$0xff]  ;;  %v462_v51 = vld [vmem:[%s1477_s2 + $0xd0] sm:$0xff] }
 0x1e5   : > { %v483_v46 = vcombine.high %v756_v45, %v756_v45  ;;  %v444_v49 = vld [vmem:[%s1477_s2 + $0x40] sm:$0xff]  ;;  %v463_v52 = vld [vmem:[%s1477_s2 + $0xd8] sm:$0xff]  ;;  %v446_v55 = vld [vmem:[%s1477_s2 + $0x50] sm:$0xff] }
 0x1e6   : > { %955 = vmatpush3.bf16.msra.mxu0 %v954_v26  ;;  %571 = vbcast.lane.b32.xlu0 %v569_v36, 256  ;;  %v966_v53 = vpack.c.bf16 %v445_v50, %v444_v49  ;;  %v968_v54 = vpack.c.bf16 %v463_v52, %v462_v51  ;;  %v447_v56 = vld [vmem:[%s1477_s2 + $0x58] sm:$0xff]  ;;  %v464_v57 = vld [vmem:[%s1477_s2 + $0xe0] sm:$0xff]  ;;  %v465_v58 = vld [vmem:[%s1477_s2 + $0xe8] sm:$0xff] }
 0x1e7   : > { %957 = vmatprep.subr.bf16.mxu0 %v956_v31  ;;  %582 = vbcast.lane.b32.xlu1 %v580_v37, 256  ;;  %v970_v59 = vpack.c.bf16 %v447_v56, %v446_v55  ;;  %v972_v60 = vpack.c.bf16 %v465_v58, %v464_v57  ;;  %v448_v61 = vld [vmem:[%s1477_s2 + $0x60] sm:$0xff]  ;;  %v449_v62 = vld [vmem:[%s1477_s2 + $0x68] sm:$0xff]  ;;  %v466_v0 = vld [vmem:[%s1477_s2 + $0xf0] sm:$0xff] }
 0x1e8   : > { %550 = vmatprep.mubr.f32.mxu0 %v483_v46  ;;  %v467_v1 = vld [vmem:[%s1477_s2 + $0xf8] sm:$0xff]  ;;  %v974_v2 = vpack.c.bf16 %v449_v62, %v448_v61  ;;  %v450_v4 = vld [vmem:[%s1477_s2 + $0x70] sm:$0xff]  ;;  %v755_v12 = vld [vmem:[%s1478_s3] ss:$0 sm:$0xff] }
 0x1e9   : > { %v976_v3 = vpack.c.bf16 %v467_v1, %v466_v0  ;;  %v451_v5 = vld [vmem:[%s1477_s2 + $0x78] sm:$0xff]  ;;  %v757_v16 = vld [vmem:[%s1479_s4] ss:$0 sm:$0xff]  ;;  %s725_s2 = sshll.u32 (%p427_p0), %s1067_s0, 4  ;;  %s726_s2 = int_to_ptr.vmem [resolvable:$true] %s725_s2 }
 0x1ea   : > { %959 = vmatpush3.bf16.msra.mxu0 %v958_v39  ;;  %575 = vbcast.lane.b32.xlu0 %v569_v36, 264  ;;  %v978_v6 = vpack.c.bf16 %v451_v5, %v450_v4  ;;  %s1025_s4 = scalar_lea.vmem (%p427_p0), %s726_s2, 16  ;;  %s1029_s9 = scalar_lea.vmem (%p427_p0), %s726_s2, 32 }
 0x1eb   : > { %961 = vmatprep.subr.bf16.mxu0 %v960_v40  ;;  %586 = vbcast.lane.b32.xlu1 %v580_v37, 264  ;;  %p1026_p1 = scmp.ne.s32.totalorder (%p427_p0), %s726_s2, %s1025_s4  ;;  %p1030_p2 = scmp.lt.s32.totalorder (%p427_p0), %s726_s2, %s726_s2 }
 0x1ec   :  { %p1031_p3 = scmp.lt.s32.totalorder (%p427_p0), %s1029_s9, %s1025_s4 }
 0x1ee   : > { %963 = vmatpush3.bf16.msra.mxu0 %v962_v47  ;;  %p1032_p4 = por (%p427_p0), %p1031_p3, %p1030_p2 }
 0x1ef   : > { %965 = vmatprep.subr.bf16.mxu0 %v964_v48 }
 0x1f0   :  { %p1033_p5 = pnand (%p427_p0), %p1032_p4, %p1026_p1 }
 0x1f2   : > { %967 = vmatpush3.bf16.msra.mxu0 %v966_v53 }
 0x1f3   : > { %969 = vmatprep.subr.bf16.mxu0 %v968_v54 }
 0x1f6   : > { %971 = vmatpush3.bf16.msra.mxu0 %v970_v59 }
 0x1f7   : > { %973 = vmatprep.subr.bf16.mxu0 %v972_v60 }
 0x1fa   : > { %975 = vmatpush3.bf16.msra.mxu0 %v974_v2 }
 0x1fb   : > { %977 = vmatprep.subr.bf16.mxu0 %v976_v3 }
 0x1fe   : > { %979 = vmatpush3.bf16.msra.mxu0 %v978_v6 }
 0x201   : > { %551 = vmatmul.mubr.f32.vlgmr.msra.gmra.mrb[0].mxu0 %v756_v45 }
 0x258   : > { %v572_v14 = vpop.permute.xlu0 %571 }
 0x259   : > { %v583_v17 = vpop.permute.xlu1 %582  ;;  %v588_v32 = vadd.f32 %v572_v14, %v1201_v28 }
 0x25a   : > { %v590_v24 = vadd.f32 %v583_v17, %v1201_v28 }
 0x25c   : > { %v576_v21 = vpop.permute.xlu0 %575 }
 0x25d   : > { %v587_v23 = vpop.permute.xlu1 %586  ;;  %v589_v30 = vadd.f32 %v576_v21, %v1206_v29 }
 0x25e   : > { %v591_v34 = vadd.f32 %v587_v23, %v1206_v29 }
 0x2d4   : > { %v868_v9 = vpop.f32.mrb[0].mxu0 }
 0x2d5   : > { %v869_v13 = vpop.f32.mrb[1].mxu0 }
 0x2d6   : > { %v870_v15 = vadd.f32 %v869_v13, %v868_v9 }
 0x2d8   : > { %v553_v18 = vadd.f32 %v870_v15, %v755_v12 }
 0x2da   : > { %v563_v20 = vmul.f32 %v757_v16, %v553_v18 }
 0x2dc   : > { %v599_v22 = vrot.slane %v563_v20, %v598_v19 }
 0x2de   : > { %v607_v25 = vrot.slane %v599_v22, %v598_v19  ;;  %v600_v26 = vcombine.high %v599_v22, %v599_v22 }
 0x2e0   : > { %v618_v31 = vrot.slane %v607_v25, %v1353_v27  ;;  %v614_v33 = vrot.slane %v600_v26, %v598_v19 }
 0x2e2   : > { %v625_v35 = vadd.f32 %v618_v31, %v588_v32  ;;  %v622_v36 = vrot.slane %v614_v33, %v1353_v27  ;;  %v626_v37 = vadd.f32 %v618_v31, %v589_v30  ;;  %v565_v33 = vld [vmem:[%s564_s20] sm:$0x3] }
 0x2e3   : > { %vm684_vm8 = vcmp.gt.f32.partialorder %v565_v33, 0.0 }
 0x2e4   : > { %v629_v39 = vsel %vm180_vm1, %v625_v35, -inf  ;;  %v627_v40 = vadd.f32 %v622_v36, %v590_v24  ;;  %v631_v41 = vsel %vm630_vm6, %v626_v37, -inf  ;;  %v628_v42 = vadd.f32 %v622_v36, %v591_v34 }
 0x2e5   : > { %v632_v43 = vmax.f32 %v629_v39, %v631_v41 }
 0x2e6   : > { %v639_v44 = vsel %vm180_vm1, %v627_v40, -inf  ;;  %v640_v45 = vsel %vm630_vm6, %v628_v42, -inf }
 0x2e7   : > { %v633_v46 = vrot.slane %v632_v43, 4  ;;  %v641_v47 = vmax.f32 %v639_v44, %v640_v45 }
 0x2e9   : > { %v634_v48 = vmax.f32 %v632_v43, %v633_v46  ;;  %v642_v49 = vrot.slane %v641_v47, 4 }
 0x2eb   : > { %v635_v50 = vrot.slane %v634_v48, 2  ;;  %v643_v27 = vmax.f32 %v641_v47, %v642_v49 }
 0x2ed   : > { %v636_v51 = vmax.f32 %v634_v48, %v635_v50  ;;  %v644_v52 = vrot.slane %v643_v27, 2 }
 0x2ef   : > { %v637_v53 = vrot.slane %v636_v51, 1  ;;  %v645_v54 = vmax.f32 %v643_v27, %v644_v52 }
 0x2f1   : > { %v638_v55 = vmax.f32 %v636_v51, %v637_v53  ;;  %v646_v56 = vrot.slane %v645_v54, 1 }
 0x2f3   : > { %v648_v57 = vsub.f32 %v625_v35, %v638_v55  ;;  %v649_v58 = vsub.f32 %v626_v37, %v638_v55  ;;  %v647_v59 = vmax.f32 %v645_v54, %v646_v56 }
 0x2f5   : > { %v652_v60 = vmul.f32 1.442695, %v648_v57  ;;  %v654_v61 = vmul.f32 1.442695, %v649_v58  ;;  %v650_v62 = vsub.f32 %v627_v40, %v647_v59  ;;  %v651_v0 = vsub.f32 %v628_v42, %v647_v59 }
 0x2f7   : > { %1009 = vpow2.f32 %v652_v60  ;;  %v656_v1 = vmul.f32 1.442695, %v650_v62  ;;  %v658_v2 = vmul.f32 1.442695, %v651_v0 }
 0x2f8   : > { %1011 = vpow2.f32 %v654_v61 }
 0x2f9   : > { %1013 = vpow2.f32 %v656_v1 }
 0x2fa   : > { %1015 = vpow2.f32 %v658_v2 }
 0x301   : > { %v1010_v3 = vpop.eup %1009 }
 0x302   : > { %v1012_v4 = vpop.eup %1011  ;;  %v660_v5 = vsel %vm180_vm1, %v1010_v3, 0.0 }
 0x303   : > { %v1014_v6 = vpop.eup %1013  ;;  %v661_v7 = vsel %vm630_vm6, %v1012_v4, 0.0 }
 0x304   : > { %v1016_v8 = vpop.eup %1015  ;;  %v662_v9 = vadd.f32 %v661_v7, %v660_v5  ;;  %v669_v11 = vsel %vm180_vm1, %v1014_v6, 0.0 }
 0x305   : > { %v670_v12 = vsel %vm630_vm6, %v1016_v8, 0.0 }
 0x306   : > { %v663_v13 = vrot.slane %v662_v9, 4  ;;  %v671_v14 = vadd.f32 %v670_v12, %v669_v11 }
 0x308   : > { %v664_v15 = vadd.f32 %v663_v13, %v662_v9  ;;  %v672_v16 = vrot.slane %v671_v14, 4 }
 0x30a   : > { %v665_v17 = vrot.slane %v664_v15, 2  ;;  %v673_v18 = vadd.f32 %v672_v16, %v671_v14 }
 0x30c   : > { %v666_v19 = vadd.f32 %v665_v17, %v664_v15  ;;  %v674_v20 = vrot.slane %v673_v18, 2 }
 0x30e   : > { %v667_v21 = vrot.slane %v666_v19, 1  ;;  %v675_v22 = vadd.f32 %v674_v20, %v673_v18 }
 0x310   : > { %v668_v23 = vadd.f32 %v667_v21, %v666_v19  ;;  %v676_v25 = vrot.slane %v675_v22, 1 }
 0x312   : > { %1017 = vlog2.f32 %v668_v23  ;;  %v677_v26 = vadd.f32 %v676_v25, %v675_v22 }
 0x314   : > { %1019 = vlog2.f32 %v677_v26 }
 0x31c   : > { %v1018_v30 = vpop.eup %1017 }
 0x31d   : > { %v679_v31 = vmul.f32 0.6931472, %v1018_v30 }
 0x31e   : > { %v1020_v32 = vpop.eup %1019 }
 0x31f   : > { %v681_v34 = vmul.f32 0.6931472, %v1020_v32  ;;  %v682_v35 = vadd.f32 %v679_v31, %v638_v55  ;;  %429 = sbr.rel (!%p427_p0) target bundleno = 478 (0x1de), region = 81 }
 0x321   : > { %v683_v36 = vadd.f32 %v681_v34, %v647_v59 }
 0x323   : > { %v688_v24 = vsel %vm687_vm7, %v683_v36, %v682_v35 }
 0x324   : > { %v690_v37 = vsel %vm684_vm8, %v688_v24, %v1059_v38  }
 0x325   : > { %v1489_v38 = vmov %v690_v37  ;;  %v691_v39 = vadd.f32 (%p427_p0), %v1279_v63, %v690_v37 }
 0x327   :  { %v692_v40 = vsel %vm307_vm4, %v691_v39, -inf }
 0x328   :  { %693 = vmax.xlane.f32.xlu0 %v692_v40 }
 0x3b5   :  { %v694_v41 = vpop.xlane.xlu0 %693 }
 0x3b6   :  { %v695_v42 = vsub.f32 %v691_v39, %v694_v41 }
 0x3b8   :  { %v696_v43 = vmul.f32 1.442695, %v695_v42 }
 0x3ba   :  { %1021 = vpow2.f32 %v696_v43 }
 0x3c4   :  { %v1022_v44 = vpop.eup %1021 }
 0x3c5   :  { %v698_v38 = vsel %vm307_vm4, %v1022_v44, 0.0 }
 0x3c6   :  { %699 = vadd.xlane.f32.xlu0 %v698_v38 }
 0x453   :  { %v700_v45 = vpop.xlane.xlu0 %699 }
 0x454   :  { %1023 = vlog2.f32 %v700_v45 }
 0x45e   :  { %v1024_v46 = vpop.eup %1023 }
 0x45f   :  { %v702_v47 = vmul.f32 0.6931472, %v1024_v46 }
 0x461   :  { %v703_v48 = vadd.f32 %v702_v47, %v694_v41 }
 0x463   :  { %v705_v49 = vsel %vm704_vm9, %v703_v48, 0.0 }
 0x464   :  { %706 = vadd.xlane.f32.xlu1 %v705_v49 }
 0x4f1   :  { %v707_v28 = vpop.xlane.xlu1 %706 }
 0x4f2   :  { %v708_v29 = vrot.slane %v707_v28, 4 }
 0x4f4   :  { %v709_v63 = vadd.f32 %v708_v29, %v707_v28 }
 0x4f6   :  { %v710_v50 = vrot.slane %v709_v63, 2 }
 0x4f8   :  { %v711_v27 = vadd.f32 %v710_v50, %v709_v63 }
 0x4fa   :  { %v712_v51 = vrot.slane %v711_v27, 1 }
 0x4fc   :  { %v713_v52 = vadd.f32 %v712_v51, %v711_v27 }
 0x4fe   :  { %988 = vpush %v713_v52 }
 0x52f   :  { %s989_s3 = spop %988 }
 0x530   :  { %v715_v53 = vstv %s989_s3 }
 0x531   :  { %v716_v54 = vsub.f32 %v715_v53, %v1307_v10 }
 0x533   :  { %718 = vst.msk [vmem:[#allocation2] sm:$0x1] %vm717_vm10, %v716_v54 }
 0x534   :  { %1036 = shalt.err (!%p1033_p5)
}
 0x535   :  { %s1037_s22 = scalar_lea.hbm %s1488_s13, 16 }
 0x536   :  { %p1038_p6 = scmp.ne.s32.totalorder %s1488_s13, %s1037_s22  ;;  %p1041_p7 = scmp.lt.u32.totalorder %s1037_s22, %s1488_s13 }
 0x538   :  { %p1043_p8 = pnand %p1041_p7, %p1038_p6 }
 0x53a   :  { %1046 = shalt.err (!%p1043_p8)
}
 0x53b   :  { %728 = dma.vmem_to_hbm [thread:$0]  %s726_s2, 16, %s1488_s13, [#allocation3]  }
 0x53c   :  { %1055 = dma.done.wait [#allocation3], 16  }
 0x53d   :  { %1056 = vsyncadd [#allocation3], 4294967280 }
 0x53e   :  { %732 = vsyncpa [#allocation3], 1 }

// kernel: bilstm_crf_forward.3
= control target key start
LH: loop header
LB: loop body
LE: loop exit
PB: predicated region body
PF: predicated region fallthrough
CT: control target
= control target key end

     0   :  { %10 = vsyncpa [#allocation7], 0  ;;  %s2122_s0 = inlined_call_operand.vmem [shape: f32[16,128], index: 0, kind: input, shape index: {}]   ;;  %s2123_s1 = inlined_call_operand.hbm [shape: f32[128,1024], index: 1, kind: input, shape index: {}]   ;;  %s2124_s2 = inlined_call_operand.hbm [shape: f32[128,512], index: 2, kind: input, shape index: {}]   ;;  %s2125_s3 = inlined_call_operand.hbm [shape: f32[128,512], index: 3, kind: input, shape index: {}]   ;;  %s2126_s4 = inlined_call_operand.vmem [shape: f32[1,1024], index: 4, kind: input, shape index: {}]   ;;  %s2127_s5 = inlined_call_operand.vmem [shape: f32[8,2,256], index: 5, kind: output, shape index: {}]  }
   0x1   :  { %11 = vsyncpa [#allocation9], 0  ;;  %s1891_s18 = smov [#allocation8]   ;;  %s1781_s22 = scalar_lea.hbm %s2124_s2, 8192 }
   0x2   :  { %s31_s19 = sshll.u32 %s1891_s18, 4  ;;  %p1782_p0 = scmp.ne.s32.totalorder %s2124_s2, %s1781_s22  ;;  %s32_s19 = int_to_ptr.vmem [resolvable:$true] %s31_s19 }
   0x3   :  { %p1785_p1 = scmp.lt.u32.totalorder %s1781_s22, %s2124_s2 }
   0x5   :  { %p1787_p2 = pnand %p1785_p1, %p1782_p0 }
   0x7   :  { %1790 = shalt.err (!%p1787_p2)
}
   0x8   :  { %s1791_s27 = scalar_lea.vmem %s32_s19, 8192  ;;  %p1796_p4 = scmp.lt.s32.totalorder %s32_s19, %s32_s19 }
   0x9   :  { %p1792_p3 = scmp.ne.s32.totalorder %s32_s19, %s1791_s27  ;;  %p1797_p5 = scmp.lt.s32.totalorder %s1791_s27, %s1791_s27 }
   0xb   :  { %p1798_p6 = por %p1797_p5, %p1796_p4 }
   0xd   :  { %p1799_p7 = pnand %p1798_p6, %p1792_p3 }
   0xf   :  { %1802 = shalt.err (!%p1799_p7)
}
  0x10   :  { %s1892_s28 = smov 512   ;;  %s1893_s29 = smov 32  }
  0x11   :  { %37 = dma.hbm_to_vmem [thread:$0]  %s2124_s2, 8192, %s32_s19, [#allocation9], %s1892_s28, %s1892_s28, %s1893_s29  }
  0x12   :  { %s1894_s7 = smov [#allocation6]   ;;  %s1803_s11 = scalar_lea.hbm %s2123_s1, 16384 }
  0x13   :  { %s19_s8 = sshll.u32 %s1894_s7, 4  ;;  %p1804_p8 = scmp.ne.s32.totalorder %s2123_s1, %s1803_s11  ;;  %s20_s8 = int_to_ptr.vmem [resolvable:$true] %s19_s8 }
  0x14   :  { %p1807_p9 = scmp.lt.u32.totalorder %s1803_s11, %s2123_s1 }
  0x16   :  { %p1809_p10 = pnand %p1807_p9, %p1804_p8 }
  0x18   :  { %1812 = shalt.err (!%p1809_p10)
}
  0x19   :  { %s1813_s16 = scalar_lea.vmem %s20_s8, 16384  ;;  %p1818_p12 = scmp.lt.s32.totalorder %s20_s8, %s20_s8 }
  0x1a   :  { %p1814_p11 = scmp.ne.s32.totalorder %s20_s8, %s1813_s16  ;;  %p1819_p13 = scmp.lt.s32.totalorder %s1813_s16, %s1813_s16 }
  0x1c   :  { %p1820_p0 = por %p1819_p13, %p1818_p12 }
  0x1e   :  { %p1821_p1 = pnand %p1820_p0, %p1814_p11 }
  0x20   :  { %1824 = shalt.err (!%p1821_p1)
}
  0x21   :  { %s1895_s2 = smov 1024   ;;  %s1896_s17 = smov 64  }
  0x22   :  { %25 = dma.hbm_to_vmem [thread:$0]  %s2123_s1, 16384, %s20_s8, [#allocation7], %s1895_s2, %s1895_s2, %s1896_s17  }
  0x23   :  { %s1897_s20 = smov [#allocation10]   ;;  %s1825_s24 = scalar_lea.hbm %s2125_s3, 8192 }
  0x24   :  { %s43_s21 = sshll.u32 %s1897_s20, 4  ;;  %p1826_p2 = scmp.ne.s32.totalorder %s2125_s3, %s1825_s24  ;;  %s44_s21 = int_to_ptr.vmem [resolvable:$true] %s43_s21 }
  0x25   :  { %p1829_p3 = scmp.lt.u32.totalorder %s1825_s24, %s2125_s3 }
  0x27   :  { %p1831_p4 = pnand %p1829_p3, %p1826_p2 }
  0x29   :  { %1834 = shalt.err (!%p1831_p4)
}
  0x2a   :  { %s1835_s6 = scalar_lea.vmem %s44_s21, 8192  ;;  %p1840_p6 = scmp.lt.s32.totalorder %s44_s21, %s44_s21 }
  0x2b   :  { %p1836_p5 = scmp.ne.s32.totalorder %s44_s21, %s1835_s6  ;;  %p1841_p7 = scmp.lt.s32.totalorder %s1835_s6, %s1835_s6 }
  0x2d   :  { %p1842_p8 = por %p1841_p7, %p1840_p6 }
  0x2f   :  { %p1843_p9 = pnand %p1842_p8, %p1836_p5 }
  0x31   :  { %1846 = shalt.err (!%p1843_p9)
}
  0x32   :  { %49 = dma.hbm_to_vmem [thread:$0]  %s2125_s3, 8192, %s44_s21, [#allocation9], %s1892_s28, %s1892_s28, %s1893_s29  }
  0x33   :  { %1867 = dma.done.wait [#allocation7], 16384  }
  0x34   :  { %1868 = vsyncadd [#allocation7], 4294950912 }
  0x35   :  { %1869 = dma.done.wait [#allocation9], 16384  }
  0x36   :  { %1870 = vsyncadd [#allocation9], 4294950912  ;;  %v1898_v0 = vmov 0.0   ;;  %v64_v1 = vld [vmem:[#allocation6 + $0x8] sm:$0xff]  ;;  %v66_v3 = vld [vmem:[#allocation6 + $0x18] sm:$0xff] }
  0x37   :  { %297 = vmatprep.mubr.f32.mxu0 %v1898_v0  ;;  %374 = vmatprep.mubr.f32.mxu1 %v1898_v0  ;;  %v72_v2 = vld [vmem:[#allocation6 + $0x48] sm:$0xff]  ;;  %v74_v5 = vld [vmem:[#allocation6 + $0x58] sm:$0xff]  ;;  %v63_v6 = vld [vmem:[#allocation6] sm:$0xff] }
  0x38   :  { %v1443_v4 = vpack.c.bf16 %v72_v2, %v64_v1  ;;  %v71_v7 = vld [vmem:[#allocation6 + $0x40] sm:$0xff]  ;;  %v1475_v8 = vpack.c.bf16 %v74_v5, %v66_v3  ;;  %v65_v10 = vld [vmem:[#allocation6 + $0x10] sm:$0xff]  ;;  %v80_v12 = vld [vmem:[#allocation6 + $0x88] sm:$0xff] }
  0x39   :  { %v1445_v9 = vpack.c.bf16 %v71_v7, %v63_v6  ;;  %v73_v11 = vld [vmem:[#allocation6 + $0x50] sm:$0xff]  ;;  %v88_v14 = vld [vmem:[#allocation6 + $0xc8] sm:$0xff]  ;;  %v82_v15 = vld [vmem:[#allocation6 + $0x98] sm:$0xff] }
  0x3a   :  { %1444 = vmatprep.subr.bf16.mxu0 %v1443_v4  ;;  %v1477_v13 = vpack.c.bf16 %v73_v11, %v65_v10  ;;  %v90_v16 = vld [vmem:[#allocation6 + $0xd8] sm:$0xff]  ;;  %1476 = vmatprep.subr.bf16.mxu1 %v1475_v8  ;;  %v1447_v17 = vpack.c.bf16 %v88_v14, %v80_v12  ;;  %v79_v19 = vld [vmem:[#allocation6 + $0x80] sm:$0xff]  ;;  %v81_v21 = vld [vmem:[#allocation6 + $0x90] sm:$0xff] }
  0x3b   :  { %1446 = vmatpush1.bf16.msra.mxu0 %v1445_v9  ;;  %v1479_v18 = vpack.c.bf16 %v90_v16, %v82_v15  ;;  %v87_v20 = vld [vmem:[#allocation6 + $0xc0] sm:$0xff]  ;;  %v89_v23 = vld [vmem:[#allocation6 + $0xd0] sm:$0xff]  ;;  %v96_v24 = vld [vmem:[#allocation6 + $0x108] sm:$0xff] }
  0x3c   :  { %1478 = vmatpush1.bf16.msra.mxu1 %v1477_v13  ;;  %v1449_v22 = vpack.c.bf16 %v87_v20, %v79_v19  ;;  %v104_v25 = vld [vmem:[#allocation6 + $0x148] sm:$0xff]  ;;  %1448 = vmatprep.subr.bf16.mxu0 %v1447_v17  ;;  %v1481_v26 = vpack.c.bf16 %v89_v23, %v81_v21  ;;  %v98_v28 = vld [vmem:[#allocation6 + $0x118] sm:$0xff]  ;;  %v95_v30 = vld [vmem:[#allocation6 + $0x100] sm:$0xff] }
  0x3d   :  { %1480 = vmatprep.subr.bf16.mxu1 %v1479_v18  ;;  %v1451_v27 = vpack.c.bf16 %v104_v25, %v96_v24  ;;  %v106_v29 = vld [vmem:[#allocation6 + $0x158] sm:$0xff]  ;;  %v103_v32 = vld [vmem:[#allocation6 + $0x140] sm:$0xff]  ;;  %v97_v33 = vld [vmem:[#allocation6 + $0x110] sm:$0xff] }
  0x3e   :  { %v1483_v31 = vpack.c.bf16 %v106_v29, %v98_v28  ;;  %v105_v34 = vld [vmem:[#allocation6 + $0x150] sm:$0xff]  ;;  %v1453_v35 = vpack.c.bf16 %v103_v32, %v95_v30  ;;  %v112_v36 = vld [vmem:[#allocation6 + $0x188] sm:$0xff]  ;;  %v114_v38 = vld [vmem:[#allocation6 + $0x198] sm:$0xff] }
  0x3f   :  { %1450 = vmatpush1.bf16.msra.mxu0 %v1449_v22  ;;  %v120_v37 = vld [vmem:[#allocation6 + $0x1c8] sm:$0xff]  ;;  %v1485_v39 = vpack.c.bf16 %v105_v34, %v97_v33  ;;  %v122_v41 = vld [vmem:[#allocation6 + $0x1d8] sm:$0xff]  ;;  %v111_v42 = vld [vmem:[#allocation6 + $0x180] sm:$0xff] }
  0x40   :  { %1482 = vmatpush1.bf16.msra.mxu1 %v1481_v26  ;;  %1452 = vmatprep.subr.bf16.mxu0 %v1451_v27  ;;  %v1455_v40 = vpack.c.bf16 %v120_v37, %v112_v36  ;;  %v119_v43 = vld [vmem:[#allocation6 + $0x1c0] sm:$0xff]  ;;  %v1487_v44 = vpack.c.bf16 %v122_v41, %v114_v38  ;;  %v113_v45 = vld [vmem:[#allocation6 + $0x190] sm:$0xff]  ;;  %v128_v47 = vld [vmem:[#allocation6 + $0x208] sm:$0xff] }
  0x41   :  { %1484 = vmatprep.subr.bf16.mxu1 %v1483_v31  ;;  %v121_v46 = vld [vmem:[#allocation6 + $0x1d0] sm:$0xff]  ;;  %v136_v48 = vld [vmem:[#allocation6 + $0x248] sm:$0xff]  ;;  %v130_v49 = vld [vmem:[#allocation6 + $0x218] sm:$0xff]  ;;  %v1457_v51 = vpack.c.bf16 %v119_v43, %v111_v42 }
  0x42   :  { %v138_v50 = vld [vmem:[#allocation6 + $0x258] sm:$0xff]  ;;  %v1489_v52 = vpack.c.bf16 %v121_v46, %v113_v45  ;;  %v1459_v53 = vpack.c.bf16 %v136_v48, %v128_v47  ;;  %v127_v54 = vld [vmem:[#allocation6 + $0x200] sm:$0xff]  ;;  %v129_v56 = vld [vmem:[#allocation6 + $0x210] sm:$0xff] }
  0x43   :  { %1454 = vmatpush1.bf16.msra.mxu0 %v1453_v35  ;;  %v135_v55 = vld [vmem:[#allocation6 + $0x240] sm:$0xff]  ;;  %v1491_v57 = vpack.c.bf16 %v138_v50, %v130_v49  ;;  %v137_v58 = vld [vmem:[#allocation6 + $0x250] sm:$0xff]  ;;  %v144_v59 = vld [vmem:[#allocation6 + $0x288] sm:$0xff] }
  0x44   :  { %1486 = vmatpush1.bf16.msra.mxu1 %v1485_v39  ;;  %1456 = vmatprep.subr.bf16.mxu0 %v1455_v40  ;;  %v152_v60 = vld [vmem:[#allocation6 + $0x2c8] sm:$0xff]  ;;  %v146_v61 = vld [vmem:[#allocation6 + $0x298] sm:$0xff]  ;;  %v1461_v63 = vpack.c.bf16 %v135_v55, %v127_v54  ;;  %v1493_v1 = vpack.c.bf16 %v137_v58, %v129_v56  ;;  %v143_v3 = vld [vmem:[#allocation6 + $0x280] sm:$0xff] }
  0x45   :  { %1488 = vmatprep.subr.bf16.mxu1 %v1487_v44  ;;  %v154_v62 = vld [vmem:[#allocation6 + $0x2d8] sm:$0xff]  ;;  %v1463_v2 = vpack.c.bf16 %v152_v60, %v144_v59  ;;  %v151_v4 = vld [vmem:[#allocation6 + $0x2c0] sm:$0xff]  ;;  %v145_v5 = vld [vmem:[#allocation6 + $0x290] sm:$0xff] }
  0x46   :  { %v1495_v6 = vpack.c.bf16 %v154_v62, %v146_v61  ;;  %v153_v7 = vld [vmem:[#allocation6 + $0x2d0] sm:$0xff]  ;;  %v160_v8 = vld [vmem:[#allocation6 + $0x308] sm:$0xff]  ;;  %v162_v10 = vld [vmem:[#allocation6 + $0x318] sm:$0xff]  ;;  %v1465_v12 = vpack.c.bf16 %v151_v4, %v143_v3 }
  0x47   :  { %1458 = vmatpush1.bf16.msra.mxu0 %v1457_v51  ;;  %v168_v9 = vld [vmem:[#allocation6 + $0x348] sm:$0xff]  ;;  %v170_v11 = vld [vmem:[#allocation6 + $0x358] sm:$0xff]  ;;  %v1497_v13 = vpack.c.bf16 %v153_v7, %v145_v5  ;;  %v159_v15 = vld [vmem:[#allocation6 + $0x300] sm:$0xff] }
  0x48   :  { %1490 = vmatpush1.bf16.msra.mxu1 %v1489_v52  ;;  %1460 = vmatprep.subr.bf16.mxu0 %v1459_v53  ;;  %v1467_v14 = vpack.c.bf16 %v168_v9, %v160_v8  ;;  %v167_v16 = vld [vmem:[#allocation6 + $0x340] sm:$0xff]  ;;  %v161_v17 = vld [vmem:[#allocation6 + $0x310] sm:$0xff]  ;;  %v1499_v18 = vpack.c.bf16 %v170_v11, %v162_v10  ;;  %v176_v20 = vld [vmem:[#allocation6 + $0x388] sm:$0xff] }
  0x49   :  { %1492 = vmatprep.subr.bf16.mxu1 %v1491_v57  ;;  %v169_v19 = vld [vmem:[#allocation6 + $0x350] sm:$0xff]  ;;  %v184_v21 = vld [vmem:[#allocation6 + $0x3c8] sm:$0xff]  ;;  %v178_v22 = vld [vmem:[#allocation6 + $0x398] sm:$0xff]  ;;  %v1469_v24 = vpack.c.bf16 %v167_v16, %v159_v15 }
  0x4a   :  { %v186_v23 = vld [vmem:[#allocation6 + $0x3d8] sm:$0xff]  ;;  %v1501_v25 = vpack.c.bf16 %v169_v19, %v161_v17  ;;  %v1471_v26 = vpack.c.bf16 %v184_v21, %v176_v20  ;;  %v175_v27 = vld [vmem:[#allocation6 + $0x380] sm:$0xff]  ;;  %v177_v29 = vld [vmem:[#allocation6 + $0x390] sm:$0xff] }
  0x4b   :  { %1462 = vmatpush1.bf16.msra.mxu0 %v1461_v63  ;;  %v183_v28 = vld [vmem:[#allocation6 + $0x3c0] sm:$0xff]  ;;  %v1503_v30 = vpack.c.bf16 %v186_v23, %v178_v22  ;;  %v185_v31 = vld [vmem:[#allocation6 + $0x3d0] sm:$0xff]  ;;  %v68_v32 = vld [vmem:[#allocation6 + $0x28] sm:$0xff] }
  0x4c   :  { %1494 = vmatpush1.bf16.msra.mxu1 %v1493_v1  ;;  %1464 = vmatprep.subr.bf16.mxu0 %v1463_v2  ;;  %v76_v33 = vld [vmem:[#allocation6 + $0x68] sm:$0xff]  ;;  %v70_v34 = vld [vmem:[#allocation6 + $0x38] sm:$0xff]  ;;  %v1473_v36 = vpack.c.bf16 %v183_v28, %v175_v27  ;;  %v1505_v37 = vpack.c.bf16 %v185_v31, %v177_v29  ;;  %v67_v39 = vld [vmem:[#allocation6 + $0x20] sm:$0xff] }
  0x4d   :  { %1496 = vmatprep.subr.bf16.mxu1 %v1495_v6  ;;  %v78_v35 = vld [vmem:[#allocation6 + $0x78] sm:$0xff]  ;;  %v1507_v38 = vpack.c.bf16 %v76_v33, %v68_v32  ;;  %v75_v40 = vld [vmem:[#allocation6 + $0x60] sm:$0xff]  ;;  %v69_v41 = vld [vmem:[#allocation6 + $0x30] sm:$0xff] }
  0x4e   :  { %v1539_v42 = vpack.c.bf16 %v78_v35, %v70_v34  ;;  %v77_v43 = vld [vmem:[#allocation6 + $0x70] sm:$0xff]  ;;  %v84_v44 = vld [vmem:[#allocation6 + $0xa8] sm:$0xff]  ;;  %v86_v46 = vld [vmem:[#allocation6 + $0xb8] sm:$0xff]  ;;  %v1509_v49 = vpack.c.bf16 %v75_v40, %v67_v39 }
  0x4f   :  { %1466 = vmatpush1.bf16.msra.mxu0 %v1465_v12  ;;  %v92_v45 = vld [vmem:[#allocation6 + $0xe8] sm:$0xff]  ;;  %v94_v47 = vld [vmem:[#allocation6 + $0xf8] sm:$0xff]  ;;  %v1978_v48 = vld [vmem:[%s2122_s0] sm:$0xff]  ;;  %v1541_v50 = vpack.c.bf16 %v77_v43, %v69_v41 }
  0x50   :  { %1498 = vmatpush1.bf16.msra.mxu1 %v1497_v13  ;;  %1468 = vmatprep.subr.bf16.mxu0 %v1467_v14  ;;  %v1511_v51 = vpack.c.bf16 %v92_v45, %v84_v44  ;;  %v83_v52 = vld [vmem:[#allocation6 + $0xa0] sm:$0xff]  ;;  %v85_v54 = vld [vmem:[#allocation6 + $0xb0] sm:$0xff]  ;;  %v1543_v55 = vpack.c.bf16 %v94_v47, %v86_v46  ;;  %v100_v57 = vld [vmem:[#allocation6 + $0x128] sm:$0xff] }
  0x51   :  { %1500 = vmatprep.subr.bf16.mxu1 %v1499_v18  ;;  %v91_v53 = vld [vmem:[#allocation6 + $0xe0] sm:$0xff]  ;;  %v93_v56 = vld [vmem:[#allocation6 + $0xf0] sm:$0xff]  ;;  %v108_v58 = vld [vmem:[#allocation6 + $0x168] sm:$0xff] }
  0x52   :  { %v102_v59 = vld [vmem:[#allocation6 + $0x138] sm:$0xff]  ;;  %v1513_v61 = vpack.c.bf16 %v91_v53, %v83_v52  ;;  %v1545_v62 = vpack.c.bf16 %v93_v56, %v85_v54  ;;  %v1515_v63 = vpack.c.bf16 %v108_v58, %v100_v57  ;;  %v99_v1 = vld [vmem:[#allocation6 + $0x120] sm:$0xff]  ;;  %v101_v3 = vld [vmem:[#allocation6 + $0x130] sm:$0xff] }
  0x53   :  { %1470 = vmatpush1.bf16.msra.mxu0 %v1469_v24  ;;  %v110_v60 = vld [vmem:[#allocation6 + $0x178] sm:$0xff]  ;;  %v107_v2 = vld [vmem:[#allocation6 + $0x160] sm:$0xff]  ;;  %v109_v5 = vld [vmem:[#allocation6 + $0x170] sm:$0xff] }
  0x54   :  { %1502 = vmatpush1.bf16.msra.mxu1 %v1501_v25  ;;  %1472 = vmatprep.subr.bf16.mxu0 %v1471_v26  ;;  %v1547_v4 = vpack.c.bf16 %v110_v60, %v102_v59  ;;  %v116_v6 = vld [vmem:[#allocation6 + $0x1a8] sm:$0xff]  ;;  %v118_v8 = vld [vmem:[#allocation6 + $0x1b8] sm:$0xff]  ;;  %v1517_v10 = vpack.c.bf16 %v107_v2, %v99_v1  ;;  %v1549_v12 = vpack.c.bf16 %v109_v5, %v101_v3  ;;  %v115_v14 = vld [vmem:[#allocation6 + $0x1a0] sm:$0xff] }
  0x55   :  { %1504 = vmatprep.subr.bf16.mxu1 %v1503_v30  ;;  %v124_v7 = vld [vmem:[#allocation6 + $0x1e8] sm:$0xff]  ;;  %v126_v9 = vld [vmem:[#allocation6 + $0x1f8] sm:$0xff]  ;;  %v123_v15 = vld [vmem:[#allocation6 + $0x1e0] sm:$0xff] }
  0x56   :  { %v1987_v11 = vld [vmem:[%s2122_s0 + $0x8] sm:$0xff]  ;;  %v1519_v13 = vpack.c.bf16 %v124_v7, %v116_v6  ;;  %v117_v16 = vld [vmem:[#allocation6 + $0x1b0] sm:$0xff]  ;;  %v1551_v17 = vpack.c.bf16 %v126_v9, %v118_v8  ;;  %v134_v21 = vld [vmem:[#allocation6 + $0x238] sm:$0xff]  ;;  %v1521_v23 = vpack.c.bf16 %v123_v15, %v115_v14  ;;  %v193_v7 = vlaneseq }
  0x57   :  { %1474 = vmatpush1.bf16.msra.mxu0 %v1473_v36  ;;  %v125_v18 = vld [vmem:[#allocation6 + $0x1f0] sm:$0xff]  ;;  %v132_v19 = vld [vmem:[#allocation6 + $0x228] sm:$0xff]  ;;  %v142_v22 = vld [vmem:[#allocation6 + $0x278] sm:$0xff] }
  0x58   :  { %1506 = vmatpush1.bf16.msra.mxu1 %v1505_v37  ;;  %1508 = vmatprep.subr.bf16.mxu0 %v1507_v38  ;;  %v140_v20 = vld [vmem:[#allocation6 + $0x268] sm:$0xff]  ;;  %v1553_v24 = vpack.c.bf16 %v125_v18, %v117_v16  ;;  %v131_v26 = vld [vmem:[#allocation6 + $0x220] sm:$0xff]  ;;  %v133_v28 = vld [vmem:[#allocation6 + $0x230] sm:$0xff]  ;;  %v1555_v29 = vpack.c.bf16 %v142_v22, %v134_v21  ;;  %v1999_v8 = vshrl.u32 %v193_v7, 7 }
  0x59   :  { %1540 = vmatprep.subr.bf16.mxu1 %v1539_v42  ;;  %v1523_v25 = vpack.c.bf16 %v140_v20, %v132_v19  ;;  %v139_v27 = vld [vmem:[#allocation6 + $0x260] sm:$0xff]  ;;  %v141_v30 = vld [vmem:[#allocation6 + $0x270] sm:$0xff]  ;;  %v148_v31 = vld [vmem:[#allocation6 + $0x2a8] sm:$0xff] }
  0x5a   :  { %298 = vmatmul.mubr.f32.vlgmr.msra.gmra.mrb[0].mxu0 %v1978_v48  ;;  %v156_v32 = vld [vmem:[#allocation6 + $0x2e8] sm:$0xff]  ;;  %v150_v33 = vld [vmem:[#allocation6 + $0x2b8] sm:$0xff]  ;;  %v1525_v35 = vpack.c.bf16 %v139_v27, %v131_v26  ;;  %v1557_v36 = vpack.c.bf16 %v141_v30, %v133_v28  ;;  %v147_v38 = vld [vmem:[#allocation6 + $0x2a0] sm:$0xff]  ;;  %v195_v9 = vsub.s32 0, %v1999_v8  ;;  %v207_v14 = vsub.s32 3, %v1999_v8 }
  0x5b   :  { %375 = vmatmul.mubr.f32.vlgmr.msra.gmra.mrb[0].mxu1 %v1978_v48  ;;  %1510 = vmatpush1.bf16.msra.mxu0 %v1509_v49  ;;  %v158_v34 = vld [vmem:[#allocation6 + $0x2f8] sm:$0xff]  ;;  %v1527_v37 = vpack.c.bf16 %v156_v32, %v148_v31  ;;  %v155_v39 = vld [vmem:[#allocation6 + $0x2e0] sm:$0xff]  ;;  %v149_v40 = vld [vmem:[#allocation6 + $0x2b0] sm:$0xff] }
  0x5c   :  { %1542 = vmatpush1.bf16.msra.mxu1 %v1541_v50  ;;  %1512 = vmatprep.subr.bf16.mxu0 %v1511_v51  ;;  %v1559_v41 = vpack.c.bf16 %v158_v34, %v150_v33  ;;  %v157_v42 = vld [vmem:[#allocation6 + $0x2f0] sm:$0xff]  ;;  %v164_v43 = vld [vmem:[#allocation6 + $0x328] sm:$0xff]  ;;  %v166_v45 = vld [vmem:[#allocation6 + $0x338] sm:$0xff]  ;;  %v1529_v47 = vpack.c.bf16 %v155_v39, %v147_v38 }
  0x5d   :  { %1544 = vmatprep.subr.bf16.mxu1 %v1543_v55  ;;  %303 = vmatprep.mubr.f32.mxu0 %v1898_v0  ;;  %v172_v44 = vld [vmem:[#allocation6 + $0x368] sm:$0xff]  ;;  %v174_v46 = vld [vmem:[#allocation6 + $0x378] sm:$0xff]  ;;  %v1561_v49 = vpack.c.bf16 %v157_v42, %v149_v40  ;;  %v163_v51 = vld [vmem:[#allocation6 + $0x320] sm:$0xff] }
  0x5e   :  { %380 = vmatprep.mubr.f32.mxu1 %v1898_v0  ;;  %304 = vmatmul.mubr.f32.gmra.mrb[2].mxu0 %v1987_v11  ;;  %v1531_v50 = vpack.c.bf16 %v172_v44, %v164_v43  ;;  %v171_v52 = vld [vmem:[#allocation6 + $0x360] sm:$0xff]  ;;  %v165_v53 = vld [vmem:[#allocation6 + $0x330] sm:$0xff]  ;;  %v1563_v54 = vpack.c.bf16 %v174_v46, %v166_v45  ;;  %v180_v56 = vld [vmem:[#allocation6 + $0x3a8] sm:$0xff] }
  0x5f   :  { %1514 = vmatpush1.bf16.msra.mxu0 %v1513_v61  ;;  %381 = vmatmul.mubr.f32.gmra.mrb[2].mxu1 %v1987_v11  ;;  %v173_v55 = vld [vmem:[#allocation6 + $0x370] sm:$0xff]  ;;  %v188_v57 = vld [vmem:[#allocation6 + $0x3e8] sm:$0xff]  ;;  %v182_v58 = vld [vmem:[#allocation6 + $0x3b8] sm:$0xff]  ;;  %v1533_v60 = vpack.c.bf16 %v171_v52, %v163_v51 }
  0x60   :  { %1546 = vmatpush1.bf16.msra.mxu1 %v1545_v62  ;;  %1516 = vmatprep.subr.bf16.mxu0 %v1515_v63  ;;  %v190_v59 = vld [vmem:[#allocation6 + $0x3f8] sm:$0xff]  ;;  %v1565_v61 = vpack.c.bf16 %v173_v55, %v165_v53  ;;  %v1535_v62 = vpack.c.bf16 %v188_v57, %v180_v56  ;;  %v179_v63 = vld [vmem:[#allocation6 + $0x3a0] sm:$0xff]  ;;  %v181_v3 = vld [vmem:[#allocation6 + $0x3b0] sm:$0xff] }
  0x61   :  { %1548 = vmatprep.subr.bf16.mxu1 %v1547_v4  ;;  %451 = vmatprep.mubr.f32.mxu0 %v1898_v0  ;;  %v187_v1 = vld [vmem:[#allocation6 + $0x3e0] sm:$0xff]  ;;  %v1567_v2 = vpack.c.bf16 %v190_v59, %v182_v58  ;;  %v189_v4 = vld [vmem:[#allocation6 + $0x3f0] sm:$0xff] }
  0x62   :  { %528 = vmatprep.mubr.f32.mxu1 %v1898_v0  ;;  %v1537_v5 = vpack.c.bf16 %v187_v1, %v179_v63  ;;  %v1569_v6 = vpack.c.bf16 %v189_v4, %v181_v3  ;;  %v215_v63 = vsub.s32 5, %v1999_v8  ;;  %v223_v1 = vsub.s32 7, %v1999_v8 }
  0x63   :  { %1518 = vmatpush1.bf16.msra.mxu0 %v1517_v10  ;;  %v2005_v10 = vld [vmem:[%s2126_s4] sm:$0xff]  ;;  %s2049_s4 = smov 0  }
  0x64   :  { %1550 = vmatpush1.bf16.msra.mxu1 %v1549_v12  ;;  %1520 = vmatprep.subr.bf16.mxu0 %v1519_v13  ;;  %v1899_v12 = vmov 1983009808   ;;  %v203_v13 = vsub.s32 2, %v1999_v8  ;;  %v208_v18 = vrot.slane %v2005_v10, %v207_v14  ;;  %v216_v4 = vrot.slane %v2005_v10, %v215_v63 }
  0x65   :  { %1552 = vmatprep.subr.bf16.mxu1 %v1551_v17 }
  0x66   :  { %v204_v16 = vrot.slane %v2005_v10, %v203_v13 }
  0x67   :  { %1522 = vmatpush1.bf16.msra.mxu0 %v1521_v23 }
  0x68   :  { %1554 = vmatpush1.bf16.msra.mxu1 %v1553_v24  ;;  %1524 = vmatprep.subr.bf16.mxu0 %v1523_v25 }
  0x69   :  { %1556 = vmatprep.subr.bf16.mxu1 %v1555_v29 }
  0x6b   :  { %1526 = vmatpush1.bf16.msra.mxu0 %v1525_v35 }
  0x6c   :  { %1558 = vmatpush1.bf16.msra.mxu1 %v1557_v36  ;;  %1528 = vmatprep.subr.bf16.mxu0 %v1527_v37 }
  0x6d   :  { %1560 = vmatprep.subr.bf16.mxu1 %v1559_v41 }
  0x6f   :  { %1530 = vmatpush1.bf16.msra.mxu0 %v1529_v47 }
  0x70   :  { %1562 = vmatpush1.bf16.msra.mxu1 %v1561_v49  ;;  %1532 = vmatprep.subr.bf16.mxu0 %v1531_v50 }
  0x71   :  { %1564 = vmatprep.subr.bf16.mxu1 %v1563_v54 }
  0x73   :  { %1534 = vmatpush1.bf16.msra.mxu0 %v1533_v60 }
  0x74   :  { %1566 = vmatpush1.bf16.msra.mxu1 %v1565_v61  ;;  %1536 = vmatprep.subr.bf16.mxu0 %v1535_v62  ;;  %v211_v61 = vsub.s32 4, %v1999_v8  ;;  %v219_v62 = vsub.s32 6, %v1999_v8 }
  0x75   :  { %1568 = vmatprep.subr.bf16.mxu1 %v1567_v2 }
  0x76   :  { %v212_v2 = vrot.slane %v2005_v10, %v211_v61  ;;  %v220_v3 = vrot.slane %v2005_v10, %v219_v62 }
  0x77   :  { %1538 = vmatpush1.bf16.msra.mxu0 %v1537_v5  ;;  %v224_v5 = vrot.slane %v2005_v10, %v223_v1 }
  0x78   :  { %1570 = vmatpush1.bf16.msra.mxu1 %v1569_v6 }
  0x7a   :  { %452 = vmatmul.mubr.f32.vlgmr.msra.gmra.mrb[4].mxu0 %v1978_v48 }
  0x7b   :  { %529 = vmatmul.mubr.f32.vlgmr.msra.gmra.mrb[4].mxu1 %v1978_v48  ;;  %457 = vmatprep.mubr.f32.mxu0 %v1898_v0  ;;  %v554_v48 = vunpack.c.l.s4 %v1899_v12 }
  0x7c   :  { %534 = vmatprep.mubr.f32.mxu1 %v1898_v0  ;;  %v199_v0 = vsub.s32 1, %v1999_v8 }
  0x7d   :  { %v555_v15 = vunpack.c.0.s8 %v554_v48 }
  0x7e   :  { %458 = vmatmul.mubr.f32.gmra.mrb[6].mxu0 %v1987_v11  ;;  %v200_v17 = vrot.slane %v2005_v10, %v199_v0 }
  0x7f   :  { %535 = vmatmul.mubr.f32.gmra.mrb[6].mxu1 %v1987_v11  ;;  %v196_v11 = vrot.slane %v2005_v10, %v195_v9  ;;  %v2015_v23 = vsub.s32 %v555_v15, %v1999_v8 }
 0x12d   :  { %v299_v19 = vpop.f32.mrb[0].mxu0 }
 0x12e   :  { %v300_v20 = vadd.f32 %v299_v19, %v196_v11  ;;  %v376_v21 = vpop.f32.mrb[0].mxu1  ;;  %v301_v22 = vpop.f32.mrb[1].mxu0 }
 0x12f   :  { %v377_v24 = vadd.f32 %v376_v21, %v204_v16  ;;  %v302_v25 = vadd.f32 %v301_v22, %v200_v17  ;;  %v378_v26 = vpop.f32.mrb[1].mxu1 }
 0x130   :  { %v379_v27 = vadd.f32 %v378_v26, %v208_v18 }
 0x131   :  { %v549_v28 = vcombine.low %v300_v20, %v302_v25  ;;  %v550_v29 = vcombine.high %v300_v20, %v302_v25  ;;  %v305_v36 = vpop.f32.mrb[2].mxu0 }
 0x132   :  { %v551_v30 = vcombine.low %v377_v24, %v379_v27  ;;  %v552_v31 = vcombine.high %v377_v24, %v379_v27  ;;  %v306_v37 = vadd.f32 %v305_v36, %v196_v11  ;;  %v382_v38 = vpop.f32.mrb[2].mxu1  ;;  %v307_v39 = vpop.f32.mrb[3].mxu0 }
 0x133   :  { %v559_v32 = vrot.slane %v549_v28, %v2015_v23  ;;  %v566_v33 = vrot.slane %v550_v29, %v2015_v23  ;;  %v384_v44 = vpop.f32.mrb[3].mxu1  ;;  %v383_v45 = vadd.f32 %v382_v38, %v204_v16  ;;  %v308_v46 = vadd.f32 %v307_v39, %v200_v17 }
 0x134   :  { %v573_v34 = vrot.slane %v551_v30, %v2015_v23  ;;  %v580_v35 = vrot.slane %v552_v31, %v2015_v23  ;;  %v385_v47 = vadd.f32 %v384_v44, %v208_v18 }
 0x135   :  { %v585_v49 = vcombine.low %v306_v37, %v308_v46  ;;  %v586_v50 = vcombine.high %v306_v37, %v308_v46  ;;  %v2043_v46 = vmov 0.0  }
 0x136   :  { %v581_v40 = vcombine.low %v559_v32, %v573_v34  ;;  %v582_v41 = vcombine.high %v559_v32, %v573_v34  ;;  %v583_v42 = vcombine.low %v566_v33, %v580_v35  ;;  %v584_v43 = vcombine.high %v566_v33, %v580_v35 }
 0x137   :  { %v587_v51 = vcombine.low %v383_v45, %v385_v47  ;;  %v588_v52 = vcombine.high %v383_v45, %v385_v47  ;;  %v595_v53 = vrot.slane %v585_v49, %v2015_v23  ;;  %v602_v54 = vrot.slane %v586_v50, %v2015_v23 }
 0x138   :  { %629 = vst [vmem:[#allocation2] sm:$0xff] %v581_v40  ;;  %630 = vst [vmem:[#allocation2 + $0x8] sm:$0xff] %v582_v41  ;;  %v2041_v45 = vmov 0.0   ;;  %v2045_v47 = vmov 0.0   ;;  %v2047_v49 = vmov 0.0  }
 0x139   :  { %631 = vst [vmem:[#allocation2 + $0x10] sm:$0xff] %v583_v42  ;;  %632 = vst [vmem:[#allocation2 + $0x18] sm:$0xff] %v584_v43  ;;  %v609_v55 = vrot.slane %v587_v51, %v2015_v23  ;;  %v616_v56 = vrot.slane %v588_v52, %v2015_v23 }
 0x13b   :  { %v617_v57 = vcombine.low %v595_v53, %v609_v55  ;;  %v618_v58 = vcombine.high %v595_v53, %v609_v55  ;;  %v619_v59 = vcombine.low %v602_v54, %v616_v56  ;;  %v620_v60 = vcombine.high %v602_v54, %v616_v56 }
 0x13d   :  { %633 = vst [vmem:[#allocation2 + $0x20] sm:$0xff] %v617_v57  ;;  %634 = vst [vmem:[#allocation2 + $0x28] sm:$0xff] %v618_v58 }
 0x13e   :  { %635 = vst [vmem:[#allocation2 + $0x30] sm:$0xff] %v619_v59  ;;  %636 = vst [vmem:[#allocation2 + $0x38] sm:$0xff] %v620_v60 }
 0x14d   :  { %v453_v6 = vpop.f32.mrb[4].mxu0 }
 0x14e   :  { %v454_v7 = vadd.f32 %v453_v6, %v212_v2  ;;  %v530_v9 = vpop.f32.mrb[4].mxu1  ;;  %v455_v12 = vpop.f32.mrb[5].mxu0 }
 0x14f   :  { %v531_v48 = vadd.f32 %v530_v9, %v220_v3  ;;  %v456_v13 = vadd.f32 %v455_v12, %v216_v4  ;;  %v532_v0 = vpop.f32.mrb[5].mxu1 }
 0x150   :  { %v533_v14 = vadd.f32 %v532_v0, %v224_v5 }
 0x151   :  { %v645_v11 = vcombine.low %v454_v7, %v456_v13  ;;  %v646_v15 = vcombine.high %v454_v7, %v456_v13  ;;  %v459_v16 = vpop.f32.mrb[6].mxu0 }
 0x152   :  { %v647_v8 = vcombine.low %v531_v48, %v533_v14  ;;  %v648_v17 = vcombine.high %v531_v48, %v533_v14  ;;  %v460_v18 = vadd.f32 %v459_v16, %v212_v2  ;;  %v536_v19 = vpop.f32.mrb[6].mxu1  ;;  %v461_v20 = vpop.f32.mrb[7].mxu0 }
 0x153   :  { %v655_v21 = vrot.slane %v645_v11, %v2015_v23  ;;  %v662_v10 = vrot.slane %v646_v15, %v2015_v23  ;;  %v537_v22 = vadd.f32 %v536_v19, %v220_v3  ;;  %v462_v24 = vadd.f32 %v461_v20, %v216_v4  ;;  %v538_v25 = vpop.f32.mrb[7].mxu1 }
 0x154   :  { %v669_v26 = vrot.slane %v647_v8, %v2015_v23  ;;  %v676_v27 = vrot.slane %v648_v17, %v2015_v23  ;;  %v539_v28 = vadd.f32 %v538_v25, %v224_v5 }
 0x155   :  { %v681_v29 = vcombine.low %v460_v18, %v462_v24  ;;  %v682_v30 = vcombine.high %v460_v18, %v462_v24 }
 0x156   :  { %v677_v31 = vcombine.low %v655_v21, %v669_v26  ;;  %v678_v32 = vcombine.high %v655_v21, %v669_v26  ;;  %v679_v33 = vcombine.low %v662_v10, %v676_v27  ;;  %v680_v34 = vcombine.high %v662_v10, %v676_v27 }
 0x157   :  { %v691_v35 = vrot.slane %v681_v29, %v2015_v23  ;;  %v698_v36 = vrot.slane %v682_v30, %v2015_v23  ;;  %v683_v37 = vcombine.low %v537_v22, %v539_v28  ;;  %v684_v38 = vcombine.high %v537_v22, %v539_v28 }
 0x158   :  { %725 = vst [vmem:[#allocation3] sm:$0xff] %v677_v31  ;;  %726 = vst [vmem:[#allocation3 + $0x8] sm:$0xff] %v678_v32 }
 0x159   :  { %727 = vst [vmem:[#allocation3 + $0x10] sm:$0xff] %v679_v33  ;;  %728 = vst [vmem:[#allocation3 + $0x18] sm:$0xff] %v680_v34  ;;  %v705_v39 = vrot.slane %v683_v37, %v2015_v23  ;;  %v712_v40 = vrot.slane %v684_v38, %v2015_v23 }
 0x15b   :  { %v713_v41 = vcombine.low %v691_v35, %v705_v39  ;;  %v714_v42 = vcombine.high %v691_v35, %v705_v39  ;;  %v715_v43 = vcombine.low %v698_v36, %v712_v40  ;;  %v716_v44 = vcombine.high %v698_v36, %v712_v40 }
 0x15d   :  { %729 = vst [vmem:[#allocation3 + $0x20] sm:$0xff] %v713_v41  ;;  %730 = vst [vmem:[#allocation3 + $0x28] sm:$0xff] %v714_v42 }
 0x15e   :  { %731 = vst [vmem:[#allocation3 + $0x30] sm:$0xff] %v715_v43  ;;  %732 = vst [vmem:[#allocation3 + $0x38] sm:$0xff] %v716_v44 }
 0x15f LB: > { %v749_v50 = vld [vmem:[#allocation8 + $0x8] sm:$0xff]  ;;  %v751_v52 = vld [vmem:[#allocation8 + $0x18] sm:$0xff]  ;;  %v748_v55 = vld [vmem:[#allocation8] sm:$0xff]  ;;  %v1900_v57 = vmov 0.0   ;;  %s1441_s10 = sshll.u32 %s1889_s4, 3  ;;  %s743_s12 = ssub.s32 7, %s1889_s4  ;;  %s1889_s4 = sphi %s2049_s4, %s738_s4   ;;  %v1885_v49 = vphi %v2047_v49, %v1240_v49   ;;  %v1881_v47 = vphi %v2045_v47, %v1238_v47   ;;  %v1877_v46 = vphi %v2043_v46, %v1271_v46   ;;  %v1873_v45 = vphi %v2041_v45, %v1269_v45  }
 0x160   : > { %v753_v51 = vld [vmem:[#allocation8 + $0x28] sm:$0xff]  ;;  %v755_v54 = vld [vmem:[#allocation8 + $0x38] sm:$0xff]  ;;  %v752_v56 = vld [vmem:[#allocation8 + $0x20] sm:$0xff]  ;;  %876 = vmatprep.mubr.f32.mxu0 %v1900_v57  ;;  %947 = vmatprep.mubr.f32.mxu1 %v1900_v57  ;;  %s746_s11 = scalar_lea.vmem [#allocation2], %s1441_s10  ;;  %s1442_s13 = sshll.u32 %s743_s12, 3 }
 0x161   : > { %v1571_v53 = vpack.c.bf16 %v753_v51, %v749_v50  ;;  %v1603_v58 = vpack.c.bf16 %v755_v54, %v751_v52  ;;  %v1573_v59 = vpack.c.bf16 %v752_v56, %v748_v55  ;;  %v750_v60 = vld [vmem:[#allocation8 + $0x10] sm:$0xff]  ;;  %v757_v62 = vld [vmem:[#allocation8 + $0x48] sm:$0xff]  ;;  %v759_v2 = vld [vmem:[#allocation8 + $0x58] sm:$0xff]  ;;  %s979_s14 = scalar_lea.vmem [#allocation3], %s1442_s13  ;;  %s1431_s15 = sshll.u32 %s1889_s4, 1 }
 0x162   : > { %v754_v61 = vld [vmem:[#allocation8 + $0x30] sm:$0xff]  ;;  %v761_v1 = vld [vmem:[#allocation8 + $0x68] sm:$0xff]  ;;  %v763_v3 = vld [vmem:[#allocation8 + $0x78] sm:$0xff]  ;;  %s1273_s16 = scalar_lea.vmem [#allocation4], %s1431_s15  ;;  %s1432_s2 = sshll.u32 %s743_s12, 1 }
 0x163   : > { %1572 = vmatprep.subr.bf16.mxu0 %v1571_v53  ;;  %v1605_v63 = vpack.c.bf16 %v754_v61, %v750_v60  ;;  %1604 = vmatprep.subr.bf16.mxu1 %v1603_v58  ;;  %v1575_v4 = vpack.c.bf16 %v761_v1, %v757_v62  ;;  %v1607_v5 = vpack.c.bf16 %v763_v3, %v759_v2  ;;  %v756_v6 = vld [vmem:[#allocation8 + $0x40] sm:$0xff]  ;;  %v758_v9 = vld [vmem:[#allocation8 + $0x50] sm:$0xff]  ;;  %v765_v13 = vld [vmem:[#allocation8 + $0x88] sm:$0xff]  ;;  %s1276_s17 = scalar_lea.vmem [#allocation5], %s1432_s2  ;;  %s738_s4 = sadd.s32 1, %s1889_s4  }
 0x164   : > { %1574 = vmatpush1.bf16.msra.mxu0 %v1573_v59  ;;  %v760_v7 = vld [vmem:[#allocation8 + $0x60] sm:$0xff]  ;;  %v762_v48 = vld [vmem:[#allocation8 + $0x70] sm:$0xff]  ;;  %v769_v0 = vld [vmem:[#allocation8 + $0xa8] sm:$0xff]  ;;  %p735_p10 = scmp.ge.s32.totalorder %s738_s4, 8  }
 0x165   : > { %1606 = vmatpush1.bf16.msra.mxu1 %v1605_v63  ;;  %v1577_v12 = vpack.c.bf16 %v760_v7, %v756_v6  ;;  %1576 = vmatprep.subr.bf16.mxu0 %v1575_v4  ;;  %v1609_v14 = vpack.c.bf16 %v762_v48, %v758_v9  ;;  %v1579_v11 = vpack.c.bf16 %v769_v0, %v765_v13  ;;  %v767_v15 = vld [vmem:[#allocation8 + $0x98] sm:$0xff]  ;;  %v764_v8 = vld [vmem:[#allocation8 + $0x80] sm:$0xff]  ;;  %v766_v19 = vld [vmem:[#allocation8 + $0x90] sm:$0xff] }
 0x166   : > { %1608 = vmatprep.subr.bf16.mxu1 %v1607_v5  ;;  %v771_v16 = vld [vmem:[#allocation8 + $0xb8] sm:$0xff]  ;;  %v768_v18 = vld [vmem:[#allocation8 + $0xa0] sm:$0xff]  ;;  %v770_v20 = vld [vmem:[#allocation8 + $0xb0] sm:$0xff] }
 0x167   : > { %v1611_v17 = vpack.c.bf16 %v771_v16, %v767_v15  ;;  %v1581_v21 = vpack.c.bf16 %v768_v18, %v764_v8  ;;  %v773_v10 = vld [vmem:[#allocation8 + $0xc8] sm:$0xff]  ;;  %v775_v24 = vld [vmem:[#allocation8 + $0xd8] sm:$0xff]  ;;  %v1613_v25 = vpack.c.bf16 %v770_v20, %v766_v19  ;;  %v772_v28 = vld [vmem:[#allocation8 + $0xc0] sm:$0xff] }
 0x168   : > { %1578 = vmatpush1.bf16.msra.mxu0 %v1577_v12  ;;  %v777_v22 = vld [vmem:[#allocation8 + $0xe8] sm:$0xff]  ;;  %v779_v27 = vld [vmem:[#allocation8 + $0xf8] sm:$0xff]  ;;  %v776_v29 = vld [vmem:[#allocation8 + $0xe0] sm:$0xff] }
 0x169   : > { %1610 = vmatpush1.bf16.msra.mxu1 %v1609_v14  ;;  %1580 = vmatprep.subr.bf16.mxu0 %v1579_v11  ;;  %v1583_v26 = vpack.c.bf16 %v777_v22, %v773_v10  ;;  %v1615_v30 = vpack.c.bf16 %v779_v27, %v775_v24  ;;  %v774_v31 = vld [vmem:[#allocation8 + $0xd0] sm:$0xff]  ;;  %v781_v33 = vld [vmem:[#allocation8 + $0x108] sm:$0xff]  ;;  %v783_v35 = vld [vmem:[#allocation8 + $0x118] sm:$0xff]  ;;  %v1585_v37 = vpack.c.bf16 %v776_v29, %v772_v28 }
 0x16a   : > { %1612 = vmatprep.subr.bf16.mxu1 %v1611_v17  ;;  %v778_v32 = vld [vmem:[#allocation8 + $0xf0] sm:$0xff]  ;;  %v785_v34 = vld [vmem:[#allocation8 + $0x128] sm:$0xff]  ;;  %v787_v36 = vld [vmem:[#allocation8 + $0x138] sm:$0xff] }
 0x16b   : > { %v1617_v38 = vpack.c.bf16 %v778_v32, %v774_v31  ;;  %v1587_v39 = vpack.c.bf16 %v785_v34, %v781_v33  ;;  %v780_v40 = vld [vmem:[#allocation8 + $0x100] sm:$0xff]  ;;  %v782_v42 = vld [vmem:[#allocation8 + $0x110] sm:$0xff]  ;;  %v1619_v43 = vpack.c.bf16 %v787_v36, %v783_v35  ;;  %v789_v50 = vld [vmem:[#allocation8 + $0x148] sm:$0xff] }
 0x16c   : > { %1582 = vmatpush1.bf16.msra.mxu0 %v1581_v21  ;;  %v784_v41 = vld [vmem:[#allocation8 + $0x120] sm:$0xff]  ;;  %v786_v44 = vld [vmem:[#allocation8 + $0x130] sm:$0xff]  ;;  %v793_v51 = vld [vmem:[#allocation8 + $0x168] sm:$0xff] }
 0x16d   : > { %1614 = vmatpush1.bf16.msra.mxu1 %v1613_v25  ;;  %1584 = vmatprep.subr.bf16.mxu0 %v1583_v26  ;;  %v791_v52 = vld [vmem:[#allocation8 + $0x158] sm:$0xff]  ;;  %v1589_v54 = vpack.c.bf16 %v784_v41, %v780_v40  ;;  %v1621_v55 = vpack.c.bf16 %v786_v44, %v782_v42  ;;  %v1591_v56 = vpack.c.bf16 %v793_v51, %v789_v50  ;;  %v788_v58 = vld [vmem:[#allocation8 + $0x140] sm:$0xff]  ;;  %v790_v60 = vld [vmem:[#allocation8 + $0x150] sm:$0xff] }
 0x16e   : > { %1616 = vmatprep.subr.bf16.mxu1 %v1615_v30  ;;  %v795_v53 = vld [vmem:[#allocation8 + $0x178] sm:$0xff]  ;;  %v792_v59 = vld [vmem:[#allocation8 + $0x160] sm:$0xff]  ;;  %v794_v62 = vld [vmem:[#allocation8 + $0x170] sm:$0xff] }
 0x16f   : > { %v1623_v61 = vpack.c.bf16 %v795_v53, %v791_v52  ;;  %v797_v63 = vld [vmem:[#allocation8 + $0x188] sm:$0xff]  ;;  %v799_v2 = vld [vmem:[#allocation8 + $0x198] sm:$0xff]  ;;  %v1593_v4 = vpack.c.bf16 %v792_v59, %v788_v58  ;;  %v1625_v5 = vpack.c.bf16 %v794_v62, %v790_v60  ;;  %v796_v7 = vld [vmem:[#allocation8 + $0x180] sm:$0xff] }
 0x170   : > { %1586 = vmatpush1.bf16.msra.mxu0 %v1585_v37  ;;  %v801_v1 = vld [vmem:[#allocation8 + $0x1a8] sm:$0xff]  ;;  %v803_v3 = vld [vmem:[#allocation8 + $0x1b8] sm:$0xff]  ;;  %v800_v9 = vld [vmem:[#allocation8 + $0x1a0] sm:$0xff] }
 0x171   : > { %1618 = vmatpush1.bf16.msra.mxu1 %v1617_v38  ;;  %1588 = vmatprep.subr.bf16.mxu0 %v1587_v39  ;;  %v1595_v6 = vpack.c.bf16 %v801_v1, %v797_v63  ;;  %v798_v12 = vld [vmem:[#allocation8 + $0x190] sm:$0xff]  ;;  %v1627_v48 = vpack.c.bf16 %v803_v3, %v799_v2  ;;  %v805_v0 = vld [vmem:[#allocation8 + $0x1c8] sm:$0xff]  ;;  %v807_v11 = vld [vmem:[#allocation8 + $0x1d8] sm:$0xff]  ;;  %v1597_v16 = vpack.c.bf16 %v800_v9, %v796_v7 }
 0x172   : > { %1620 = vmatprep.subr.bf16.mxu1 %v1619_v43  ;;  %v802_v13 = vld [vmem:[#allocation8 + $0x1b0] sm:$0xff]  ;;  %v809_v14 = vld [vmem:[#allocation8 + $0x1e8] sm:$0xff]  ;;  %v811_v15 = vld [vmem:[#allocation8 + $0x1f8] sm:$0xff] }
 0x173   : > { %v1629_v8 = vpack.c.bf16 %v802_v13, %v798_v12  ;;  %v1599_v17 = vpack.c.bf16 %v809_v14, %v805_v0  ;;  %v804_v18 = vld [vmem:[#allocation8 + $0x1c0] sm:$0xff]  ;;  %v806_v20 = vld [vmem:[#allocation8 + $0x1d0] sm:$0xff]  ;;  %v1631_v21 = vpack.c.bf16 %v811_v15, %v807_v11  ;;  %v982_v22 = vld [vmem:[#allocation10 + $0x8] sm:$0xff] }
 0x174   : > { %1590 = vmatpush1.bf16.msra.mxu0 %v1589_v54  ;;  %v808_v19 = vld [vmem:[#allocation8 + $0x1e0] sm:$0xff]  ;;  %v810_v10 = vld [vmem:[#allocation8 + $0x1f0] sm:$0xff]  ;;  %v986_v24 = vld [vmem:[#allocation10 + $0x28] sm:$0xff] }
 0x175   : > { %1622 = vmatpush1.bf16.msra.mxu1 %v1621_v55  ;;  %1592 = vmatprep.subr.bf16.mxu0 %v1591_v56  ;;  %v984_v25 = vld [vmem:[#allocation10 + $0x18] sm:$0xff]  ;;  %v1601_v27 = vpack.c.bf16 %v808_v19, %v804_v18  ;;  %v1633_v28 = vpack.c.bf16 %v810_v10, %v806_v20  ;;  %v1635_v29 = vpack.c.bf16 %v986_v24, %v982_v22  ;;  %v981_v30 = vld [vmem:[#allocation10] sm:$0xff]  ;;  %v983_v32 = vld [vmem:[#allocation10 + $0x10] sm:$0xff] }
 0x176   : > { %1624 = vmatprep.subr.bf16.mxu1 %v1623_v61  ;;  %v988_v26 = vld [vmem:[#allocation10 + $0x38] sm:$0xff]  ;;  %v985_v31 = vld [vmem:[#allocation10 + $0x20] sm:$0xff]  ;;  %v987_v34 = vld [vmem:[#allocation10 + $0x30] sm:$0xff] }
 0x177   : > { %v1667_v33 = vpack.c.bf16 %v988_v26, %v984_v25  ;;  %v990_v35 = vld [vmem:[#allocation10 + $0x48] sm:$0xff]  ;;  %v992_v37 = vld [vmem:[#allocation10 + $0x58] sm:$0xff]  ;;  %v1637_v39 = vpack.c.bf16 %v985_v31, %v981_v30  ;;  %v1669_v40 = vpack.c.bf16 %v987_v34, %v983_v32  ;;  %v989_v42 = vld [vmem:[#allocation10 + $0x40] sm:$0xff] }
 0x178   : > { %1594 = vmatpush1.bf16.msra.mxu0 %v1593_v4  ;;  %v994_v36 = vld [vmem:[#allocation10 + $0x68] sm:$0xff]  ;;  %v996_v38 = vld [vmem:[#allocation10 + $0x78] sm:$0xff]  ;;  %v993_v43 = vld [vmem:[#allocation10 + $0x60] sm:$0xff] }
 0x179   : > { %1626 = vmatpush1.bf16.msra.mxu1 %v1625_v5  ;;  %1596 = vmatprep.subr.bf16.mxu0 %v1595_v6  ;;  %v1639_v41 = vpack.c.bf16 %v994_v36, %v990_v35  ;;  %v991_v44 = vld [vmem:[#allocation10 + $0x50] sm:$0xff]  ;;  %v1671_v50 = vpack.c.bf16 %v996_v38, %v992_v37  ;;  %v998_v52 = vld [vmem:[#allocation10 + $0x88] sm:$0xff]  ;;  %v1000_v54 = vld [vmem:[#allocation10 + $0x98] sm:$0xff]  ;;  %v1641_v56 = vpack.c.bf16 %v993_v43, %v989_v42 }
 0x17a   : > { %1628 = vmatprep.subr.bf16.mxu1 %v1627_v48  ;;  %v995_v51 = vld [vmem:[#allocation10 + $0x70] sm:$0xff]  ;;  %v1002_v53 = vld [vmem:[#allocation10 + $0xa8] sm:$0xff]  ;;  %v1004_v55 = vld [vmem:[#allocation10 + $0xb8] sm:$0xff] }
 0x17b   : > { %v1673_v58 = vpack.c.bf16 %v995_v51, %v991_v44  ;;  %v1643_v59 = vpack.c.bf16 %v1002_v53, %v998_v52  ;;  %v997_v60 = vld [vmem:[#allocation10 + $0x80] sm:$0xff]  ;;  %v999_v62 = vld [vmem:[#allocation10 + $0x90] sm:$0xff]  ;;  %v1675_v63 = vpack.c.bf16 %v1004_v55, %v1000_v54  ;;  %v1006_v2 = vld [vmem:[#allocation10 + $0xc8] sm:$0xff] }
 0x17c   : > { %1598 = vmatpush1.bf16.msra.mxu0 %v1597_v16  ;;  %v1001_v61 = vld [vmem:[#allocation10 + $0xa0] sm:$0xff]  ;;  %v1003_v1 = vld [vmem:[#allocation10 + $0xb0] sm:$0xff]  ;;  %v1010_v3 = vld [vmem:[#allocation10 + $0xe8] sm:$0xff] }
 0x17d   : > { %1630 = vmatpush1.bf16.msra.mxu1 %v1629_v8  ;;  %1600 = vmatprep.subr.bf16.mxu0 %v1599_v17  ;;  %v1008_v4 = vld [vmem:[#allocation10 + $0xd8] sm:$0xff]  ;;  %v1677_v6 = vpack.c.bf16 %v1003_v1, %v999_v62  ;;  %v1647_v7 = vpack.c.bf16 %v1010_v3, %v1006_v2  ;;  %v1005_v9 = vld [vmem:[#allocation10 + $0xc0] sm:$0xff]  ;;  %v1007_v48 = vld [vmem:[#allocation10 + $0xd0] sm:$0xff] }
 0x17e   : > { %1632 = vmatprep.subr.bf16.mxu1 %v1631_v21  ;;  %v1012_v5 = vld [vmem:[#allocation10 + $0xf8] sm:$0xff]  ;;  %v1009_v12 = vld [vmem:[#allocation10 + $0xe0] sm:$0xff]  ;;  %v1011_v0 = vld [vmem:[#allocation10 + $0xf0] sm:$0xff] }
 0x17f   : > { %v1679_v13 = vpack.c.bf16 %v1012_v5, %v1008_v4  ;;  %v1014_v14 = vld [vmem:[#allocation10 + $0x108] sm:$0xff]  ;;  %v1016_v15 = vld [vmem:[#allocation10 + $0x118] sm:$0xff]  ;;  %v1649_v8 = vpack.c.bf16 %v1009_v12, %v1005_v9  ;;  %v1013_v18 = vld [vmem:[#allocation10 + $0x100] sm:$0xff] }
 0x180   : > { %1602 = vmatpush1.bf16.msra.mxu0 %v1601_v27  ;;  %v1018_v11 = vld [vmem:[#allocation10 + $0x128] sm:$0xff]  ;;  %v1020_v16 = vld [vmem:[#allocation10 + $0x138] sm:$0xff]  ;;  %v1017_v19 = vld [vmem:[#allocation10 + $0x120] sm:$0xff] }
 0x181   : > { %1634 = vmatpush1.bf16.msra.mxu1 %v1633_v28  ;;  %1636 = vmatprep.subr.bf16.mxu0 %v1635_v29  ;;  %v1651_v17 = vpack.c.bf16 %v1018_v11, %v1014_v14  ;;  %v1015_v20 = vld [vmem:[#allocation10 + $0x110] sm:$0xff]  ;;  %v1683_v21 = vpack.c.bf16 %v1020_v16, %v1016_v15  ;;  %v1022_v22 = vld [vmem:[#allocation10 + $0x148] sm:$0xff]  ;;  %v1024_v25 = vld [vmem:[#allocation10 + $0x158] sm:$0xff]  ;;  %v1653_v27 = vpack.c.bf16 %v1017_v19, %v1013_v18 }
 0x182   : > { %1668 = vmatprep.subr.bf16.mxu1 %v1667_v33  ;;  %v1019_v10 = vld [vmem:[#allocation10 + $0x130] sm:$0xff]  ;;  %v1026_v24 = vld [vmem:[#allocation10 + $0x168] sm:$0xff]  ;;  %v1028_v26 = vld [vmem:[#allocation10 + $0x178] sm:$0xff] }
 0x183   : > { %877 = vmatmul.mubr.f32.vlgmr.msra.gmra.mrb[0].mxu0 %v1885_v49  ;;  %v1685_v28 = vpack.c.bf16 %v1019_v10, %v1015_v20  ;;  %v1655_v29 = vpack.c.bf16 %v1026_v24, %v1022_v22  ;;  %v1021_v30 = vld [vmem:[#allocation10 + $0x140] sm:$0xff]  ;;  %v1023_v32 = vld [vmem:[#allocation10 + $0x150] sm:$0xff]  ;;  %v1687_v33 = vpack.c.bf16 %v1028_v26, %v1024_v25  ;;  %v1030_v35 = vld [vmem:[#allocation10 + $0x188] sm:$0xff] }
 0x184   : > { %948 = vmatmul.mubr.f32.vlgmr.msra.gmra.mrb[0].mxu1 %v1885_v49  ;;  %1638 = vmatpush1.bf16.msra.mxu0 %v1637_v39  ;;  %v1645_v49 = vpack.c.bf16 %v1001_v61, %v997_v60  ;;  %v1025_v31 = vld [vmem:[#allocation10 + $0x160] sm:$0xff]  ;;  %v1027_v34 = vld [vmem:[#allocation10 + $0x170] sm:$0xff]  ;;  %v1034_v36 = vld [vmem:[#allocation10 + $0x1a8] sm:$0xff] }
 0x185   : > { %1670 = vmatpush1.bf16.msra.mxu1 %v1669_v40  ;;  %1640 = vmatprep.subr.bf16.mxu0 %v1639_v41  ;;  %v1032_v37 = vld [vmem:[#allocation10 + $0x198] sm:$0xff]  ;;  %v1657_v39 = vpack.c.bf16 %v1025_v31, %v1021_v30  ;;  %v1689_v40 = vpack.c.bf16 %v1027_v34, %v1023_v32  ;;  %v1659_v41 = vpack.c.bf16 %v1034_v36, %v1030_v35  ;;  %v1029_v42 = vld [vmem:[#allocation10 + $0x180] sm:$0xff]  ;;  %v1031_v44 = vld [vmem:[#allocation10 + $0x190] sm:$0xff] }
 0x186   : > { %1672 = vmatprep.subr.bf16.mxu1 %v1671_v50  ;;  %1109 = vmatprep.mubr.f32.mxu0 %v1900_v57  ;;  %v1036_v38 = vld [vmem:[#allocation10 + $0x1b8] sm:$0xff]  ;;  %v1033_v43 = vld [vmem:[#allocation10 + $0x1a0] sm:$0xff]  ;;  %v1035_v51 = vld [vmem:[#allocation10 + $0x1b0] sm:$0xff] }
 0x187   : > { %1180 = vmatprep.mubr.f32.mxu1 %v1900_v57  ;;  %v1681_v57 = vpack.c.bf16 %v1011_v0, %v1007_v48  ;;  %v1691_v50 = vpack.c.bf16 %v1036_v38, %v1032_v37  ;;  %v1038_v52 = vld [vmem:[#allocation10 + $0x1c8] sm:$0xff]  ;;  %v1040_v54 = vld [vmem:[#allocation10 + $0x1d8] sm:$0xff]  ;;  %v1037_v60 = vld [vmem:[#allocation10 + $0x1c0] sm:$0xff] }
 0x188   : > { %1642 = vmatpush1.bf16.msra.mxu0 %v1641_v56  ;;  %v1042_v53 = vld [vmem:[#allocation10 + $0x1e8] sm:$0xff]  ;;  %v1044_v55 = vld [vmem:[#allocation10 + $0x1f8] sm:$0xff]  ;;  %v1661_v56 = vpack.c.bf16 %v1033_v43, %v1029_v42  ;;  %v1041_v61 = vld [vmem:[#allocation10 + $0x1e0] sm:$0xff] }
 0x189   : > { %1674 = vmatpush1.bf16.msra.mxu1 %v1673_v58  ;;  %1644 = vmatprep.subr.bf16.mxu0 %v1643_v59  ;;  %v1693_v58 = vpack.c.bf16 %v1035_v51, %v1031_v44  ;;  %v1663_v59 = vpack.c.bf16 %v1042_v53, %v1038_v52  ;;  %v1695_v62 = vpack.c.bf16 %v1044_v55, %v1040_v54  ;;  %v1043_v1 = vld [vmem:[#allocation10 + $0x1f0] sm:$0xff]  ;;  %v980_v34 = vld [vmem:[%s979_s14] sm:$0xff] }
 0x18a   : > { %1676 = vmatprep.subr.bf16.mxu1 %v1675_v63  ;;  %v1039_v63 = vld [vmem:[#allocation10 + $0x1d0] sm:$0xff]  ;;  %v1665_v2 = vpack.c.bf16 %v1041_v61, %v1037_v60 }
 0x18b   : > { %v1697_v3 = vpack.c.bf16 %v1043_v1, %v1039_v63 }
 0x18c   : > { %1646 = vmatpush1.bf16.msra.mxu0 %v1645_v49 }
 0x18d   : > { %1678 = vmatpush1.bf16.msra.mxu1 %v1677_v6  ;;  %1648 = vmatprep.subr.bf16.mxu0 %v1647_v7 }
 0x18e   : > { %1680 = vmatprep.subr.bf16.mxu1 %v1679_v13  ;;  %v747_v13 = vld [vmem:[%s746_s11] sm:$0xff] }
 0x190   : > { %1650 = vmatpush1.bf16.msra.mxu0 %v1649_v8 }
 0x191   : > { %1682 = vmatpush1.bf16.msra.mxu1 %v1681_v57  ;;  %1652 = vmatprep.subr.bf16.mxu0 %v1651_v17 }
 0x192   : > { %1684 = vmatprep.subr.bf16.mxu1 %v1683_v21 }
 0x194   : > { %1654 = vmatpush1.bf16.msra.mxu0 %v1653_v27 }
 0x195   : > { %1686 = vmatpush1.bf16.msra.mxu1 %v1685_v28  ;;  %1656 = vmatprep.subr.bf16.mxu0 %v1655_v29 }
 0x196   : > { %1688 = vmatprep.subr.bf16.mxu1 %v1687_v33 }
 0x198   : > { %1658 = vmatpush1.bf16.msra.mxu0 %v1657_v39 }
 0x199   : > { %1690 = vmatpush1.bf16.msra.mxu1 %v1689_v40  ;;  %1660 = vmatprep.subr.bf16.mxu0 %v1659_v41 }
 0x19a   : > { %1692 = vmatprep.subr.bf16.mxu1 %v1691_v50 }
 0x19c   : > { %1662 = vmatpush1.bf16.msra.mxu0 %v1661_v56 }
 0x19d   : > { %1694 = vmatpush1.bf16.msra.mxu1 %v1693_v58  ;;  %1664 = vmatprep.subr.bf16.mxu0 %v1663_v59 }
 0x19e   : > { %1696 = vmatprep.subr.bf16.mxu1 %v1695_v62 }
 0x1a0   : > { %1666 = vmatpush1.bf16.msra.mxu0 %v1665_v2 }
 0x1a1   : > { %1698 = vmatpush1.bf16.msra.mxu1 %v1697_v3 }
 0x1a3   : > { %1110 = vmatmul.mubr.f32.vlgmr.msra.gmra.mrb[2].mxu0 %v1877_v46 }
 0x1a4   : > { %1181 = vmatmul.mubr.f32.vlgmr.msra.gmra.mrb[2].mxu1 %v1877_v46 }
 0x256   : > { %v878_v4 = vpop.f32.mrb[0].mxu0 }
 0x257   : > { %v949_v5 = vpop.f32.mrb[0].mxu1  ;;  %v880_v49 = vpop.f32.mrb[1].mxu0 }
 0x258   : > { %v958_v6 = vcombine.low %v878_v4, %v880_v49  ;;  %v951_v7 = vpop.f32.mrb[1].mxu1 }
 0x259   : > { %v959_v9 = vcombine.low %v949_v5, %v951_v7 }
 0x25a   : > { %v966_v12 = vrot.slane %v958_v6, %v2015_v23 }
 0x25b   : > { %v973_v48 = vrot.slane %v959_v9, %v2015_v23 }
 0x25d   : > { %v974_v0 = vcombine.low %v966_v12, %v973_v48 }
 0x25f   : > { %v976_v14 = vadd.f32 %v974_v0, %v747_v13 }
 0x261   : > { %v1425_v11 = vmul.f32 -1.442695, %v976_v14  ;;  %v1217_v15 = vrot.slane %v976_v14, 2  ;;  %v1228_v16 = vrot.slane %v976_v14, 6  ;;  %v1225_v17 = vrot.slane %v976_v14, 4 }
 0x263   : > { %1749 = vpow2.f32 %v1425_v11  ;;  %v1426_v46 = vmul.f32 -1.442695, %v1217_v15  ;;  %v1427_v8 = vmul.f32 -1.442695, %v1228_v16 }
 0x265   : > { %1751 = vpow2.f32 %v1426_v46 }
 0x266   : > { %1753 = vpow2.f32 %v1427_v8 }
 0x26d   : > { %v1750_v57 = vpop.eup %1749 }
 0x26e   : > { %v1213_v18 = vadd.f32 1.0, %v1750_v57 }
 0x26f   : > { %v1752_v19 = vpop.eup %1751 }
 0x270   : > { %1755 = vrcp.f32 %v1213_v18  ;;  %v1222_v20 = vadd.f32 1.0, %v1752_v19  ;;  %v1754_v26 = vpop.eup %1753 }
 0x271   : > { %1757 = vtanh.f32 %v1225_v17  ;;  %v1233_v33 = vadd.f32 1.0, %v1754_v26 }
 0x272   : > { %1759 = vrcp.f32 %v1222_v20 }
 0x273   : > { %1761 = vrcp.f32 %v1233_v33 }
 0x276   : > { %v1111_v21 = vpop.f32.mrb[2].mxu0 }
 0x277   : > { %v1182_v10 = vpop.f32.mrb[2].mxu1  ;;  %v1113_v22 = vpop.f32.mrb[3].mxu0 }
 0x278   : > { %v1191_v24 = vcombine.low %v1111_v21, %v1113_v22  ;;  %v1184_v25 = vpop.f32.mrb[3].mxu1 }
 0x279   : > { %v1192_v27 = vcombine.low %v1182_v10, %v1184_v25 }
 0x27a   : > { %v1756_v28 = vpop.eup %1755  ;;  %v1199_v29 = vrot.slane %v1191_v24, %v2015_v23 }
 0x27b   : > { %v1758_v30 = vpop.eup %1757  ;;  %v1206_v31 = vrot.slane %v1192_v27, %v2015_v23 }
 0x27c   : > { %v1760_v32 = vpop.eup %1759  ;;  %v1237_v36 = vmul.f32 %v1758_v30, %v1756_v28 }
 0x27d   : > { %v1236_v35 = vmul.f32 %v1881_v47, %v1760_v32  ;;  %v1207_v37 = vcombine.low %v1199_v29, %v1206_v31  ;;  %v1762_v43 = vpop.eup %1761 }
 0x27f   : > { %v1238_v47 = vadd.f32 %v1237_v36, %v1236_v35   ;;  %v1209_v38 = vadd.f32 %v1207_v37, %v980_v34 }
 0x281   : > { %1763 = vtanh.f32 %v1238_v47  ;;  %v1428_v39 = vmul.f32 -1.442695, %v1209_v38  ;;  %v1248_v40 = vrot.slane %v1209_v38, 2  ;;  %v1259_v42 = vrot.slane %v1209_v38, 6 }
 0x282   : > { %v1256_v52 = vrot.slane %v1209_v38, 4 }
 0x283   : > { %1765 = vpow2.f32 %v1428_v39  ;;  %v1429_v41 = vmul.f32 -1.442695, %v1248_v40  ;;  %v1430_v50 = vmul.f32 -1.442695, %v1259_v42 }
 0x285   : > { %1767 = vpow2.f32 %v1429_v41 }
 0x286   : > { %1769 = vpow2.f32 %v1430_v50 }
 0x28b   : > { %v1764_v44 = vpop.eup %1763 }
 0x28c   : > { %v1240_v49 = vmul.f32 %v1764_v44, %v1762_v43  }
 0x28d   : > { %v1766_v51 = vpop.eup %1765 }
 0x28e   : > { %1274 = vst [vmem:[%s1273_s16] sm:$0x3] %v1240_v49  ;;  %v1244_v53 = vadd.f32 1.0, %v1766_v51 }
 0x28f   : > { %v1768_v54 = vpop.eup %1767 }
 0x290   : > { %1771 = vrcp.f32 %v1244_v53  ;;  %v1253_v55 = vadd.f32 1.0, %v1768_v54  ;;  %v1770_v56 = vpop.eup %1769 }
 0x291   : > { %1773 = vtanh.f32 %v1256_v52  ;;  %v1264_v61 = vadd.f32 1.0, %v1770_v56 }
 0x292   : > { %1775 = vrcp.f32 %v1253_v55 }
 0x293   : > { %1777 = vrcp.f32 %v1264_v61 }
 0x295   :  { %v1278_v3 = vld [vmem:[#allocation4] sm:$0x3] (%p735_p10)  ;;  %v1279_v5 = vld [vmem:[#allocation4 + $0x2] sm:$0x3] (%p735_p10)  ;;  %v1280_v9 = vld [vmem:[#allocation4 + $0x4] sm:$0x3] (%p735_p10) }
 0x296   :  { %v1281_v0 = vld [vmem:[#allocation4 + $0x6] sm:$0x3] (%p735_p10)  ;;  %v1282_v11 = vld [vmem:[#allocation4 + $0x8] sm:$0x3] (%p735_p10)  ;;  %v1283_v16 = vld [vmem:[#allocation4 + $0xa] sm:$0x3] (%p735_p10) }
 0x297   :  { %v1284_v47 = vld [vmem:[#allocation4 + $0xc] sm:$0x3] (%p735_p10)  ;;  %v1285_v57 = vld [vmem:[#allocation4 + $0xe] sm:$0x3] (%p735_p10) }
 0x29a   : > { %v1772_v58 = vpop.eup %1771 }
 0x29b   : > { %v1774_v59 = vpop.eup %1773 }
 0x29c   : > { %v1776_v60 = vpop.eup %1775  ;;  %v1268_v63 = vmul.f32 %v1774_v59, %v1772_v58 }
 0x29d   : > { %v1267_v62 = vmul.f32 %v1873_v45, %v1776_v60  ;;  %v1778_v1 = vpop.eup %1777 }
 0x29f   : > { %v1269_v45 = vadd.f32 %v1268_v63, %v1267_v62  }
 0x2a1   : > { %1779 = vtanh.f32 %v1269_v45 }
 0x2a8   :  { %737 = sbr.rel (!%p735_p10) target bundleno = 351 (0x15f), region = 63 }
 0x2ab   : > { %v1780_v2 = vpop.eup %1779 }
 0x2ac   : > { %v1271_v46 = vmul.f32 %v1780_v2, %v1778_v1  }
 0x2ae   : > { %1277 = vst [vmem:[%s1276_s17] sm:$0x3] %v1271_v46 }
 0x2b5   :  { %v1286_v4 = vld [vmem:[#allocation5] sm:$0x3]  ;;  %v1287_v7 = vld [vmem:[#allocation5 + $0x2] sm:$0x3]  ;;  %v1288_v12 = vld [vmem:[#allocation5 + $0x4] sm:$0x3] }
 0x2b6   :  { %v1310_v6 = vcombine.low %v1278_v3, %v1286_v4  ;;  %v1318_v48 = vcombine.low %v1279_v5, %v1287_v7  ;;  %v1326_v13 = vcombine.low %v1280_v9, %v1288_v12  ;;  %v1289_v14 = vld [vmem:[#allocation5 + $0x6] sm:$0x3]  ;;  %v1290_v15 = vld [vmem:[#allocation5 + $0x8] sm:$0x3]  ;;  %v1291_v8 = vld [vmem:[#allocation5 + $0xa] sm:$0x3] }
 0x2b7   :  { %v1334_v49 = vcombine.low %v1281_v0, %v1289_v14  ;;  %v1342_v23 = vcombine.low %v1282_v11, %v1290_v15  ;;  %v1350_v45 = vcombine.low %v1283_v16, %v1291_v8  ;;  %v1292_v46 = vld [vmem:[#allocation5 + $0xc] sm:$0x3]  ;;  %v1293_v18 = vld [vmem:[#allocation5 + $0xe] sm:$0x3] }
 0x2b8   :  { %1433 = vst.sshfl [vmem:[%s2127_s5] sm:$0x33 pattern:$0x76325410] %v1310_v6  ;;  %v1358_v17 = vcombine.low %v1284_v47, %v1292_v46  ;;  %v1366_v19 = vcombine.low %v1285_v57, %v1293_v18 }
 0x2b9   :  { %1434 = vst.sshfl [vmem:[%s2127_s5 + $0x4] sm:$0x33 pattern:$0x76325410] %v1318_v48 }
 0x2ba   :  { %1435 = vst.sshfl [vmem:[%s2127_s5 + $0x8] sm:$0x33 pattern:$0x76325410] %v1326_v13 }
 0x2bb   :  { %1436 = vst.sshfl [vmem:[%s2127_s5 + $0xc] sm:$0x33 pattern:$0x76325410] %v1334_v49 }
 0x2bc   :  { %1437 = vst.sshfl [vmem:[%s2127_s5 + $0x10] sm:$0x33 pattern:$0x76325410] %v1342_v23 }
 0x2bd   :  { %1438 = vst.sshfl [vmem:[%s2127_s5 + $0x14] sm:$0x33 pattern:$0x76325410] %v1350_v45 }
 0x2be   :  { %1439 = vst.sshfl [vmem:[%s2127_s5 + $0x18] sm:$0x33 pattern:$0x76325410] %v1358_v17 }
 0x2bf   :  { %1440 = vst.sshfl [vmem:[%s2127_s5 + $0x1c] sm:$0x33 pattern:$0x76325410] %v1366_v19 }
 0x2c0   :  { %1394 = vsyncpa [#allocation7], 1 }
 0x2c1   :  { %1395 = vsyncpa [#allocation9], 1 }

// kernel: bilstm_crf_forward.4
= control target key start
LH: loop header
LB: loop body
LE: loop exit
PB: predicated region body
PF: predicated region fallthrough
CT: control target
= control target key end

     0   :  { %s3366_s1 = inlined_call_operand.vmem [shape: f32[256,1024], index: 1, kind: input, shape index: {}]   ;;  %s3367_s2 = inlined_call_operand.vmem [shape: f32[128,512], index: 2, kind: input, shape index: {}]   ;;  %s3368_s3 = inlined_call_operand.vmem [shape: f32[128,512], index: 3, kind: input, shape index: {}]   ;;  %s3369_s5 = inlined_call_operand.vmem [shape: f32[8,2,256], index: 5, kind: output, shape index: {}]   ;;  %s3370_s0 = inlined_call_operand.vmem [shape: f32[16,256], index: 0, kind: input, shape index: {}]   ;;  %s3371_s4 = inlined_call_operand.vmem [shape: f32[1,1024], index: 4, kind: input, shape index: {}]  }
   0x1   :  { %v25_v0 = vld [vmem:[%s3366_s1 + $0x8] sm:$0xff]  ;;  %v27_v2 = vld [vmem:[%s3366_s1 + $0x18] sm:$0xff]  ;;  %v24_v5 = vld [vmem:[%s3366_s1] sm:$0xff] }
   0x2   :  { %v33_v1 = vld [vmem:[%s3366_s1 + $0x48] sm:$0xff]  ;;  %v35_v4 = vld [vmem:[%s3366_s1 + $0x58] sm:$0xff]  ;;  %v32_v6 = vld [vmem:[%s3366_s1 + $0x40] sm:$0xff] }
   0x3   :  { %v1530_v3 = vpack.c.bf16 %v33_v1, %v25_v0  ;;  %v1594_v7 = vpack.c.bf16 %v35_v4, %v27_v2  ;;  %v1532_v8 = vpack.c.bf16 %v32_v6, %v24_v5  ;;  %v26_v9 = vld [vmem:[%s3366_s1 + $0x10] sm:$0xff]  ;;  %v41_v11 = vld [vmem:[%s3366_s1 + $0x88] sm:$0xff]  ;;  %v43_v14 = vld [vmem:[%s3366_s1 + $0x98] sm:$0xff] }
   0x4   :  { %v34_v10 = vld [vmem:[%s3366_s1 + $0x50] sm:$0xff]  ;;  %v49_v13 = vld [vmem:[%s3366_s1 + $0xc8] sm:$0xff]  ;;  %v51_v15 = vld [vmem:[%s3366_s1 + $0xd8] sm:$0xff] }
   0x5   :  { %1531 = vmatprep.subr.bf16.mxu0 %v1530_v3  ;;  %v1596_v12 = vpack.c.bf16 %v34_v10, %v26_v9  ;;  %1595 = vmatprep.subr.bf16.mxu1 %v1594_v7  ;;  %v1534_v16 = vpack.c.bf16 %v49_v13, %v41_v11  ;;  %v1598_v17 = vpack.c.bf16 %v51_v15, %v43_v14  ;;  %v40_v18 = vld [vmem:[%s3366_s1 + $0x80] sm:$0xff]  ;;  %v42_v20 = vld [vmem:[%s3366_s1 + $0x90] sm:$0xff]  ;;  %v57_v23 = vld [vmem:[%s3366_s1 + $0x108] sm:$0xff] }
   0x6   :  { %1533 = vmatpush1.bf16.msra.mxu0 %v1532_v8  ;;  %v48_v19 = vld [vmem:[%s3366_s1 + $0xc0] sm:$0xff]  ;;  %v50_v22 = vld [vmem:[%s3366_s1 + $0xd0] sm:$0xff]  ;;  %v65_v24 = vld [vmem:[%s3366_s1 + $0x148] sm:$0xff] }
   0x7   :  { %1597 = vmatpush1.bf16.msra.mxu1 %v1596_v12  ;;  %v1536_v21 = vpack.c.bf16 %v48_v19, %v40_v18  ;;  %1535 = vmatprep.subr.bf16.mxu0 %v1534_v16  ;;  %v1600_v25 = vpack.c.bf16 %v50_v22, %v42_v20  ;;  %v1538_v26 = vpack.c.bf16 %v65_v24, %v57_v23  ;;  %v59_v27 = vld [vmem:[%s3366_s1 + $0x118] sm:$0xff]  ;;  %v56_v29 = vld [vmem:[%s3366_s1 + $0x100] sm:$0xff]  ;;  %v58_v32 = vld [vmem:[%s3366_s1 + $0x110] sm:$0xff] }
   0x8   :  { %1599 = vmatprep.subr.bf16.mxu1 %v1598_v17  ;;  %v67_v28 = vld [vmem:[%s3366_s1 + $0x158] sm:$0xff]  ;;  %v64_v31 = vld [vmem:[%s3366_s1 + $0x140] sm:$0xff]  ;;  %v66_v33 = vld [vmem:[%s3366_s1 + $0x150] sm:$0xff] }
   0x9   :  { %v1602_v30 = vpack.c.bf16 %v67_v28, %v59_v27  ;;  %v1540_v34 = vpack.c.bf16 %v64_v31, %v56_v29  ;;  %v73_v35 = vld [vmem:[%s3366_s1 + $0x188] sm:$0xff]  ;;  %v75_v37 = vld [vmem:[%s3366_s1 + $0x198] sm:$0xff]  ;;  %v1604_v38 = vpack.c.bf16 %v66_v33, %v58_v32  ;;  %v72_v41 = vld [vmem:[%s3366_s1 + $0x180] sm:$0xff] }
   0xa   :  { %1537 = vmatpush1.bf16.msra.mxu0 %v1536_v21  ;;  %v81_v36 = vld [vmem:[%s3366_s1 + $0x1c8] sm:$0xff]  ;;  %v83_v40 = vld [vmem:[%s3366_s1 + $0x1d8] sm:$0xff]  ;;  %v80_v42 = vld [vmem:[%s3366_s1 + $0x1c0] sm:$0xff] }
   0xb   :  { %1601 = vmatpush1.bf16.msra.mxu1 %v1600_v25  ;;  %1539 = vmatprep.subr.bf16.mxu0 %v1538_v26  ;;  %v1542_v39 = vpack.c.bf16 %v81_v36, %v73_v35  ;;  %v1606_v43 = vpack.c.bf16 %v83_v40, %v75_v37  ;;  %v74_v44 = vld [vmem:[%s3366_s1 + $0x190] sm:$0xff]  ;;  %v89_v46 = vld [vmem:[%s3366_s1 + $0x208] sm:$0xff]  ;;  %v91_v48 = vld [vmem:[%s3366_s1 + $0x218] sm:$0xff]  ;;  %v1544_v50 = vpack.c.bf16 %v80_v42, %v72_v41 }
   0xc   :  { %1603 = vmatprep.subr.bf16.mxu1 %v1602_v30  ;;  %v82_v45 = vld [vmem:[%s3366_s1 + $0x1d0] sm:$0xff]  ;;  %v97_v47 = vld [vmem:[%s3366_s1 + $0x248] sm:$0xff]  ;;  %v99_v49 = vld [vmem:[%s3366_s1 + $0x258] sm:$0xff] }
   0xd   :  { %v1608_v51 = vpack.c.bf16 %v82_v45, %v74_v44  ;;  %v1546_v52 = vpack.c.bf16 %v97_v47, %v89_v46  ;;  %v88_v53 = vld [vmem:[%s3366_s1 + $0x200] sm:$0xff]  ;;  %v90_v55 = vld [vmem:[%s3366_s1 + $0x210] sm:$0xff]  ;;  %v1610_v56 = vpack.c.bf16 %v99_v49, %v91_v48  ;;  %v105_v58 = vld [vmem:[%s3366_s1 + $0x288] sm:$0xff] }
   0xe   :  { %1541 = vmatpush1.bf16.msra.mxu0 %v1540_v34  ;;  %v96_v54 = vld [vmem:[%s3366_s1 + $0x240] sm:$0xff]  ;;  %v98_v57 = vld [vmem:[%s3366_s1 + $0x250] sm:$0xff]  ;;  %v113_v59 = vld [vmem:[%s3366_s1 + $0x2c8] sm:$0xff] }
   0xf   :  { %1605 = vmatpush1.bf16.msra.mxu1 %v1604_v38  ;;  %1543 = vmatprep.subr.bf16.mxu0 %v1542_v39  ;;  %v107_v60 = vld [vmem:[%s3366_s1 + $0x298] sm:$0xff]  ;;  %v1548_v62 = vpack.c.bf16 %v96_v54, %v88_v53  ;;  %v1612_v63 = vpack.c.bf16 %v98_v57, %v90_v55  ;;  %v1550_v0 = vpack.c.bf16 %v113_v59, %v105_v58  ;;  %v104_v1 = vld [vmem:[%s3366_s1 + $0x280] sm:$0xff]  ;;  %v106_v3 = vld [vmem:[%s3366_s1 + $0x290] sm:$0xff] }
  0x10   :  { %1607 = vmatprep.subr.bf16.mxu1 %v1606_v43  ;;  %v115_v61 = vld [vmem:[%s3366_s1 + $0x2d8] sm:$0xff]  ;;  %v112_v2 = vld [vmem:[%s3366_s1 + $0x2c0] sm:$0xff]  ;;  %v114_v5 = vld [vmem:[%s3366_s1 + $0x2d0] sm:$0xff] }
  0x11   :  { %v1614_v4 = vpack.c.bf16 %v115_v61, %v107_v60  ;;  %v121_v6 = vld [vmem:[%s3366_s1 + $0x308] sm:$0xff]  ;;  %v123_v8 = vld [vmem:[%s3366_s1 + $0x318] sm:$0xff]  ;;  %v1552_v10 = vpack.c.bf16 %v112_v2, %v104_v1  ;;  %v1616_v11 = vpack.c.bf16 %v114_v5, %v106_v3  ;;  %v120_v13 = vld [vmem:[%s3366_s1 + $0x300] sm:$0xff] }
  0x12   :  { %1545 = vmatpush1.bf16.msra.mxu0 %v1544_v50  ;;  %v129_v7 = vld [vmem:[%s3366_s1 + $0x348] sm:$0xff]  ;;  %v131_v9 = vld [vmem:[%s3366_s1 + $0x358] sm:$0xff]  ;;  %v128_v14 = vld [vmem:[%s3366_s1 + $0x340] sm:$0xff] }
  0x13   :  { %1609 = vmatpush1.bf16.msra.mxu1 %v1608_v51  ;;  %1547 = vmatprep.subr.bf16.mxu0 %v1546_v52  ;;  %v1554_v12 = vpack.c.bf16 %v129_v7, %v121_v6  ;;  %v122_v15 = vld [vmem:[%s3366_s1 + $0x310] sm:$0xff]  ;;  %v1618_v16 = vpack.c.bf16 %v131_v9, %v123_v8  ;;  %v137_v18 = vld [vmem:[%s3366_s1 + $0x388] sm:$0xff]  ;;  %v139_v20 = vld [vmem:[%s3366_s1 + $0x398] sm:$0xff]  ;;  %v1556_v22 = vpack.c.bf16 %v128_v14, %v120_v13 }
  0x14   :  { %1611 = vmatprep.subr.bf16.mxu1 %v1610_v56  ;;  %v130_v17 = vld [vmem:[%s3366_s1 + $0x350] sm:$0xff]  ;;  %v145_v19 = vld [vmem:[%s3366_s1 + $0x3c8] sm:$0xff]  ;;  %v147_v21 = vld [vmem:[%s3366_s1 + $0x3d8] sm:$0xff] }
  0x15   :  { %v1620_v23 = vpack.c.bf16 %v130_v17, %v122_v15  ;;  %v1558_v24 = vpack.c.bf16 %v145_v19, %v137_v18  ;;  %v136_v25 = vld [vmem:[%s3366_s1 + $0x380] sm:$0xff]  ;;  %v138_v27 = vld [vmem:[%s3366_s1 + $0x390] sm:$0xff]  ;;  %v1622_v28 = vpack.c.bf16 %v147_v21, %v139_v20  ;;  %v153_v30 = vld [vmem:[%s3366_s1 + $0x408] sm:$0xff] }
  0x16   :  { %1549 = vmatpush1.bf16.msra.mxu0 %v1548_v62  ;;  %v144_v26 = vld [vmem:[%s3366_s1 + $0x3c0] sm:$0xff]  ;;  %v146_v29 = vld [vmem:[%s3366_s1 + $0x3d0] sm:$0xff]  ;;  %v161_v31 = vld [vmem:[%s3366_s1 + $0x448] sm:$0xff] }
  0x17   :  { %1613 = vmatpush1.bf16.msra.mxu1 %v1612_v63  ;;  %1551 = vmatprep.subr.bf16.mxu0 %v1550_v0  ;;  %v155_v32 = vld [vmem:[%s3366_s1 + $0x418] sm:$0xff]  ;;  %v1560_v34 = vpack.c.bf16 %v144_v26, %v136_v25  ;;  %v1624_v35 = vpack.c.bf16 %v146_v29, %v138_v27  ;;  %v1562_v36 = vpack.c.bf16 %v161_v31, %v153_v30  ;;  %v152_v37 = vld [vmem:[%s3366_s1 + $0x400] sm:$0xff]  ;;  %v154_v39 = vld [vmem:[%s3366_s1 + $0x410] sm:$0xff] }
  0x18   :  { %1615 = vmatprep.subr.bf16.mxu1 %v1614_v4  ;;  %v163_v33 = vld [vmem:[%s3366_s1 + $0x458] sm:$0xff]  ;;  %v160_v38 = vld [vmem:[%s3366_s1 + $0x440] sm:$0xff]  ;;  %v162_v41 = vld [vmem:[%s3366_s1 + $0x450] sm:$0xff] }
  0x19   :  { %v1626_v40 = vpack.c.bf16 %v163_v33, %v155_v32  ;;  %v169_v42 = vld [vmem:[%s3366_s1 + $0x488] sm:$0xff]  ;;  %v171_v44 = vld [vmem:[%s3366_s1 + $0x498] sm:$0xff]  ;;  %v1564_v46 = vpack.c.bf16 %v160_v38, %v152_v37  ;;  %v1628_v47 = vpack.c.bf16 %v162_v41, %v154_v39  ;;  %v168_v49 = vld [vmem:[%s3366_s1 + $0x480] sm:$0xff] }
  0x1a   :  { %1553 = vmatpush1.bf16.msra.mxu0 %v1552_v10  ;;  %v177_v43 = vld [vmem:[%s3366_s1 + $0x4c8] sm:$0xff]  ;;  %v179_v45 = vld [vmem:[%s3366_s1 + $0x4d8] sm:$0xff]  ;;  %v176_v50 = vld [vmem:[%s3366_s1 + $0x4c0] sm:$0xff] }
  0x1b   :  { %1617 = vmatpush1.bf16.msra.mxu1 %v1616_v11  ;;  %1555 = vmatprep.subr.bf16.mxu0 %v1554_v12  ;;  %v1566_v48 = vpack.c.bf16 %v177_v43, %v169_v42  ;;  %v170_v51 = vld [vmem:[%s3366_s1 + $0x490] sm:$0xff]  ;;  %v1630_v52 = vpack.c.bf16 %v179_v45, %v171_v44  ;;  %v185_v54 = vld [vmem:[%s3366_s1 + $0x508] sm:$0xff]  ;;  %v187_v56 = vld [vmem:[%s3366_s1 + $0x518] sm:$0xff]  ;;  %v1568_v58 = vpack.c.bf16 %v176_v50, %v168_v49 }
  0x1c   :  { %1619 = vmatprep.subr.bf16.mxu1 %v1618_v16  ;;  %v178_v53 = vld [vmem:[%s3366_s1 + $0x4d0] sm:$0xff]  ;;  %v193_v55 = vld [vmem:[%s3366_s1 + $0x548] sm:$0xff]  ;;  %v195_v57 = vld [vmem:[%s3366_s1 + $0x558] sm:$0xff] }
  0x1d   :  { %v1632_v59 = vpack.c.bf16 %v178_v53, %v170_v51  ;;  %v1570_v60 = vpack.c.bf16 %v193_v55, %v185_v54  ;;  %v184_v61 = vld [vmem:[%s3366_s1 + $0x500] sm:$0xff]  ;;  %v186_v63 = vld [vmem:[%s3366_s1 + $0x510] sm:$0xff]  ;;  %v1634_v0 = vpack.c.bf16 %v195_v57, %v187_v56  ;;  %v201_v2 = vld [vmem:[%s3366_s1 + $0x588] sm:$0xff] }
  0x1e   :  { %1557 = vmatpush1.bf16.msra.mxu0 %v1556_v22  ;;  %v192_v62 = vld [vmem:[%s3366_s1 + $0x540] sm:$0xff]  ;;  %v194_v1 = vld [vmem:[%s3366_s1 + $0x550] sm:$0xff]  ;;  %v209_v3 = vld [vmem:[%s3366_s1 + $0x5c8] sm:$0xff] }
  0x1f   :  { %1621 = vmatpush1.bf16.msra.mxu1 %v1620_v23  ;;  %1559 = vmatprep.subr.bf16.mxu0 %v1558_v24  ;;  %v203_v4 = vld [vmem:[%s3366_s1 + $0x598] sm:$0xff]  ;;  %v1572_v6 = vpack.c.bf16 %v192_v62, %v184_v61  ;;  %v200_v7 = vld [vmem:[%s3366_s1 + $0x580] sm:$0xff]  ;;  %v1636_v8 = vpack.c.bf16 %v194_v1, %v186_v63  ;;  %v1574_v9 = vpack.c.bf16 %v209_v3, %v201_v2  ;;  %v202_v11 = vld [vmem:[%s3366_s1 + $0x590] sm:$0xff] }
  0x20   :  { %1623 = vmatprep.subr.bf16.mxu1 %v1622_v28  ;;  %v211_v5 = vld [vmem:[%s3366_s1 + $0x5d8] sm:$0xff]  ;;  %v208_v10 = vld [vmem:[%s3366_s1 + $0x5c0] sm:$0xff]  ;;  %v210_v12 = vld [vmem:[%s3366_s1 + $0x5d0] sm:$0xff] }
  0x21   :  { %v1638_v13 = vpack.c.bf16 %v211_v5, %v203_v4  ;;  %v217_v14 = vld [vmem:[%s3366_s1 + $0x608] sm:$0xff]  ;;  %v219_v17 = vld [vmem:[%s3366_s1 + $0x618] sm:$0xff]  ;;  %v1576_v19 = vpack.c.bf16 %v208_v10, %v200_v7  ;;  %v1640_v20 = vpack.c.bf16 %v210_v12, %v202_v11  ;;  %v216_v22 = vld [vmem:[%s3366_s1 + $0x600] sm:$0xff] }
  0x22   :  { %1561 = vmatpush1.bf16.msra.mxu0 %v1560_v34  ;;  %v225_v15 = vld [vmem:[%s3366_s1 + $0x648] sm:$0xff]  ;;  %v227_v18 = vld [vmem:[%s3366_s1 + $0x658] sm:$0xff]  ;;  %v224_v23 = vld [vmem:[%s3366_s1 + $0x640] sm:$0xff] }
  0x23   :  { %1625 = vmatpush1.bf16.msra.mxu1 %v1624_v35  ;;  %1563 = vmatprep.subr.bf16.mxu0 %v1562_v36  ;;  %v2357_v16 = vld [vmem:[%s3370_s0 + $0x8] sm:$0xff]  ;;  %v1578_v21 = vpack.c.bf16 %v225_v15, %v217_v14  ;;  %v218_v24 = vld [vmem:[%s3366_s1 + $0x610] sm:$0xff]  ;;  %v1642_v25 = vpack.c.bf16 %v227_v18, %v219_v17  ;;  %v235_v29 = vld [vmem:[%s3366_s1 + $0x698] sm:$0xff]  ;;  %v1580_v31 = vpack.c.bf16 %v224_v23, %v216_v22 }
  0x24   :  { %1627 = vmatprep.subr.bf16.mxu1 %v1626_v40  ;;  %386 = vmatprep.mubr.f32.mxu0 %v2357_v16  ;;  %v226_v26 = vld [vmem:[%s3366_s1 + $0x650] sm:$0xff]  ;;  %v233_v27 = vld [vmem:[%s3366_s1 + $0x688] sm:$0xff]  ;;  %v243_v30 = vld [vmem:[%s3366_s1 + $0x6d8] sm:$0xff] }
  0x25   :  { %463 = vmatprep.mubr.f32.mxu1 %v2357_v16  ;;  %v241_v28 = vld [vmem:[%s3366_s1 + $0x6c8] sm:$0xff]  ;;  %v1644_v32 = vpack.c.bf16 %v226_v26, %v218_v24  ;;  %v232_v34 = vld [vmem:[%s3366_s1 + $0x680] sm:$0xff]  ;;  %v234_v36 = vld [vmem:[%s3366_s1 + $0x690] sm:$0xff]  ;;  %v1646_v37 = vpack.c.bf16 %v243_v30, %v235_v29 }
  0x26   :  { %1565 = vmatpush1.bf16.msra.mxu0 %v1564_v46  ;;  %v1582_v33 = vpack.c.bf16 %v241_v28, %v233_v27  ;;  %v240_v35 = vld [vmem:[%s3366_s1 + $0x6c0] sm:$0xff]  ;;  %v242_v38 = vld [vmem:[%s3366_s1 + $0x6d0] sm:$0xff]  ;;  %v249_v39 = vld [vmem:[%s3366_s1 + $0x708] sm:$0xff] }
  0x27   :  { %1629 = vmatpush1.bf16.msra.mxu1 %v1628_v47  ;;  %1567 = vmatprep.subr.bf16.mxu0 %v1566_v48  ;;  %v257_v40 = vld [vmem:[%s3366_s1 + $0x748] sm:$0xff]  ;;  %v251_v41 = vld [vmem:[%s3366_s1 + $0x718] sm:$0xff]  ;;  %v1584_v43 = vpack.c.bf16 %v240_v35, %v232_v34  ;;  %v1648_v44 = vpack.c.bf16 %v242_v38, %v234_v36  ;;  %v248_v46 = vld [vmem:[%s3366_s1 + $0x700] sm:$0xff] }
  0x28   :  { %1631 = vmatprep.subr.bf16.mxu1 %v1630_v52  ;;  %v259_v42 = vld [vmem:[%s3366_s1 + $0x758] sm:$0xff]  ;;  %v1586_v45 = vpack.c.bf16 %v257_v40, %v249_v39  ;;  %v256_v47 = vld [vmem:[%s3366_s1 + $0x740] sm:$0xff]  ;;  %v250_v48 = vld [vmem:[%s3366_s1 + $0x710] sm:$0xff] }
  0x29   :  { %v1650_v49 = vpack.c.bf16 %v259_v42, %v251_v41  ;;  %v258_v50 = vld [vmem:[%s3366_s1 + $0x750] sm:$0xff]  ;;  %v265_v51 = vld [vmem:[%s3366_s1 + $0x788] sm:$0xff]  ;;  %v267_v53 = vld [vmem:[%s3366_s1 + $0x798] sm:$0xff]  ;;  %v1588_v55 = vpack.c.bf16 %v256_v47, %v248_v46 }
  0x2a   :  { %1569 = vmatpush1.bf16.msra.mxu0 %v1568_v58  ;;  %v273_v52 = vld [vmem:[%s3366_s1 + $0x7c8] sm:$0xff]  ;;  %v275_v54 = vld [vmem:[%s3366_s1 + $0x7d8] sm:$0xff]  ;;  %v1652_v56 = vpack.c.bf16 %v258_v50, %v250_v48  ;;  %v264_v58 = vld [vmem:[%s3366_s1 + $0x780] sm:$0xff] }
  0x2b   :  { %1633 = vmatpush1.bf16.msra.mxu1 %v1632_v59  ;;  %1571 = vmatprep.subr.bf16.mxu0 %v1570_v60  ;;  %v1590_v57 = vpack.c.bf16 %v273_v52, %v265_v51  ;;  %v272_v59 = vld [vmem:[%s3366_s1 + $0x7c0] sm:$0xff]  ;;  %v266_v60 = vld [vmem:[%s3366_s1 + $0x790] sm:$0xff]  ;;  %v1654_v61 = vpack.c.bf16 %v275_v54, %v267_v53  ;;  %v29_v63 = vld [vmem:[%s3366_s1 + $0x28] sm:$0xff] }
  0x2c   :  { %1635 = vmatprep.subr.bf16.mxu1 %v1634_v0  ;;  %v274_v62 = vld [vmem:[%s3366_s1 + $0x7d0] sm:$0xff]  ;;  %v37_v0 = vld [vmem:[%s3366_s1 + $0x68] sm:$0xff]  ;;  %v31_v1 = vld [vmem:[%s3366_s1 + $0x38] sm:$0xff]  ;;  %v1592_v3 = vpack.c.bf16 %v272_v59, %v264_v58 }
  0x2d   :  { %v39_v2 = vld [vmem:[%s3366_s1 + $0x78] sm:$0xff]  ;;  %v1656_v4 = vpack.c.bf16 %v274_v62, %v266_v60  ;;  %v1658_v5 = vpack.c.bf16 %v37_v0, %v29_v63  ;;  %v36_v7 = vld [vmem:[%s3366_s1 + $0x60] sm:$0xff]  ;;  %v38_v10 = vld [vmem:[%s3366_s1 + $0x70] sm:$0xff] }
  0x2e   :  { %1573 = vmatpush1.bf16.msra.mxu0 %v1572_v6  ;;  %v28_v6 = vld [vmem:[%s3366_s1 + $0x20] sm:$0xff]  ;;  %v45_v11 = vld [vmem:[%s3366_s1 + $0xa8] sm:$0xff]  ;;  %v55_v14 = vld [vmem:[%s3366_s1 + $0xf8] sm:$0xff] }
  0x2f   :  { %1637 = vmatpush1.bf16.msra.mxu1 %v1636_v8  ;;  %1575 = vmatprep.subr.bf16.mxu0 %v1574_v9  ;;  %v30_v8 = vld [vmem:[%s3366_s1 + $0x30] sm:$0xff]  ;;  %v1722_v9 = vpack.c.bf16 %v39_v2, %v31_v1  ;;  %v53_v12 = vld [vmem:[%s3366_s1 + $0xe8] sm:$0xff]  ;;  %v2490_v15 = vld [vmem:[%s3370_s0] sm:$0xff]  ;;  %v1660_v17 = vpack.c.bf16 %v36_v7, %v28_v6 }
  0x30   :  { %1639 = vmatprep.subr.bf16.mxu1 %v1638_v13  ;;  %v47_v13 = vld [vmem:[%s3366_s1 + $0xb8] sm:$0xff]  ;;  %v1724_v18 = vpack.c.bf16 %v38_v10, %v30_v8  ;;  %v46_v22 = vld [vmem:[%s3366_s1 + $0xb0] sm:$0xff]  ;;  %v69_v26 = vld [vmem:[%s3366_s1 + $0x168] sm:$0xff] }
  0x31   :  { %v1726_v23 = vpack.c.bf16 %v55_v14, %v47_v13  ;;  %v54_v24 = vld [vmem:[%s3366_s1 + $0xf0] sm:$0xff]  ;;  %v63_v27 = vld [vmem:[%s3366_s1 + $0x138] sm:$0xff]  ;;  %v85_v38 = vld [vmem:[%s3366_s1 + $0x1e8] sm:$0xff] }
  0x32   :  { %1577 = vmatpush1.bf16.msra.mxu0 %v1576_v19  ;;  %v1662_v19 = vpack.c.bf16 %v53_v12, %v45_v11  ;;  %v71_v28 = vld [vmem:[%s3366_s1 + $0x178] sm:$0xff]  ;;  %v1728_v30 = vpack.c.bf16 %v54_v24, %v46_v22  ;;  %v62_v34 = vld [vmem:[%s3366_s1 + $0x130] sm:$0xff]  ;;  %v101_v50 = vld [vmem:[%s3366_s1 + $0x268] sm:$0xff] }
  0x33   :  { %1641 = vmatpush1.bf16.msra.mxu1 %v1640_v20  ;;  %1579 = vmatprep.subr.bf16.mxu0 %v1578_v21  ;;  %v44_v20 = vld [vmem:[%s3366_s1 + $0xa0] sm:$0xff]  ;;  %v1730_v35 = vpack.c.bf16 %v71_v28, %v63_v27  ;;  %v70_v36 = vld [vmem:[%s3366_s1 + $0x170] sm:$0xff]  ;;  %v79_v39 = vld [vmem:[%s3366_s1 + $0x1b8] sm:$0xff] }
  0x34   :  { %1643 = vmatprep.subr.bf16.mxu1 %v1642_v25  ;;  %v52_v21 = vld [vmem:[%s3366_s1 + $0xe0] sm:$0xff]  ;;  %v61_v25 = vld [vmem:[%s3366_s1 + $0x128] sm:$0xff]  ;;  %v87_v40 = vld [vmem:[%s3366_s1 + $0x1f8] sm:$0xff]  ;;  %v1732_v42 = vpack.c.bf16 %v70_v36, %v62_v34 }
  0x35   :  { %v1664_v29 = vpack.c.bf16 %v52_v21, %v44_v20  ;;  %v78_v46 = vld [vmem:[%s3366_s1 + $0x1b0] sm:$0xff]  ;;  %v1734_v47 = vpack.c.bf16 %v87_v40, %v79_v39  ;;  %v95_v51 = vld [vmem:[%s3366_s1 + $0x238] sm:$0xff]  ;;  %v117_v62 = vld [vmem:[%s3366_s1 + $0x2e8] sm:$0xff] }
  0x36   :  { %1581 = vmatpush1.bf16.msra.mxu0 %v1580_v31  ;;  %v1666_v31 = vpack.c.bf16 %v69_v26, %v61_v25  ;;  %v86_v48 = vld [vmem:[%s3366_s1 + $0x1f0] sm:$0xff]  ;;  %v103_v52 = vld [vmem:[%s3366_s1 + $0x278] sm:$0xff]  ;;  %v133_v10 = vld [vmem:[%s3366_s1 + $0x368] sm:$0xff] }
  0x37   :  { %1645 = vmatpush1.bf16.msra.mxu1 %v1644_v32  ;;  %1583 = vmatprep.subr.bf16.mxu0 %v1582_v33  ;;  %v60_v32 = vld [vmem:[%s3366_s1 + $0x120] sm:$0xff]  ;;  %v1736_v54 = vpack.c.bf16 %v86_v48, %v78_v46  ;;  %v94_v58 = vld [vmem:[%s3366_s1 + $0x230] sm:$0xff]  ;;  %v1738_v59 = vpack.c.bf16 %v103_v52, %v95_v51  ;;  %v111_v63 = vld [vmem:[%s3366_s1 + $0x2b8] sm:$0xff] }
  0x38   :  { %1647 = vmatprep.subr.bf16.mxu1 %v1646_v37  ;;  %v68_v33 = vld [vmem:[%s3366_s1 + $0x160] sm:$0xff]  ;;  %v77_v37 = vld [vmem:[%s3366_s1 + $0x1a8] sm:$0xff]  ;;  %v102_v60 = vld [vmem:[%s3366_s1 + $0x270] sm:$0xff] }
  0x39   :  { %v1668_v41 = vpack.c.bf16 %v68_v33, %v60_v32  ;;  %v119_v0 = vld [vmem:[%s3366_s1 + $0x2f8] sm:$0xff]  ;;  %v1740_v2 = vpack.c.bf16 %v102_v60, %v94_v58  ;;  %v110_v6 = vld [vmem:[%s3366_s1 + $0x2b0] sm:$0xff]  ;;  %v124_v20 = vld [vmem:[%s3366_s1 + $0x320] sm:$0xff] }
  0x3a   :  { %1585 = vmatpush1.bf16.msra.mxu0 %v1584_v43  ;;  %v1670_v43 = vpack.c.bf16 %v85_v38, %v77_v37  ;;  %v1742_v7 = vpack.c.bf16 %v119_v0, %v111_v63  ;;  %v118_v8 = vld [vmem:[%s3366_s1 + $0x2f0] sm:$0xff]  ;;  %v127_v11 = vld [vmem:[%s3366_s1 + $0x338] sm:$0xff]  ;;  %v132_v21 = vld [vmem:[%s3366_s1 + $0x360] sm:$0xff] }
  0x3b   :  { %1649 = vmatpush1.bf16.msra.mxu1 %v1648_v44  ;;  %1587 = vmatprep.subr.bf16.mxu0 %v1586_v45  ;;  %v76_v44 = vld [vmem:[%s3366_s1 + $0x1a0] sm:$0xff]  ;;  %v135_v12 = vld [vmem:[%s3366_s1 + $0x378] sm:$0xff]  ;;  %v126_v22 = vld [vmem:[%s3366_s1 + $0x330] sm:$0xff] }
  0x3c   :  { %1651 = vmatprep.subr.bf16.mxu1 %v1650_v49  ;;  %v84_v45 = vld [vmem:[%s3366_s1 + $0x1e0] sm:$0xff]  ;;  %v93_v49 = vld [vmem:[%s3366_s1 + $0x228] sm:$0xff]  ;;  %v2617_v13 = vld [vmem:[%s3370_s0 + $0x18] sm:$0xff] }
  0x3d   :  { %v1672_v53 = vpack.c.bf16 %v84_v45, %v76_v44  ;;  %v134_v24 = vld [vmem:[%s3366_s1 + $0x370] sm:$0xff]  ;;  %v141_v25 = vld [vmem:[%s3366_s1 + $0x3a8] sm:$0xff]  ;;  %v143_v27 = vld [vmem:[%s3366_s1 + $0x3b8] sm:$0xff] }
  0x3e   :  { %1589 = vmatpush1.bf16.msra.mxu0 %v1588_v55  ;;  %v1674_v55 = vpack.c.bf16 %v101_v50, %v93_v49  ;;  %v149_v26 = vld [vmem:[%s3366_s1 + $0x3e8] sm:$0xff]  ;;  %v151_v28 = vld [vmem:[%s3366_s1 + $0x3f8] sm:$0xff]  ;;  %v140_v32 = vld [vmem:[%s3366_s1 + $0x3a0] sm:$0xff] }
  0x3f   :  { %1653 = vmatpush1.bf16.msra.mxu1 %v1652_v56  ;;  %1591 = vmatprep.subr.bf16.mxu0 %v1590_v57  ;;  %v92_v56 = vld [vmem:[%s3366_s1 + $0x220] sm:$0xff]  ;;  %v142_v34 = vld [vmem:[%s3366_s1 + $0x3b0] sm:$0xff]  ;;  %v157_v37 = vld [vmem:[%s3366_s1 + $0x428] sm:$0xff] }
  0x40   :  { %1655 = vmatprep.subr.bf16.mxu1 %v1654_v61  ;;  %v100_v57 = vld [vmem:[%s3366_s1 + $0x260] sm:$0xff]  ;;  %v109_v61 = vld [vmem:[%s3366_s1 + $0x2a8] sm:$0xff]  ;;  %v150_v36 = vld [vmem:[%s3366_s1 + $0x3f0] sm:$0xff] }
  0x41   :  { %v1676_v1 = vpack.c.bf16 %v100_v57, %v92_v56  ;;  %v148_v33 = vld [vmem:[%s3366_s1 + $0x3e0] sm:$0xff]  ;;  %v165_v38 = vld [vmem:[%s3366_s1 + $0x468] sm:$0xff]  ;;  %v159_v39 = vld [vmem:[%s3366_s1 + $0x438] sm:$0xff] }
  0x42   :  { %1593 = vmatpush1.bf16.msra.mxu0 %v1592_v3  ;;  %v1678_v3 = vpack.c.bf16 %v117_v62, %v109_v61  ;;  %v167_v40 = vld [vmem:[%s3366_s1 + $0x478] sm:$0xff]  ;;  %v156_v44 = vld [vmem:[%s3366_s1 + $0x420] sm:$0xff]  ;;  %v158_v45 = vld [vmem:[%s3366_s1 + $0x430] sm:$0xff] }
  0x43   :  { %1657 = vmatpush1.bf16.msra.mxu1 %v1656_v4  ;;  %1659 = vmatprep.subr.bf16.mxu0 %v1658_v5  ;;  %v108_v4 = vld [vmem:[%s3366_s1 + $0x2a0] sm:$0xff]  ;;  %v1754_v46 = vpack.c.bf16 %v167_v40, %v159_v39  ;;  %v173_v48 = vld [vmem:[%s3366_s1 + $0x4a8] sm:$0xff]  ;;  %v175_v50 = vld [vmem:[%s3366_s1 + $0x4b8] sm:$0xff] }
  0x44   :  { %1723 = vmatprep.subr.bf16.mxu1 %v1722_v9  ;;  %v116_v5 = vld [vmem:[%s3366_s1 + $0x2e0] sm:$0xff]  ;;  %v125_v9 = vld [vmem:[%s3366_s1 + $0x328] sm:$0xff]  ;;  %v183_v51 = vld [vmem:[%s3366_s1 + $0x4f8] sm:$0xff] }
  0x45   :  { %387 = vmatmul.mubr.f32.vlgmr.msra.gmra.mrb[0].mxu0 %v2490_v15  ;;  %v1680_v14 = vpack.c.bf16 %v116_v5, %v108_v4  ;;  %v181_v49 = vld [vmem:[%s3366_s1 + $0x4e8] sm:$0xff]  ;;  %v180_v56 = vld [vmem:[%s3366_s1 + $0x4e0] sm:$0xff]  ;;  %v174_v57 = vld [vmem:[%s3366_s1 + $0x4b0] sm:$0xff]  ;;  %v1758_v58 = vpack.c.bf16 %v183_v51, %v175_v50 }
  0x46   :  { %464 = vmatmul.mubr.f32.vlgmr.msra.gmra.mrb[0].mxu1 %v2490_v15  ;;  %1661 = vmatpush1.bf16.msra.mxu0 %v1660_v17  ;;  %v2623_v17 = vld [vmem:[%s3370_s0 + $0x10] sm:$0xff]  ;;  %v189_v60 = vld [vmem:[%s3366_s1 + $0x528] sm:$0xff]  ;;  %v191_v62 = vld [vmem:[%s3366_s1 + $0x538] sm:$0xff] }
  0x47   :  { %1725 = vmatpush1.bf16.msra.mxu1 %v1724_v18  ;;  %1663 = vmatprep.subr.bf16.mxu0 %v1662_v19  ;;  %v1744_v18 = vpack.c.bf16 %v118_v8, %v110_v6  ;;  %v1682_v19 = vpack.c.bf16 %v133_v10, %v125_v9  ;;  %v197_v61 = vld [vmem:[%s3366_s1 + $0x568] sm:$0xff]  ;;  %v199_v63 = vld [vmem:[%s3366_s1 + $0x578] sm:$0xff]  ;;  %v196_v4 = vld [vmem:[%s3366_s1 + $0x560] sm:$0xff] }
  0x48   :  { %1727 = vmatprep.subr.bf16.mxu1 %v1726_v23  ;;  %392 = vmatprep.mubr.f32.mxu0 %v2617_v13  ;;  %v1746_v23 = vpack.c.bf16 %v135_v12, %v127_v11  ;;  %v190_v5 = vld [vmem:[%s3366_s1 + $0x530] sm:$0xff]  ;;  %v1762_v6 = vpack.c.bf16 %v199_v63, %v191_v62  ;;  %v205_v8 = vld [vmem:[%s3366_s1 + $0x5a8] sm:$0xff]  ;;  %v207_v10 = vld [vmem:[%s3366_s1 + $0x5b8] sm:$0xff] }
  0x49   :  { %469 = vmatprep.mubr.f32.mxu1 %v2617_v13  ;;  %393 = vmatmul.mubr.f32.gmra.mrb[2].mxu0 %v2623_v17  ;;  %v213_v9 = vld [vmem:[%s3366_s1 + $0x5e8] sm:$0xff]  ;;  %v215_v11 = vld [vmem:[%s3366_s1 + $0x5f8] sm:$0xff] }
  0x4a   :  { %1665 = vmatpush1.bf16.msra.mxu0 %v1664_v29  ;;  %470 = vmatmul.mubr.f32.gmra.mrb[2].mxu1 %v2623_v17  ;;  %v1684_v29 = vpack.c.bf16 %v132_v21, %v124_v20  ;;  %v212_v20 = vld [vmem:[%s3366_s1 + $0x5e0] sm:$0xff]  ;;  %v206_v21 = vld [vmem:[%s3366_s1 + $0x5b0] sm:$0xff]  ;;  %v247_v39 = vld [vmem:[%s3366_s1 + $0x6f8] sm:$0xff] }
  0x4b   :  { %1729 = vmatpush1.bf16.msra.mxu1 %v1728_v30  ;;  %1667 = vmatprep.subr.bf16.mxu0 %v1666_v31  ;;  %v1748_v30 = vpack.c.bf16 %v134_v24, %v126_v22  ;;  %v1686_v31 = vpack.c.bf16 %v149_v26, %v141_v25  ;;  %v1766_v22 = vpack.c.bf16 %v215_v11, %v207_v10  ;;  %v221_v24 = vld [vmem:[%s3366_s1 + $0x628] sm:$0xff]  ;;  %v223_v26 = vld [vmem:[%s3366_s1 + $0x638] sm:$0xff] }
  0x4c   :  { %1731 = vmatprep.subr.bf16.mxu1 %v1730_v35  ;;  %540 = vmatprep.mubr.f32.mxu0 %v2357_v16  ;;  %v1750_v35 = vpack.c.bf16 %v151_v28, %v143_v27  ;;  %v229_v25 = vld [vmem:[%s3366_s1 + $0x668] sm:$0xff]  ;;  %v231_v27 = vld [vmem:[%s3366_s1 + $0x678] sm:$0xff] }
  0x4d   :  { %617 = vmatprep.mubr.f32.mxu1 %v2357_v16  ;;  %v164_v16 = vld [vmem:[%s3366_s1 + $0x460] sm:$0xff]  ;;  %v263_v50 = vld [vmem:[%s3366_s1 + $0x778] sm:$0xff] }
  0x4e   :  { %1669 = vmatpush1.bf16.msra.mxu0 %v1668_v41  ;;  %v1688_v41 = vpack.c.bf16 %v148_v33, %v140_v32  ;;  %v1692_v52 = vpack.c.bf16 %v164_v16, %v156_v44  ;;  %v228_v32 = vld [vmem:[%s3366_s1 + $0x660] sm:$0xff]  ;;  %v222_v33 = vld [vmem:[%s3366_s1 + $0x630] sm:$0xff]  ;;  %v279_v62 = vld [vmem:[%s3366_s1 + $0x7f8] sm:$0xff] }
  0x4f   :  { %1733 = vmatpush1.bf16.msra.mxu1 %v1732_v42  ;;  %1671 = vmatprep.subr.bf16.mxu0 %v1670_v43  ;;  %v1752_v42 = vpack.c.bf16 %v150_v36, %v142_v34  ;;  %v1690_v43 = vpack.c.bf16 %v165_v38, %v157_v37  ;;  %v1770_v34 = vpack.c.bf16 %v231_v27, %v223_v26  ;;  %v237_v36 = vld [vmem:[%s3366_s1 + $0x6a8] sm:$0xff]  ;;  %v239_v38 = vld [vmem:[%s3366_s1 + $0x6b8] sm:$0xff]  ;;  %v244_v44 = vld [vmem:[%s3366_s1 + $0x6e0] sm:$0xff] }
  0x50   :  { %1735 = vmatprep.subr.bf16.mxu1 %v1734_v47  ;;  %v166_v47 = vld [vmem:[%s3366_s1 + $0x470] sm:$0xff]  ;;  %v245_v37 = vld [vmem:[%s3366_s1 + $0x6e8] sm:$0xff] }
  0x51   :  { %v238_v16 = vld [vmem:[%s3366_s1 + $0x6b0] sm:$0xff] }
  0x52   :  { %1673 = vmatpush1.bf16.msra.mxu0 %v1672_v53  ;;  %v1756_v53 = vpack.c.bf16 %v166_v47, %v158_v45  ;;  %v1774_v45 = vpack.c.bf16 %v247_v39, %v239_v38  ;;  %v253_v47 = vld [vmem:[%s3366_s1 + $0x728] sm:$0xff] }
  0x53   :  { %1737 = vmatpush1.bf16.msra.mxu1 %v1736_v54  ;;  %1675 = vmatprep.subr.bf16.mxu0 %v1674_v55  ;;  %v1694_v54 = vpack.c.bf16 %v181_v49, %v173_v48  ;;  %v172_v55 = vld [vmem:[%s3366_s1 + $0x4a0] sm:$0xff]  ;;  %v261_v48 = vld [vmem:[%s3366_s1 + $0x768] sm:$0xff]  ;;  %v255_v49 = vld [vmem:[%s3366_s1 + $0x738] sm:$0xff] }
  0x54   :  { %1739 = vmatprep.subr.bf16.mxu1 %v1738_v59  ;;  %v182_v59 = vld [vmem:[%s3366_s1 + $0x4f0] sm:$0xff]  ;;  %v1696_v0 = vpack.c.bf16 %v180_v56, %v172_v55  ;;  %v260_v55 = vld [vmem:[%s3366_s1 + $0x760] sm:$0xff] }
  0x55   :  { %v254_v56 = vld [vmem:[%s3366_s1 + $0x730] sm:$0xff] }
  0x56   :  { %1677 = vmatpush1.bf16.msra.mxu0 %v1676_v1  ;;  %v1760_v1 = vpack.c.bf16 %v182_v59, %v174_v57  ;;  %v1778_v57 = vpack.c.bf16 %v263_v50, %v255_v49  ;;  %v269_v59 = vld [vmem:[%s3366_s1 + $0x7a8] sm:$0xff] }
  0x57   :  { %1741 = vmatpush1.bf16.msra.mxu1 %v1740_v2  ;;  %1679 = vmatprep.subr.bf16.mxu0 %v1678_v3  ;;  %v1698_v2 = vpack.c.bf16 %v197_v61, %v189_v60  ;;  %v188_v3 = vld [vmem:[%s3366_s1 + $0x520] sm:$0xff]  ;;  %v277_v60 = vld [vmem:[%s3366_s1 + $0x7e8] sm:$0xff]  ;;  %v271_v61 = vld [vmem:[%s3366_s1 + $0x7b8] sm:$0xff] }
  0x58   :  { %1743 = vmatprep.subr.bf16.mxu1 %v1742_v7  ;;  %v198_v7 = vld [vmem:[%s3366_s1 + $0x570] sm:$0xff]  ;;  %v1700_v12 = vpack.c.bf16 %v196_v4, %v188_v3  ;;  %v276_v3 = vld [vmem:[%s3366_s1 + $0x7e0] sm:$0xff]  ;;  %v1782_v4 = vpack.c.bf16 %v279_v62, %v271_v61 }
  0x5a   :  { %1681 = vmatpush1.bf16.msra.mxu0 %v1680_v14  ;;  %v1764_v14 = vpack.c.bf16 %v198_v7, %v190_v5  ;;  %v270_v5 = vld [vmem:[%s3366_s1 + $0x7b0] sm:$0xff] }
  0x5b   :  { %1745 = vmatpush1.bf16.msra.mxu1 %v1744_v18  ;;  %1683 = vmatprep.subr.bf16.mxu0 %v1682_v19  ;;  %v1702_v18 = vpack.c.bf16 %v213_v9, %v205_v8  ;;  %v204_v19 = vld [vmem:[%s3366_s1 + $0x5a0] sm:$0xff]  ;;  %v282_v9 = vlaneseq }
  0x5c   :  { %1747 = vmatprep.subr.bf16.mxu1 %v1746_v23  ;;  %v214_v23 = vld [vmem:[%s3366_s1 + $0x5f0] sm:$0xff]  ;;  %v1704_v28 = vpack.c.bf16 %v212_v20, %v204_v19 }
  0x5d   :  { %v283_v10 = vshrl.u32 %v282_v9, 7 }
  0x5e   :  { %1685 = vmatpush1.bf16.msra.mxu0 %v1684_v29  ;;  %v1768_v29 = vpack.c.bf16 %v214_v23, %v206_v21 }
  0x5f   :  { %1749 = vmatpush1.bf16.msra.mxu1 %v1748_v30  ;;  %1687 = vmatprep.subr.bf16.mxu0 %v1686_v31  ;;  %v1706_v30 = vpack.c.bf16 %v229_v25, %v221_v24  ;;  %v220_v31 = vld [vmem:[%s3366_s1 + $0x620] sm:$0xff]  ;;  %v300_v11 = vsub.s32 4, %v283_v10  ;;  %v304_v19 = vsub.s32 5, %v283_v10  ;;  %v292_v24 = vsub.s32 2, %v283_v10 }
  0x60   :  { %1751 = vmatprep.subr.bf16.mxu1 %v1750_v35  ;;  %v230_v35 = vld [vmem:[%s3366_s1 + $0x670] sm:$0xff]  ;;  %v1708_v40 = vpack.c.bf16 %v228_v32, %v220_v31  ;;  %v288_v25 = vsub.s32 1, %v283_v10  ;;  %v296_v26 = vsub.s32 3, %v283_v10 }
  0x62   :  { %1689 = vmatpush1.bf16.msra.mxu0 %v1688_v41  ;;  %v1772_v41 = vpack.c.bf16 %v230_v35, %v222_v33 }
  0x63   :  { %1753 = vmatpush1.bf16.msra.mxu1 %v1752_v42  ;;  %1691 = vmatprep.subr.bf16.mxu0 %v1690_v43  ;;  %v1710_v42 = vpack.c.bf16 %v245_v37, %v237_v36  ;;  %v236_v43 = vld [vmem:[%s3366_s1 + $0x6a0] sm:$0xff] }
  0x64   :  { %1755 = vmatprep.subr.bf16.mxu1 %v1754_v46  ;;  %v246_v46 = vld [vmem:[%s3366_s1 + $0x6f0] sm:$0xff]  ;;  %v1712_v51 = vpack.c.bf16 %v244_v44, %v236_v43 }
  0x66   :  { %1693 = vmatpush1.bf16.msra.mxu0 %v1692_v52  ;;  %v1776_v52 = vpack.c.bf16 %v246_v46, %v238_v16 }
  0x67   :  { %1757 = vmatpush1.bf16.msra.mxu1 %v1756_v53  ;;  %1695 = vmatprep.subr.bf16.mxu0 %v1694_v54  ;;  %v1714_v53 = vpack.c.bf16 %v261_v48, %v253_v47  ;;  %v252_v54 = vld [vmem:[%s3366_s1 + $0x720] sm:$0xff] }
  0x68   :  { %1759 = vmatprep.subr.bf16.mxu1 %v1758_v58  ;;  %v262_v58 = vld [vmem:[%s3366_s1 + $0x770] sm:$0xff]  ;;  %v1716_v63 = vpack.c.bf16 %v260_v55, %v252_v54 }
  0x6a   :  { %1697 = vmatpush1.bf16.msra.mxu0 %v1696_v0  ;;  %v1780_v0 = vpack.c.bf16 %v262_v58, %v254_v56 }
  0x6b   :  { %1761 = vmatpush1.bf16.msra.mxu1 %v1760_v1  ;;  %1699 = vmatprep.subr.bf16.mxu0 %v1698_v2  ;;  %v1718_v1 = vpack.c.bf16 %v277_v60, %v269_v59  ;;  %v268_v2 = vld [vmem:[%s3366_s1 + $0x7a0] sm:$0xff] }
  0x6c   :  { %1763 = vmatprep.subr.bf16.mxu1 %v1762_v6  ;;  %v278_v6 = vld [vmem:[%s3366_s1 + $0x7f0] sm:$0xff]  ;;  %v1720_v7 = vpack.c.bf16 %v276_v3, %v268_v2 }
  0x6d   :  { %v1784_v8 = vpack.c.bf16 %v278_v6, %v270_v5 }
  0x6e   :  { %1701 = vmatpush1.bf16.msra.mxu0 %v1700_v12  ;;  %v280_v12 = vld [vmem:[%s3371_s4] sm:$0xff]  ;;  %s2909_s4 = smov 0  }
  0x6f   :  { %1765 = vmatpush1.bf16.msra.mxu1 %v1764_v14  ;;  %1703 = vmatprep.subr.bf16.mxu0 %v1702_v18  ;;  %v2867_v14 = vrot.slane %v280_v12, %v300_v11  ;;  %v308_v18 = vsub.s32 6, %v283_v10  ;;  %v2871_v21 = vrot.slane %v280_v12, %v304_v19  ;;  %v297_v31 = vrot.slane %v280_v12, %v296_v26 }
  0x70   :  { %1767 = vmatprep.subr.bf16.mxu1 %v1766_v22  ;;  %v284_v22 = vsub.s32 0, %v283_v10 }
  0x71   :  { %v2869_v20 = vrot.slane %v280_v12, %v308_v18 }
  0x72   :  { %1705 = vmatpush1.bf16.msra.mxu0 %v1704_v28  ;;  %v285_v27 = vrot.slane %v280_v12, %v284_v22 }
  0x73   :  { %1769 = vmatpush1.bf16.msra.mxu1 %v1768_v29  ;;  %1707 = vmatprep.subr.bf16.mxu0 %v1706_v30  ;;  %v293_v29 = vrot.slane %v280_v12, %v292_v24  ;;  %v289_v30 = vrot.slane %v280_v12, %v288_v25 }
  0x74   :  { %1771 = vmatprep.subr.bf16.mxu1 %v1770_v34 }
  0x76   :  { %1709 = vmatpush1.bf16.msra.mxu0 %v1708_v40 }
  0x77   :  { %1773 = vmatpush1.bf16.msra.mxu1 %v1772_v41  ;;  %1711 = vmatprep.subr.bf16.mxu0 %v1710_v42 }
  0x78   :  { %1775 = vmatprep.subr.bf16.mxu1 %v1774_v45 }
  0x7a   :  { %1713 = vmatpush1.bf16.msra.mxu0 %v1712_v51 }
  0x7b   :  { %1777 = vmatpush1.bf16.msra.mxu1 %v1776_v52  ;;  %1715 = vmatprep.subr.bf16.mxu0 %v1714_v53 }
  0x7c   :  { %1779 = vmatprep.subr.bf16.mxu1 %v1778_v57 }
  0x7e   :  { %1717 = vmatpush1.bf16.msra.mxu0 %v1716_v63 }
  0x7f   :  { %1781 = vmatpush1.bf16.msra.mxu1 %v1780_v0  ;;  %1719 = vmatprep.subr.bf16.mxu0 %v1718_v1 }
  0x80   :  { %1783 = vmatprep.subr.bf16.mxu1 %v1782_v4 }
  0x82   :  { %1721 = vmatpush1.bf16.msra.mxu0 %v1720_v7 }
  0x83   :  { %1785 = vmatpush1.bf16.msra.mxu1 %v1784_v8 }
  0x85   :  { %541 = vmatmul.mubr.f32.vlgmr.msra.gmra.mrb[4].mxu0 %v2490_v15 }
  0x86   :  { %618 = vmatmul.mubr.f32.vlgmr.msra.gmra.mrb[4].mxu1 %v2490_v15  ;;  %546 = vmatprep.mubr.f32.mxu0 %v2617_v13  ;;  %v312_v15 = vsub.s32 7, %v283_v10 }
  0x87   :  { %623 = vmatprep.mubr.f32.mxu1 %v2617_v13 }
  0x88   :  { %v2873_v13 = vrot.slane %v280_v12, %v312_v15 }
  0x89   :  { %547 = vmatmul.mubr.f32.gmra.mrb[6].mxu0 %v2623_v17 }
  0x8a   :  { %624 = vmatmul.mubr.f32.gmra.mrb[6].mxu1 %v2623_v17  ;;  %v2028_v17 = vmov 1983009808  }
  0x8b   :  { %v643_v23 = vunpack.c.l.s4 %v2028_v17 }
  0x8d   :  { %v644_v28 = vunpack.c.0.s8 %v643_v23 }
  0x8f   :  { %v2875_v36 = vsub.s32 %v644_v28, %v283_v10 }
 0x118   :  { %v388_v32 = vpop.f32.mrb[0].mxu0 }
 0x119   :  { %v389_v33 = vadd.f32 %v388_v32, %v285_v27  ;;  %v465_v34 = vpop.f32.mrb[0].mxu1  ;;  %v390_v35 = vpop.f32.mrb[1].mxu0 }
 0x11a   :  { %v466_v37 = vadd.f32 %v465_v34, %v293_v29  ;;  %v391_v38 = vadd.f32 %v390_v35, %v289_v30  ;;  %v467_v39 = vpop.f32.mrb[1].mxu1 }
 0x11b   :  { %v468_v40 = vadd.f32 %v467_v39, %v297_v31 }
 0x11c   :  { %v638_v41 = vcombine.low %v389_v33, %v391_v38  ;;  %v639_v42 = vcombine.high %v389_v33, %v391_v38  ;;  %v394_v52 = vpop.f32.mrb[2].mxu0 }
 0x11d   :  { %v640_v43 = vcombine.low %v466_v37, %v468_v40  ;;  %v641_v44 = vcombine.high %v466_v37, %v468_v40  ;;  %v471_v53 = vpop.f32.mrb[2].mxu1  ;;  %v395_v54 = vadd.f32 %v394_v52, %v285_v27  ;;  %v396_v56 = vpop.f32.mrb[3].mxu0  ;;  %v2907_v52 = vmov 0.0  }
 0x11e   :  { %v648_v16 = vrot.slane %v638_v41, %v2875_v36  ;;  %v655_v45 = vrot.slane %v639_v42, %v2875_v36  ;;  %v472_v55 = vadd.f32 %v471_v53, %v293_v29  ;;  %v473_v57 = vpop.f32.mrb[3].mxu1  ;;  %v397_v58 = vadd.f32 %v396_v56, %v289_v30 }
 0x11f   :  { %v662_v46 = vrot.slane %v640_v43, %v2875_v36  ;;  %v669_v47 = vrot.slane %v641_v44, %v2875_v36  ;;  %v474_v59 = vadd.f32 %v473_v57, %v297_v31 }
 0x120   :  { %v674_v60 = vcombine.low %v395_v54, %v397_v58  ;;  %v675_v61 = vcombine.high %v395_v54, %v397_v58 }
 0x121   :  { %v670_v48 = vcombine.low %v648_v16, %v662_v46  ;;  %v671_v49 = vcombine.high %v648_v16, %v662_v46  ;;  %v672_v50 = vcombine.low %v655_v45, %v669_v47  ;;  %v673_v51 = vcombine.high %v655_v45, %v669_v47 }
 0x122   :  { %v676_v62 = vcombine.low %v472_v55, %v474_v59  ;;  %v677_v63 = vcombine.high %v472_v55, %v474_v59  ;;  %v684_v0 = vrot.slane %v674_v60, %v2875_v36  ;;  %v691_v1 = vrot.slane %v675_v61, %v2875_v36 }
 0x123   :  { %718 = vst [vmem:[#allocation2] sm:$0xff] %v670_v48  ;;  %719 = vst [vmem:[#allocation2 + $0x8] sm:$0xff] %v671_v49  ;;  %v2901_v49 = vmov 0.0  }
 0x124   :  { %720 = vst [vmem:[#allocation2 + $0x10] sm:$0xff] %v672_v50  ;;  %721 = vst [vmem:[#allocation2 + $0x18] sm:$0xff] %v673_v51  ;;  %v698_v2 = vrot.slane %v676_v62, %v2875_v36  ;;  %v705_v3 = vrot.slane %v677_v63, %v2875_v36  ;;  %v2903_v50 = vmov 0.0   ;;  %v2905_v51 = vmov 0.0  }
 0x126   :  { %v706_v4 = vcombine.low %v684_v0, %v698_v2  ;;  %v707_v5 = vcombine.high %v684_v0, %v698_v2  ;;  %v708_v6 = vcombine.low %v691_v1, %v705_v3  ;;  %v709_v7 = vcombine.high %v691_v1, %v705_v3 }
 0x128   :  { %722 = vst [vmem:[#allocation2 + $0x20] sm:$0xff] %v706_v4  ;;  %723 = vst [vmem:[#allocation2 + $0x28] sm:$0xff] %v707_v5 }
 0x129   :  { %724 = vst [vmem:[#allocation2 + $0x30] sm:$0xff] %v708_v6  ;;  %725 = vst [vmem:[#allocation2 + $0x38] sm:$0xff] %v709_v7 }
 0x158   :  { %v542_v8 = vpop.f32.mrb[4].mxu0 }
 0x159   :  { %v543_v9 = vadd.f32 %v542_v8, %v2867_v14  ;;  %v619_v10 = vpop.f32.mrb[4].mxu1  ;;  %v544_v11 = vpop.f32.mrb[5].mxu0 }
 0x15a   :  { %v620_v12 = vadd.f32 %v619_v10, %v2869_v20  ;;  %v545_v18 = vadd.f32 %v544_v11, %v2871_v21  ;;  %v621_v19 = vpop.f32.mrb[5].mxu1 }
 0x15b   :  { %v622_v15 = vadd.f32 %v621_v19, %v2873_v13 }
 0x15c   :  { %v734_v22 = vcombine.low %v543_v9, %v545_v18  ;;  %v735_v17 = vcombine.high %v543_v9, %v545_v18  ;;  %v548_v23 = vpop.f32.mrb[6].mxu0 }
 0x15d   :  { %v736_v24 = vcombine.low %v620_v12, %v622_v15  ;;  %v737_v25 = vcombine.high %v620_v12, %v622_v15  ;;  %v549_v26 = vadd.f32 %v548_v23, %v2867_v14  ;;  %v625_v27 = vpop.f32.mrb[6].mxu1  ;;  %v550_v28 = vpop.f32.mrb[7].mxu0 }
 0x15e   :  { %v744_v29 = vrot.slane %v734_v22, %v2875_v36  ;;  %v751_v30 = vrot.slane %v735_v17, %v2875_v36  ;;  %v626_v31 = vadd.f32 %v625_v27, %v2869_v20  ;;  %v551_v32 = vadd.f32 %v550_v28, %v2871_v21  ;;  %v627_v33 = vpop.f32.mrb[7].mxu1 }
 0x15f   :  { %v758_v34 = vrot.slane %v736_v24, %v2875_v36  ;;  %v765_v35 = vrot.slane %v737_v25, %v2875_v36  ;;  %v628_v37 = vadd.f32 %v627_v33, %v2873_v13 }
 0x160   :  { %v770_v38 = vcombine.low %v549_v26, %v551_v32  ;;  %v771_v39 = vcombine.high %v549_v26, %v551_v32 }
 0x161   :  { %v766_v14 = vcombine.low %v744_v29, %v758_v34  ;;  %v767_v40 = vcombine.high %v744_v29, %v758_v34  ;;  %v768_v41 = vcombine.low %v751_v30, %v765_v35  ;;  %v769_v42 = vcombine.high %v751_v30, %v765_v35 }
 0x162   :  { %v780_v43 = vrot.slane %v770_v38, %v2875_v36  ;;  %v787_v44 = vrot.slane %v771_v39, %v2875_v36  ;;  %v772_v20 = vcombine.low %v626_v31, %v628_v37  ;;  %v773_v16 = vcombine.high %v626_v31, %v628_v37 }
 0x163   :  { %814 = vst [vmem:[#allocation3] sm:$0xff] %v766_v14  ;;  %815 = vst [vmem:[#allocation3 + $0x8] sm:$0xff] %v767_v40 }
 0x164   :  { %816 = vst [vmem:[#allocation3 + $0x10] sm:$0xff] %v768_v41  ;;  %817 = vst [vmem:[#allocation3 + $0x18] sm:$0xff] %v769_v42  ;;  %v794_v21 = vrot.slane %v772_v20, %v2875_v36  ;;  %v801_v13 = vrot.slane %v773_v16, %v2875_v36 }
 0x166   :  { %v802_v45 = vcombine.low %v780_v43, %v794_v21  ;;  %v803_v46 = vcombine.high %v780_v43, %v794_v21  ;;  %v804_v47 = vcombine.low %v787_v44, %v801_v13  ;;  %v805_v48 = vcombine.high %v787_v44, %v801_v13 }
 0x168   :  { %818 = vst [vmem:[#allocation3 + $0x20] sm:$0xff] %v802_v45  ;;  %819 = vst [vmem:[#allocation3 + $0x28] sm:$0xff] %v803_v46 }
 0x169   :  { %820 = vst [vmem:[#allocation3 + $0x30] sm:$0xff] %v804_v47  ;;  %821 = vst [vmem:[#allocation3 + $0x38] sm:$0xff] %v805_v48 }
 0x16a LB: > { %v838_v53 = vld [vmem:[%s3367_s2 + $0x8] sm:$0xff]  ;;  %v840_v55 = vld [vmem:[%s3367_s2 + $0x18] sm:$0xff]  ;;  %v837_v58 = vld [vmem:[%s3367_s2] sm:$0xff]  ;;  %v2029_v60 = vmov 0.0   ;;  %s1528_s20 = sshll.u32 %s2026_s4, 3  ;;  %s832_s22 = ssub.s32 7, %s2026_s4  ;;  %s2026_s4 = sphi %s2909_s4, %s827_s4   ;;  %v2022_v52 = vphi %v2907_v52, %v1329_v52   ;;  %v2018_v51 = vphi %v2905_v51, %v1327_v51   ;;  %v2014_v50 = vphi %v2903_v50, %v1360_v50   ;;  %v2010_v49 = vphi %v2901_v49, %v1358_v49  }
 0x16b   : > { %v842_v54 = vld [vmem:[%s3367_s2 + $0x28] sm:$0xff]  ;;  %v844_v57 = vld [vmem:[%s3367_s2 + $0x38] sm:$0xff]  ;;  %v841_v59 = vld [vmem:[%s3367_s2 + $0x20] sm:$0xff]  ;;  %965 = vmatprep.mubr.f32.mxu0 %v2029_v60  ;;  %1036 = vmatprep.mubr.f32.mxu1 %v2029_v60  ;;  %s835_s21 = scalar_lea.vmem [#allocation2], %s1528_s20  ;;  %s1529_s23 = sshll.u32 %s832_s22, 3 }
 0x16c   : > { %v1786_v56 = vpack.c.bf16 %v842_v54, %v838_v53  ;;  %v1818_v61 = vpack.c.bf16 %v844_v57, %v840_v55  ;;  %v1788_v62 = vpack.c.bf16 %v841_v59, %v837_v58  ;;  %v839_v63 = vld [vmem:[%s3367_s2 + $0x10] sm:$0xff]  ;;  %v846_v1 = vld [vmem:[%s3367_s2 + $0x48] sm:$0xff]  ;;  %v848_v4 = vld [vmem:[%s3367_s2 + $0x58] sm:$0xff]  ;;  %s1068_s24 = scalar_lea.vmem [#allocation3], %s1529_s23  ;;  %s1518_s25 = sshll.u32 %s2026_s4, 1 }
 0x16d   : > { %v843_v0 = vld [vmem:[%s3367_s2 + $0x30] sm:$0xff]  ;;  %v850_v3 = vld [vmem:[%s3367_s2 + $0x68] sm:$0xff]  ;;  %v852_v5 = vld [vmem:[%s3367_s2 + $0x78] sm:$0xff]  ;;  %s1362_s26 = scalar_lea.vmem [#allocation4], %s1518_s25  ;;  %s1519_s27 = sshll.u32 %s832_s22, 1 }
 0x16e   : > { %1787 = vmatprep.subr.bf16.mxu0 %v1786_v56  ;;  %v1820_v2 = vpack.c.bf16 %v843_v0, %v839_v63  ;;  %1819 = vmatprep.subr.bf16.mxu1 %v1818_v61  ;;  %v1790_v6 = vpack.c.bf16 %v850_v3, %v846_v1  ;;  %v1822_v7 = vpack.c.bf16 %v852_v5, %v848_v4  ;;  %v845_v8 = vld [vmem:[%s3367_s2 + $0x40] sm:$0xff]  ;;  %v847_v10 = vld [vmem:[%s3367_s2 + $0x50] sm:$0xff]  ;;  %v854_v18 = vld [vmem:[%s3367_s2 + $0x88] sm:$0xff]  ;;  %s1365_s28 = scalar_lea.vmem [#allocation5], %s1519_s27  ;;  %s827_s4 = sadd.s32 1, %s2026_s4  }
 0x16f   : > { %1789 = vmatpush1.bf16.msra.mxu0 %v1788_v62  ;;  %v849_v9 = vld [vmem:[%s3367_s2 + $0x60] sm:$0xff]  ;;  %v851_v12 = vld [vmem:[%s3367_s2 + $0x70] sm:$0xff]  ;;  %v858_v19 = vld [vmem:[%s3367_s2 + $0xa8] sm:$0xff]  ;;  %p824_p0 = scmp.ge.s32.totalorder %s827_s4, 8  }
 0x170   : > { %1821 = vmatpush1.bf16.msra.mxu1 %v1820_v2  ;;  %v1792_v11 = vpack.c.bf16 %v849_v9, %v845_v8  ;;  %1791 = vmatprep.subr.bf16.mxu0 %v1790_v6  ;;  %v1824_v15 = vpack.c.bf16 %v851_v12, %v847_v10  ;;  %v1794_v22 = vpack.c.bf16 %v858_v19, %v854_v18  ;;  %v856_v17 = vld [vmem:[%s3367_s2 + $0x98] sm:$0xff]  ;;  %v853_v24 = vld [vmem:[%s3367_s2 + $0x80] sm:$0xff]  ;;  %v855_v27 = vld [vmem:[%s3367_s2 + $0x90] sm:$0xff] }
 0x171   : > { %1823 = vmatprep.subr.bf16.mxu1 %v1822_v7  ;;  %v860_v23 = vld [vmem:[%s3367_s2 + $0xb8] sm:$0xff]  ;;  %v857_v26 = vld [vmem:[%s3367_s2 + $0xa0] sm:$0xff]  ;;  %v859_v28 = vld [vmem:[%s3367_s2 + $0xb0] sm:$0xff] }
 0x172   : > { %v1826_v25 = vpack.c.bf16 %v860_v23, %v856_v17  ;;  %v1796_v29 = vpack.c.bf16 %v857_v26, %v853_v24  ;;  %v862_v30 = vld [vmem:[%s3367_s2 + $0xc8] sm:$0xff]  ;;  %v864_v32 = vld [vmem:[%s3367_s2 + $0xd8] sm:$0xff]  ;;  %v1828_v33 = vpack.c.bf16 %v859_v28, %v855_v27  ;;  %v861_v37 = vld [vmem:[%s3367_s2 + $0xc0] sm:$0xff] }
 0x173   : > { %1793 = vmatpush1.bf16.msra.mxu0 %v1792_v11  ;;  %v866_v31 = vld [vmem:[%s3367_s2 + $0xe8] sm:$0xff]  ;;  %v868_v35 = vld [vmem:[%s3367_s2 + $0xf8] sm:$0xff]  ;;  %v865_v38 = vld [vmem:[%s3367_s2 + $0xe0] sm:$0xff] }
 0x174   : > { %1825 = vmatpush1.bf16.msra.mxu1 %v1824_v15  ;;  %1795 = vmatprep.subr.bf16.mxu0 %v1794_v22  ;;  %v1798_v34 = vpack.c.bf16 %v866_v31, %v862_v30  ;;  %v1830_v39 = vpack.c.bf16 %v868_v35, %v864_v32  ;;  %v863_v14 = vld [vmem:[%s3367_s2 + $0xd0] sm:$0xff]  ;;  %v870_v41 = vld [vmem:[%s3367_s2 + $0x108] sm:$0xff]  ;;  %v872_v43 = vld [vmem:[%s3367_s2 + $0x118] sm:$0xff]  ;;  %v1800_v20 = vpack.c.bf16 %v865_v38, %v861_v37 }
 0x175   : > { %1827 = vmatprep.subr.bf16.mxu1 %v1826_v25  ;;  %v867_v40 = vld [vmem:[%s3367_s2 + $0xf0] sm:$0xff]  ;;  %v874_v42 = vld [vmem:[%s3367_s2 + $0x128] sm:$0xff]  ;;  %v876_v44 = vld [vmem:[%s3367_s2 + $0x138] sm:$0xff] }
 0x176   : > { %v1832_v16 = vpack.c.bf16 %v867_v40, %v863_v14  ;;  %v1802_v21 = vpack.c.bf16 %v874_v42, %v870_v41  ;;  %v869_v13 = vld [vmem:[%s3367_s2 + $0x100] sm:$0xff]  ;;  %v871_v46 = vld [vmem:[%s3367_s2 + $0x110] sm:$0xff]  ;;  %v1834_v47 = vpack.c.bf16 %v876_v44, %v872_v43  ;;  %v878_v53 = vld [vmem:[%s3367_s2 + $0x148] sm:$0xff] }
 0x177   : > { %1797 = vmatpush1.bf16.msra.mxu0 %v1796_v29  ;;  %v873_v45 = vld [vmem:[%s3367_s2 + $0x120] sm:$0xff]  ;;  %v875_v48 = vld [vmem:[%s3367_s2 + $0x130] sm:$0xff]  ;;  %v882_v54 = vld [vmem:[%s3367_s2 + $0x168] sm:$0xff] }
 0x178   : > { %1829 = vmatpush1.bf16.msra.mxu1 %v1828_v33  ;;  %1799 = vmatprep.subr.bf16.mxu0 %v1798_v34  ;;  %v880_v55 = vld [vmem:[%s3367_s2 + $0x158] sm:$0xff]  ;;  %v1804_v57 = vpack.c.bf16 %v873_v45, %v869_v13  ;;  %v1836_v58 = vpack.c.bf16 %v875_v48, %v871_v46  ;;  %v1806_v59 = vpack.c.bf16 %v882_v54, %v878_v53  ;;  %v877_v61 = vld [vmem:[%s3367_s2 + $0x140] sm:$0xff]  ;;  %v879_v63 = vld [vmem:[%s3367_s2 + $0x150] sm:$0xff] }
 0x179   : > { %1831 = vmatprep.subr.bf16.mxu1 %v1830_v39  ;;  %v884_v56 = vld [vmem:[%s3367_s2 + $0x178] sm:$0xff]  ;;  %v881_v62 = vld [vmem:[%s3367_s2 + $0x160] sm:$0xff]  ;;  %v883_v1 = vld [vmem:[%s3367_s2 + $0x170] sm:$0xff] }
 0x17a   : > { %v1838_v0 = vpack.c.bf16 %v884_v56, %v880_v55  ;;  %v886_v2 = vld [vmem:[%s3367_s2 + $0x188] sm:$0xff]  ;;  %v888_v4 = vld [vmem:[%s3367_s2 + $0x198] sm:$0xff]  ;;  %v1808_v6 = vpack.c.bf16 %v881_v62, %v877_v61  ;;  %v1840_v7 = vpack.c.bf16 %v883_v1, %v879_v63  ;;  %v885_v9 = vld [vmem:[%s3367_s2 + $0x180] sm:$0xff] }
 0x17b   : > { %1801 = vmatpush1.bf16.msra.mxu0 %v1800_v20  ;;  %v890_v3 = vld [vmem:[%s3367_s2 + $0x1a8] sm:$0xff]  ;;  %v892_v5 = vld [vmem:[%s3367_s2 + $0x1b8] sm:$0xff]  ;;  %v889_v10 = vld [vmem:[%s3367_s2 + $0x1a0] sm:$0xff] }
 0x17c   : > { %1833 = vmatpush1.bf16.msra.mxu1 %v1832_v16  ;;  %1803 = vmatprep.subr.bf16.mxu0 %v1802_v21  ;;  %v1810_v8 = vpack.c.bf16 %v890_v3, %v886_v2  ;;  %v887_v11 = vld [vmem:[%s3367_s2 + $0x190] sm:$0xff]  ;;  %v1842_v12 = vpack.c.bf16 %v892_v5, %v888_v4  ;;  %v894_v19 = vld [vmem:[%s3367_s2 + $0x1c8] sm:$0xff]  ;;  %v896_v22 = vld [vmem:[%s3367_s2 + $0x1d8] sm:$0xff]  ;;  %v1812_v23 = vpack.c.bf16 %v889_v10, %v885_v9 }
 0x17d   : > { %1835 = vmatprep.subr.bf16.mxu1 %v1834_v47  ;;  %v891_v18 = vld [vmem:[%s3367_s2 + $0x1b0] sm:$0xff]  ;;  %v898_v15 = vld [vmem:[%s3367_s2 + $0x1e8] sm:$0xff]  ;;  %v900_v17 = vld [vmem:[%s3367_s2 + $0x1f8] sm:$0xff] }
 0x17e   : > { %v1844_v24 = vpack.c.bf16 %v891_v18, %v887_v11  ;;  %v1814_v25 = vpack.c.bf16 %v898_v15, %v894_v19  ;;  %v893_v26 = vld [vmem:[%s3367_s2 + $0x1c0] sm:$0xff]  ;;  %v895_v28 = vld [vmem:[%s3367_s2 + $0x1d0] sm:$0xff]  ;;  %v1846_v29 = vpack.c.bf16 %v900_v17, %v896_v22  ;;  %v1071_v31 = vld [vmem:[%s3368_s3 + $0x8] sm:$0xff] }
 0x17f   : > { %1805 = vmatpush1.bf16.msra.mxu0 %v1804_v57  ;;  %v897_v27 = vld [vmem:[%s3367_s2 + $0x1e0] sm:$0xff]  ;;  %v899_v30 = vld [vmem:[%s3367_s2 + $0x1f0] sm:$0xff]  ;;  %v1075_v32 = vld [vmem:[%s3368_s3 + $0x28] sm:$0xff] }
 0x180   : > { %1837 = vmatpush1.bf16.msra.mxu1 %v1836_v58  ;;  %1807 = vmatprep.subr.bf16.mxu0 %v1806_v59  ;;  %v1073_v33 = vld [vmem:[%s3368_s3 + $0x18] sm:$0xff]  ;;  %v1816_v35 = vpack.c.bf16 %v897_v27, %v893_v26  ;;  %v1848_v37 = vpack.c.bf16 %v899_v30, %v895_v28  ;;  %v1850_v38 = vpack.c.bf16 %v1075_v32, %v1071_v31  ;;  %v1070_v39 = vld [vmem:[%s3368_s3] sm:$0xff]  ;;  %v1072_v40 = vld [vmem:[%s3368_s3 + $0x10] sm:$0xff] }
 0x181   : > { %1839 = vmatprep.subr.bf16.mxu1 %v1838_v0  ;;  %v1077_v34 = vld [vmem:[%s3368_s3 + $0x38] sm:$0xff]  ;;  %v1074_v14 = vld [vmem:[%s3368_s3 + $0x20] sm:$0xff]  ;;  %v1076_v42 = vld [vmem:[%s3368_s3 + $0x30] sm:$0xff] }
 0x182   : > { %v1882_v41 = vpack.c.bf16 %v1077_v34, %v1073_v33  ;;  %v1079_v43 = vld [vmem:[%s3368_s3 + $0x48] sm:$0xff]  ;;  %v1081_v20 = vld [vmem:[%s3368_s3 + $0x58] sm:$0xff]  ;;  %v1852_v21 = vpack.c.bf16 %v1074_v14, %v1070_v39  ;;  %v1884_v13 = vpack.c.bf16 %v1076_v42, %v1072_v40  ;;  %v1078_v46 = vld [vmem:[%s3368_s3 + $0x40] sm:$0xff] }
 0x183   : > { %1809 = vmatpush1.bf16.msra.mxu0 %v1808_v6  ;;  %v1083_v44 = vld [vmem:[%s3368_s3 + $0x68] sm:$0xff]  ;;  %v1085_v16 = vld [vmem:[%s3368_s3 + $0x78] sm:$0xff]  ;;  %v1082_v47 = vld [vmem:[%s3368_s3 + $0x60] sm:$0xff] }
 0x184   : > { %1841 = vmatpush1.bf16.msra.mxu1 %v1840_v7  ;;  %1811 = vmatprep.subr.bf16.mxu0 %v1810_v8  ;;  %v1854_v45 = vpack.c.bf16 %v1083_v44, %v1079_v43  ;;  %v1080_v48 = vld [vmem:[%s3368_s3 + $0x50] sm:$0xff]  ;;  %v1886_v53 = vpack.c.bf16 %v1085_v16, %v1081_v20  ;;  %v1087_v55 = vld [vmem:[%s3368_s3 + $0x88] sm:$0xff]  ;;  %v1089_v57 = vld [vmem:[%s3368_s3 + $0x98] sm:$0xff]  ;;  %v1856_v59 = vpack.c.bf16 %v1082_v47, %v1078_v46 }
 0x185   : > { %1843 = vmatprep.subr.bf16.mxu1 %v1842_v12  ;;  %v1084_v54 = vld [vmem:[%s3368_s3 + $0x70] sm:$0xff]  ;;  %v1091_v56 = vld [vmem:[%s3368_s3 + $0xa8] sm:$0xff]  ;;  %v1093_v58 = vld [vmem:[%s3368_s3 + $0xb8] sm:$0xff] }
 0x186   : > { %v1888_v61 = vpack.c.bf16 %v1084_v54, %v1080_v48  ;;  %v1858_v62 = vpack.c.bf16 %v1091_v56, %v1087_v55  ;;  %v1086_v63 = vld [vmem:[%s3368_s3 + $0x80] sm:$0xff]  ;;  %v1088_v1 = vld [vmem:[%s3368_s3 + $0x90] sm:$0xff]  ;;  %v1095_v3 = vld [vmem:[%s3368_s3 + $0xc8] sm:$0xff] }
 0x187   : > { %1813 = vmatpush1.bf16.msra.mxu0 %v1812_v23  ;;  %v1090_v0 = vld [vmem:[%s3368_s3 + $0xa0] sm:$0xff]  ;;  %v1092_v2 = vld [vmem:[%s3368_s3 + $0xb0] sm:$0xff]  ;;  %v1099_v4 = vld [vmem:[%s3368_s3 + $0xe8] sm:$0xff] }
 0x188   : > { %1845 = vmatpush1.bf16.msra.mxu1 %v1844_v24  ;;  %1815 = vmatprep.subr.bf16.mxu0 %v1814_v25  ;;  %v1097_v5 = vld [vmem:[%s3368_s3 + $0xd8] sm:$0xff]  ;;  %v1860_v7 = vpack.c.bf16 %v1090_v0, %v1086_v63  ;;  %v1892_v8 = vpack.c.bf16 %v1092_v2, %v1088_v1  ;;  %v1862_v9 = vpack.c.bf16 %v1099_v4, %v1095_v3  ;;  %v1094_v10 = vld [vmem:[%s3368_s3 + $0xc0] sm:$0xff]  ;;  %v1096_v12 = vld [vmem:[%s3368_s3 + $0xd0] sm:$0xff] }
 0x189   : > { %1847 = vmatprep.subr.bf16.mxu1 %v1846_v29  ;;  %v1101_v6 = vld [vmem:[%s3368_s3 + $0xf8] sm:$0xff]  ;;  %v1098_v11 = vld [vmem:[%s3368_s3 + $0xe0] sm:$0xff]  ;;  %v1100_v18 = vld [vmem:[%s3368_s3 + $0xf0] sm:$0xff] }
 0x18a   : > { %v1103_v19 = vld [vmem:[%s3368_s3 + $0x108] sm:$0xff]  ;;  %v1105_v22 = vld [vmem:[%s3368_s3 + $0x118] sm:$0xff]  ;;  %v1864_v23 = vpack.c.bf16 %v1098_v11, %v1094_v10  ;;  %v1896_v24 = vpack.c.bf16 %v1100_v18, %v1096_v12  ;;  %v1102_v26 = vld [vmem:[%s3368_s3 + $0x100] sm:$0xff] }
 0x18b   : > { %1817 = vmatpush1.bf16.msra.mxu0 %v1816_v35  ;;  %v1107_v15 = vld [vmem:[%s3368_s3 + $0x128] sm:$0xff]  ;;  %v1109_v17 = vld [vmem:[%s3368_s3 + $0x138] sm:$0xff]  ;;  %v1106_v27 = vld [vmem:[%s3368_s3 + $0x120] sm:$0xff] }
 0x18c   : > { %1849 = vmatpush1.bf16.msra.mxu1 %v1848_v37  ;;  %1851 = vmatprep.subr.bf16.mxu0 %v1850_v38  ;;  %v1866_v25 = vpack.c.bf16 %v1107_v15, %v1103_v19  ;;  %v1104_v28 = vld [vmem:[%s3368_s3 + $0x110] sm:$0xff]  ;;  %v1898_v29 = vpack.c.bf16 %v1109_v17, %v1105_v22  ;;  %v1111_v31 = vld [vmem:[%s3368_s3 + $0x148] sm:$0xff]  ;;  %v1113_v33 = vld [vmem:[%s3368_s3 + $0x158] sm:$0xff]  ;;  %v1868_v35 = vpack.c.bf16 %v1106_v27, %v1102_v26 }
 0x18d   : > { %1883 = vmatprep.subr.bf16.mxu1 %v1882_v41  ;;  %v1108_v30 = vld [vmem:[%s3368_s3 + $0x130] sm:$0xff]  ;;  %v1115_v32 = vld [vmem:[%s3368_s3 + $0x168] sm:$0xff]  ;;  %v1117_v34 = vld [vmem:[%s3368_s3 + $0x178] sm:$0xff] }
 0x18e   : > { %966 = vmatmul.mubr.f32.vlgmr.msra.gmra.mrb[0].mxu0 %v2022_v52  ;;  %v1900_v37 = vpack.c.bf16 %v1108_v30, %v1104_v28  ;;  %v1870_v38 = vpack.c.bf16 %v1115_v32, %v1111_v31  ;;  %v1110_v39 = vld [vmem:[%s3368_s3 + $0x140] sm:$0xff]  ;;  %v1112_v40 = vld [vmem:[%s3368_s3 + $0x150] sm:$0xff]  ;;  %v1902_v41 = vpack.c.bf16 %v1117_v34, %v1113_v33  ;;  %v1119_v43 = vld [vmem:[%s3368_s3 + $0x188] sm:$0xff] }
 0x18f   : > { %1037 = vmatmul.mubr.f32.vlgmr.msra.gmra.mrb[0].mxu1 %v2022_v52  ;;  %1853 = vmatpush1.bf16.msra.mxu0 %v1852_v21  ;;  %v1890_v52 = vpack.c.bf16 %v1093_v58, %v1089_v57  ;;  %v1114_v14 = vld [vmem:[%s3368_s3 + $0x160] sm:$0xff]  ;;  %v1116_v42 = vld [vmem:[%s3368_s3 + $0x170] sm:$0xff]  ;;  %v1123_v44 = vld [vmem:[%s3368_s3 + $0x1a8] sm:$0xff] }
 0x190   : > { %1885 = vmatpush1.bf16.msra.mxu1 %v1884_v13  ;;  %1855 = vmatprep.subr.bf16.mxu0 %v1854_v45  ;;  %v1121_v20 = vld [vmem:[%s3368_s3 + $0x198] sm:$0xff]  ;;  %v1872_v21 = vpack.c.bf16 %v1114_v14, %v1110_v39  ;;  %v1904_v13 = vpack.c.bf16 %v1116_v42, %v1112_v40  ;;  %v1874_v45 = vpack.c.bf16 %v1123_v44, %v1119_v43  ;;  %v1118_v46 = vld [vmem:[%s3368_s3 + $0x180] sm:$0xff]  ;;  %v1120_v48 = vld [vmem:[%s3368_s3 + $0x190] sm:$0xff] }
 0x191   : > { %1887 = vmatprep.subr.bf16.mxu1 %v1886_v53  ;;  %1198 = vmatprep.mubr.f32.mxu0 %v2029_v60  ;;  %v1125_v16 = vld [vmem:[%s3368_s3 + $0x1b8] sm:$0xff]  ;;  %v1122_v47 = vld [vmem:[%s3368_s3 + $0x1a0] sm:$0xff]  ;;  %v1124_v54 = vld [vmem:[%s3368_s3 + $0x1b0] sm:$0xff] }
 0x192   : > { %1269 = vmatprep.mubr.f32.mxu1 %v2029_v60  ;;  %v1894_v60 = vpack.c.bf16 %v1101_v6, %v1097_v5  ;;  %v1906_v53 = vpack.c.bf16 %v1125_v16, %v1121_v20  ;;  %v1127_v55 = vld [vmem:[%s3368_s3 + $0x1c8] sm:$0xff]  ;;  %v1129_v57 = vld [vmem:[%s3368_s3 + $0x1d8] sm:$0xff]  ;;  %v1126_v63 = vld [vmem:[%s3368_s3 + $0x1c0] sm:$0xff] }
 0x193   : > { %1857 = vmatpush1.bf16.msra.mxu0 %v1856_v59  ;;  %v1131_v56 = vld [vmem:[%s3368_s3 + $0x1e8] sm:$0xff]  ;;  %v1133_v58 = vld [vmem:[%s3368_s3 + $0x1f8] sm:$0xff]  ;;  %v1876_v59 = vpack.c.bf16 %v1122_v47, %v1118_v46  ;;  %v1130_v0 = vld [vmem:[%s3368_s3 + $0x1e0] sm:$0xff] }
 0x194   : > { %1889 = vmatpush1.bf16.msra.mxu1 %v1888_v61  ;;  %1859 = vmatprep.subr.bf16.mxu0 %v1858_v62  ;;  %v1908_v61 = vpack.c.bf16 %v1124_v54, %v1120_v48  ;;  %v1878_v62 = vpack.c.bf16 %v1131_v56, %v1127_v55  ;;  %v1910_v1 = vpack.c.bf16 %v1133_v58, %v1129_v57  ;;  %v1132_v2 = vld [vmem:[%s3368_s3 + $0x1f0] sm:$0xff]  ;;  %v1069_v42 = vld [vmem:[%s1068_s24] sm:$0xff] }
 0x195   : > { %1891 = vmatprep.subr.bf16.mxu1 %v1890_v52  ;;  %v1128_v52 = vld [vmem:[%s3368_s3 + $0x1d0] sm:$0xff]  ;;  %v1880_v3 = vpack.c.bf16 %v1130_v0, %v1126_v63 }
 0x196   : > { %v1912_v4 = vpack.c.bf16 %v1132_v2, %v1128_v52 }
 0x197   : > { %1861 = vmatpush1.bf16.msra.mxu0 %v1860_v7 }
 0x198   : > { %1893 = vmatpush1.bf16.msra.mxu1 %v1892_v8  ;;  %1863 = vmatprep.subr.bf16.mxu0 %v1862_v9 }
 0x199   : > { %1895 = vmatprep.subr.bf16.mxu1 %v1894_v60  ;;  %v836_v60 = vld [vmem:[%s835_s21] sm:$0xff] }
 0x19b   : > { %1865 = vmatpush1.bf16.msra.mxu0 %v1864_v23 }
 0x19c   : > { %1897 = vmatpush1.bf16.msra.mxu1 %v1896_v24  ;;  %1867 = vmatprep.subr.bf16.mxu0 %v1866_v25 }
 0x19d   : > { %1899 = vmatprep.subr.bf16.mxu1 %v1898_v29 }
 0x19f   : > { %1869 = vmatpush1.bf16.msra.mxu0 %v1868_v35 }
 0x1a0   : > { %1901 = vmatpush1.bf16.msra.mxu1 %v1900_v37  ;;  %1871 = vmatprep.subr.bf16.mxu0 %v1870_v38 }
 0x1a1   : > { %1903 = vmatprep.subr.bf16.mxu1 %v1902_v41 }
 0x1a3   : > { %1873 = vmatpush1.bf16.msra.mxu0 %v1872_v21 }
 0x1a4   : > { %1905 = vmatpush1.bf16.msra.mxu1 %v1904_v13  ;;  %1875 = vmatprep.subr.bf16.mxu0 %v1874_v45 }
 0x1a5   : > { %1907 = vmatprep.subr.bf16.mxu1 %v1906_v53 }
 0x1a7   : > { %1877 = vmatpush1.bf16.msra.mxu0 %v1876_v59 }
 0x1a8   : > { %1909 = vmatpush1.bf16.msra.mxu1 %v1908_v61  ;;  %1879 = vmatprep.subr.bf16.mxu0 %v1878_v62 }
 0x1a9   : > { %1911 = vmatprep.subr.bf16.mxu1 %v1910_v1 }
 0x1ab   : > { %1881 = vmatpush1.bf16.msra.mxu0 %v1880_v3 }
 0x1ac   : > { %1913 = vmatpush1.bf16.msra.mxu1 %v1912_v4 }
 0x1ae   : > { %1199 = vmatmul.mubr.f32.vlgmr.msra.gmra.mrb[2].mxu0 %v2014_v50 }
 0x1af   : > { %1270 = vmatmul.mubr.f32.vlgmr.msra.gmra.mrb[2].mxu1 %v2014_v50 }
 0x261   : > { %v967_v5 = vpop.f32.mrb[0].mxu0 }
 0x262   : > { %v1038_v6 = vpop.f32.mrb[0].mxu1  ;;  %v969_v7 = vpop.f32.mrb[1].mxu0 }
 0x263   : > { %v1047_v8 = vcombine.low %v967_v5, %v969_v7  ;;  %v1040_v9 = vpop.f32.mrb[1].mxu1 }
 0x264   : > { %v1048_v10 = vcombine.low %v1038_v6, %v1040_v9 }
 0x265   : > { %v1055_v11 = vrot.slane %v1047_v8, %v2875_v36 }
 0x266   : > { %v1062_v12 = vrot.slane %v1048_v10, %v2875_v36 }
 0x268   : > { %v1063_v18 = vcombine.low %v1055_v11, %v1062_v12 }
 0x26a   : > { %v1065_v19 = vadd.f32 %v1063_v18, %v836_v60 }
 0x26c   : > { %v1512_v15 = vmul.f32 -1.442695, %v1065_v19  ;;  %v1306_v22 = vrot.slane %v1065_v19, 2  ;;  %v1317_v17 = vrot.slane %v1065_v19, 6  ;;  %v1314_v25 = vrot.slane %v1065_v19, 4 }
 0x26e   : > { %1956 = vpow2.f32 %v1512_v15  ;;  %v1513_v50 = vmul.f32 -1.442695, %v1306_v22  ;;  %v1514_v23 = vmul.f32 -1.442695, %v1317_v17 }
 0x270   : > { %1958 = vpow2.f32 %v1513_v50 }
 0x271   : > { %1960 = vpow2.f32 %v1514_v23 }
 0x278   : > { %v1957_v24 = vpop.eup %1956 }
 0x279   : > { %v1302_v26 = vadd.f32 1.0, %v1957_v24 }
 0x27a   : > { %v1959_v27 = vpop.eup %1958 }
 0x27b   : > { %1962 = vrcp.f32 %v1302_v26  ;;  %v1311_v28 = vadd.f32 1.0, %v1959_v27  ;;  %v1961_v34 = vpop.eup %1960 }
 0x27c   : > { %1964 = vtanh.f32 %v1314_v25  ;;  %v1322_v41 = vadd.f32 1.0, %v1961_v34 }
 0x27d   : > { %1966 = vrcp.f32 %v1311_v28 }
 0x27e   : > { %1968 = vrcp.f32 %v1322_v41 }
 0x281   : > { %v1200_v29 = vpop.f32.mrb[2].mxu0 }
 0x282   : > { %v1271_v30 = vpop.f32.mrb[2].mxu1  ;;  %v1202_v31 = vpop.f32.mrb[3].mxu0 }
 0x283   : > { %v1280_v32 = vcombine.low %v1200_v29, %v1202_v31  ;;  %v1273_v33 = vpop.f32.mrb[3].mxu1 }
 0x284   : > { %v1281_v35 = vcombine.low %v1271_v30, %v1273_v33 }
 0x285   : > { %v1963_v37 = vpop.eup %1962  ;;  %v1288_v38 = vrot.slane %v1280_v32, %v2875_v36 }
 0x286   : > { %v1965_v39 = vpop.eup %1964  ;;  %v1295_v14 = vrot.slane %v1281_v35, %v2875_v36 }
 0x287   : > { %v1967_v40 = vpop.eup %1966  ;;  %v1326_v44 = vmul.f32 %v1965_v39, %v1963_v37 }
 0x288   : > { %v1325_v43 = vmul.f32 %v2018_v51, %v1967_v40  ;;  %v1296_v20 = vcombine.low %v1288_v38, %v1295_v14  ;;  %v1969_v47 = vpop.eup %1968 }
 0x28a   : > { %v1327_v51 = vadd.f32 %v1326_v44, %v1325_v43   ;;  %v1298_v16 = vadd.f32 %v1296_v20, %v1069_v42 }
 0x28c   : > { %1970 = vtanh.f32 %v1327_v51  ;;  %v1515_v21 = vmul.f32 -1.442695, %v1298_v16  ;;  %v1337_v13 = vrot.slane %v1298_v16, 2  ;;  %v1348_v46 = vrot.slane %v1298_v16, 6 }
 0x28d   : > { %v1345_v55 = vrot.slane %v1298_v16, 4 }
 0x28e   : > { %1972 = vpow2.f32 %v1515_v21  ;;  %v1516_v45 = vmul.f32 -1.442695, %v1337_v13  ;;  %v1517_v53 = vmul.f32 -1.442695, %v1348_v46 }
 0x290   : > { %1974 = vpow2.f32 %v1516_v45 }
 0x291   : > { %1976 = vpow2.f32 %v1517_v53 }
 0x296   : > { %v1971_v48 = vpop.eup %1970 }
 0x297   : > { %v1329_v52 = vmul.f32 %v1971_v48, %v1969_v47  }
 0x298   : > { %v1973_v54 = vpop.eup %1972 }
 0x299   : > { %1363 = vst [vmem:[%s1362_s26] sm:$0x3] %v1329_v52  ;;  %v1333_v56 = vadd.f32 1.0, %v1973_v54 }
 0x29a   : > { %v1975_v57 = vpop.eup %1974 }
 0x29b   : > { %1978 = vrcp.f32 %v1333_v56  ;;  %v1342_v58 = vadd.f32 1.0, %v1975_v57  ;;  %v1977_v59 = vpop.eup %1976 }
 0x29c   : > { %1980 = vtanh.f32 %v1345_v55  ;;  %v1353_v0 = vadd.f32 1.0, %v1977_v59 }
 0x29d   : > { %1982 = vrcp.f32 %v1342_v58 }
 0x29e   : > { %1984 = vrcp.f32 %v1353_v0 }
 0x2a0   :  { %v1367_v5 = vld [vmem:[#allocation4] sm:$0x3] (%p824_p0)  ;;  %v1368_v7 = vld [vmem:[#allocation4 + $0x2] sm:$0x3] (%p824_p0)  ;;  %v1369_v10 = vld [vmem:[#allocation4 + $0x4] sm:$0x3] (%p824_p0) }
 0x2a1   :  { %v1370_v18 = vld [vmem:[#allocation4 + $0x6] sm:$0x3] (%p824_p0)  ;;  %v1371_v15 = vld [vmem:[#allocation4 + $0x8] sm:$0x3] (%p824_p0)  ;;  %v1372_v17 = vld [vmem:[#allocation4 + $0xa] sm:$0x3] (%p824_p0) }
 0x2a2   :  { %v1373_v51 = vld [vmem:[#allocation4 + $0xc] sm:$0x3] (%p824_p0)  ;;  %v1374_v24 = vld [vmem:[#allocation4 + $0xe] sm:$0x3] (%p824_p0) }
 0x2a5   : > { %v1979_v61 = vpop.eup %1978 }
 0x2a6   : > { %v1981_v62 = vpop.eup %1980 }
 0x2a7   : > { %v1983_v63 = vpop.eup %1982  ;;  %v1357_v2 = vmul.f32 %v1981_v62, %v1979_v61 }
 0x2a8   : > { %v1356_v1 = vmul.f32 %v2010_v49, %v1983_v63  ;;  %v1985_v3 = vpop.eup %1984 }
 0x2aa   : > { %v1358_v49 = vadd.f32 %v1357_v2, %v1356_v1  }
 0x2ac   : > { %1986 = vtanh.f32 %v1358_v49 }
 0x2b3   :  { %826 = sbr.rel (!%p824_p0) target bundleno = 362 (0x16a), region = 51 }
 0x2b6   : > { %v1987_v4 = vpop.eup %1986 }
 0x2b7   : > { %v1360_v50 = vmul.f32 %v1987_v4, %v1985_v3  }
 0x2b9   : > { %1366 = vst [vmem:[%s1365_s28] sm:$0x3] %v1360_v50 }
 0x2c0   :  { %v1375_v6 = vld [vmem:[#allocation5] sm:$0x3]  ;;  %v1376_v9 = vld [vmem:[#allocation5 + $0x2] sm:$0x3]  ;;  %v1377_v11 = vld [vmem:[#allocation5 + $0x4] sm:$0x3] }
 0x2c1   :  { %v1399_v8 = vcombine.low %v1367_v5, %v1375_v6  ;;  %v1407_v12 = vcombine.low %v1368_v7, %v1376_v9  ;;  %v1415_v60 = vcombine.low %v1369_v10, %v1377_v11  ;;  %v1378_v19 = vld [vmem:[#allocation5 + $0x6] sm:$0x3]  ;;  %v1379_v22 = vld [vmem:[#allocation5 + $0x8] sm:$0x3]  ;;  %v1380_v23 = vld [vmem:[#allocation5 + $0xa] sm:$0x3] }
 0x2c2   :  { %v1423_v52 = vcombine.low %v1370_v18, %v1378_v19  ;;  %v1431_v36 = vcombine.low %v1371_v15, %v1379_v22  ;;  %v1439_v49 = vcombine.low %v1372_v17, %v1380_v23  ;;  %v1381_v50 = vld [vmem:[#allocation5 + $0xc] sm:$0x3]  ;;  %v1382_v26 = vld [vmem:[#allocation5 + $0xe] sm:$0x3] }
 0x2c3   :  { %1520 = vst.sshfl [vmem:[%s3369_s5] sm:$0x33 pattern:$0x76325410] %v1399_v8  ;;  %v1447_v25 = vcombine.low %v1373_v51, %v1381_v50  ;;  %v1455_v27 = vcombine.low %v1374_v24, %v1382_v26 }
 0x2c4   :  { %1521 = vst.sshfl [vmem:[%s3369_s5 + $0x4] sm:$0x33 pattern:$0x76325410] %v1407_v12 }
 0x2c5   :  { %1522 = vst.sshfl [vmem:[%s3369_s5 + $0x8] sm:$0x33 pattern:$0x76325410] %v1415_v60 }
 0x2c6   :  { %1523 = vst.sshfl [vmem:[%s3369_s5 + $0xc] sm:$0x33 pattern:$0x76325410] %v1423_v52 }
 0x2c7   :  { %1524 = vst.sshfl [vmem:[%s3369_s5 + $0x10] sm:$0x33 pattern:$0x76325410] %v1431_v36 }
 0x2c8   :  { %1525 = vst.sshfl [vmem:[%s3369_s5 + $0x14] sm:$0x33 pattern:$0x76325410] %v1439_v49 }
 0x2c9   :  { %1526 = vst.sshfl [vmem:[%s3369_s5 + $0x18] sm:$0x33 pattern:$0x76325410] %v1447_v25 }
 0x2ca   :  { %1527 = vst.sshfl [vmem:[%s3369_s5 + $0x1c] sm:$0x33 pattern:$0x76325410] %v1455_v27 }

</bundles_post_ra>
